<compile_context>
chip_gen: v7x
topology: tpu7x:2x2x1
jax: 0.10.0
libtpu: 0.0.40
codegen_flags: <defaults>
</compile_context>

<pallas_src>
import math

import jax
import jax.numpy as jnp
from jax.experimental import pallas as pl
from jax.experimental.pallas import tpu as pltpu

# ---------------- config (small synthetic shapes) ----------------
VOCAB = 128
HIDDEN = 32
NUM_HEADS = 4
HEAD_DIM = 8            # config.head_dim
INTERMEDIATE = 64
NUM_LAYERS = 2
BATCH = 2
SEQ = 8
EPS = 1e-6              # config.rms_norm_eps
ROPE_THETA = 10000.0    # config.rope_theta
ROPE_SCALING = 1.0      # config.rope_scaling_factor
INIT_STD = 0.02         # config.initializer_range

QKDIM = NUM_HEADS * HEAD_DIM  # 32


# ---------------- fused whole-model Pallas kernel ----------------
def build_ava_forward(B, S):
    """Single gridless pallas_call running the full AvaModel forward:
    in-kernel embedding gather -> NUM_LAYERS x (RMSNorm -> causal MHA(+RoPE)
    -> residual -> RMSNorm -> SwiGLU MLP -> residual) -> final RMSNorm."""
    BS = B * S
    nh, hd, H, F = NUM_HEADS, HEAD_DIM, HIDDEN, INTERMEDIATE
    scale = 1.0 / math.sqrt(hd)

    def kernel(ids_ref, embed_ref, cos_ref, sin_ref, rot_ref,
               ln1_ref, ln2_ref, wq_ref, wk_ref, wv_ref, wo_ref,
               wg_ref, wu_ref, wd_ref, wnorm_ref, out_ref):
        # ---- fused embedding lookup: exact one-hot f32 matmul ----
        ids = ids_ref[...]                                        # (BS, 1) int32
        col = jax.lax.broadcasted_iota(jnp.int32, (BS, VOCAB), 1)
        onehot = jnp.where(col == ids, 1.0, 0.0).astype(jnp.float32)
        x = jnp.dot(onehot, embed_ref[...],
                    preferred_element_type=jnp.float32)           # (BS, H) f32

        cos = cos_ref[...]      # (2*nh*B*S, hd) f32, row-tiled for stacked q;k
        sin = sin_ref[...]
        rot = rot_ref[...]      # (hd, hd) bf16 rotate-half matrix (entries 0/+-1)

        # causal mask, built once; broadcasts over the (nh*B) attention batch
        row = jax.lax.broadcasted_iota(jnp.int32, (S, S), 0)
        colm = jax.lax.broadcasted_iota(jnp.int32, (S, S), 1)
        neg = jnp.where(colm > row, -1e30, 0.0).astype(jnp.float32)[None]   # (1,S,S)

        def rms_norm(v, w):     # v: (BS,H) f32, w: (1,H) f32 — f32 on VPU (v5e-safe)
            var = jnp.mean(v * v, axis=-1, keepdims=True)
            return v * jax.lax.rsqrt(var + EPS) * w

        for l in range(NUM_LAYERS):        # static unroll, weights indexed per layer
            # ---------------- self-attention ----------------
            hn = rms_norm(x, ln1_ref[l]).astype(jnp.bfloat16)          # (BS, H)
            hn3 = jnp.broadcast_to(hn[None], (nh, BS, H))              # (nh, BS, H)

            # head-major projections: one batched (nh,BS,H)@(nh,H,hd) einsum each,
            # heads land on the leading (major) axis — no lane slicing needed.
            q3 = jnp.einsum('hme,hed->hmd', hn3, wq_ref[l],
                            preferred_element_type=jnp.float32)        # (nh,BS,hd) f32
            k3 = jnp.einsum('hme,hed->hmd', hn3, wk_ref[l],
                            preferred_element_type=jnp.float32)
            v3 = jnp.einsum('hme,hed->hmd', hn3, wv_ref[l],
                            preferred_element_type=jnp.float32)

            # RoPE: stack q;k along sublanes -> ONE bf16 (2*nh*BS,hd)@(hd,hd) push.
            qk_flat = jnp.concatenate(
                [q3.reshape(nh * BS, hd), k3.reshape(nh * BS, hd)], axis=0)
            rot_part = jnp.dot(qk_flat.astype(jnp.bfloat16), rot,
                               preferred_element_type=jnp.float32)
            roped = qk_flat * cos + rot_part * sin                     # f32 elementwise
            q_b = roped[:nh * BS].astype(jnp.bfloat16).reshape(nh * B, S, hd)
            k_b = roped[nh * BS:].astype(jnp.bfloat16).reshape(nh * B, S, hd)
            v_b = v3.astype(jnp.bfloat16).reshape(nh * B, S, hd)

            # causal attention for all heads/batches at once (batch = nh*B)
            sc = jnp.einsum('bqd,bkd->bqk', q_b, k_b,
                            preferred_element_type=jnp.float32) * scale + neg
            sc = sc - jnp.max(sc, axis=-1, keepdims=True)
            p = jnp.exp(sc)
            p = p * pl.reciprocal(jnp.sum(p, axis=-1, keepdims=True), approx=True)
            ctx = jnp.einsum('bqk,bkd->bqd', p.astype(jnp.bfloat16), v_b,
                             preferred_element_type=jnp.float32)       # (nh*B,S,hd)

            # output projection: head-batched matmul, then sum over heads (3 adds)
            ctx3 = ctx.reshape(nh, BS, hd).astype(jnp.bfloat16)
            attn = jnp.einsum('hmd,hdo->hmo', ctx3, wo_ref[l],
                              preferred_element_type=jnp.float32)      # (nh, BS, H)
            attn_out = attn[0]
            for h in range(1, nh):
                attn_out = attn_out + attn[h]
            x = x + attn_out

            # ---------------- MLP (SwiGLU) ----------------
            hn2 = rms_norm(x, ln2_ref[l]).astype(jnp.bfloat16)
            g = jnp.dot(hn2, wg_ref[l], preferred_element_type=jnp.float32)  # (BS,F)
            u = jnp.dot(hn2, wu_ref[l], preferred_element_type=jnp.float32)  # (BS,F)
            act = (g * jax.nn.sigmoid(g) * u).astype(jnp.bfloat16)           # SiLU*up
            x = x + jnp.dot(act, wd_ref[l], preferred_element_type=jnp.float32)

        # final RMSNorm
        out_ref[...] = rms_norm(x, wnorm_ref[...]).astype(out_ref.dtype)
        # TODO(synk): out last-dim is 32 (<128 lanes) -> masked vst; a lane-dense
        # store is intentionally NOT done (2 KB writeback, relayout would cost more).

    spec = pl.BlockSpec(memory_space=pltpu.MemorySpace.VMEM)   # whole array, VMEM-resident
    return pl.pallas_call(
        kernel,
        out_shape=jax.ShapeDtypeStruct((BS, H), jnp.float32),
        in_specs=[spec] * 15,
        out_specs=spec,
    )


# ---------------- host-side precompute (tiny constants) ----------------
def rope_tables(B, S):
    """cos/sin tables row-tiled to (2*nh*B*S, hd) for the stacked (q;k) RoPE matmul."""
    hd = HEAD_DIM
    inv_freq = 1.0 / (ROPE_THETA ** (jnp.arange(0, hd, 2, dtype=jnp.float32) / hd))
    pos = jnp.arange(S, dtype=jnp.float32) / ROPE_SCALING
    freqs = pos[:, None] * inv_freq[None, :]                 # (S, hd/2)
    emb = jnp.concatenate([freqs, freqs], axis=-1)           # (S, hd)
    cos = jnp.cos(emb)
    sin = jnp.sin(emb)
    reps = 2 * NUM_HEADS * B                                 # stacked q;k, rows (h,b,s)
    return jnp.tile(cos, (reps, 1)), jnp.tile(sin, (reps, 1))


def rotate_half_matrix():
    """(hd, hd) matrix R with t @ R == rotate_half(t); entries 0/+-1, exact in bf16."""
    hd = HEAD_DIM
    half = hd // 2
    blk = jnp.zeros((hd, hd), jnp.float32)
    blk = blk.at[half:, :half].set(-jnp.eye(half, dtype=jnp.float32))
    blk = blk.at[:half, half:].set(jnp.eye(half, dtype=jnp.float32))
    return blk.astype(jnp.bfloat16)


def init_params(key):
    def normal(k, shape):
        return INIT_STD * jax.random.normal(k, shape, dtype=jnp.float32)

    n_w = 7  # wq, wk, wv, wo, wg, wu, wd per layer
    keys = jax.random.split(key, 1 + n_w * NUM_LAYERS)
    embed = normal(keys[0], (VOCAB, HIDDEN))

    wq, wk, wv, wo, wg, wu, wd = [], [], [], [], [], [], []
    ki = 1
    for _ in range(NUM_LAYERS):
        wq.append(normal(keys[ki + 0], (NUM_HEADS, HIDDEN, HEAD_DIM)))   # head-major
        wk.append(normal(keys[ki + 1], (NUM_HEADS, HIDDEN, HEAD_DIM)))
        wv.append(normal(keys[ki + 2], (NUM_HEADS, HIDDEN, HEAD_DIM)))
        wo.append(normal(keys[ki + 3], (NUM_HEADS, HEAD_DIM, HIDDEN)))
        wg.append(normal(keys[ki + 4], (HIDDEN, INTERMEDIATE)))
        wu.append(normal(keys[ki + 5], (HIDDEN, INTERMEDIATE)))
        wd.append(normal(keys[ki + 6], (INTERMEDIATE, HIDDEN)))
        ki += n_w

    return {
        "embed": embed,                                        # f32 (exact in-kernel gather)
        "ln1": jnp.ones((NUM_LAYERS, 1, HIDDEN), jnp.float32),
        "ln2": jnp.ones((NUM_LAYERS, 1, HIDDEN), jnp.float32),
        "wq": jnp.stack(wq).astype(jnp.bfloat16),              # bf16 matmul operands
        "wk": jnp.stack(wk).astype(jnp.bfloat16),
        "wv": jnp.stack(wv).astype(jnp.bfloat16),
        "wo": jnp.stack(wo).astype(jnp.bfloat16),
        "wg": jnp.stack(wg).astype(jnp.bfloat16),
        "wu": jnp.stack(wu).astype(jnp.bfloat16),
        "wd": jnp.stack(wd).astype(jnp.bfloat16),
        "final_norm": jnp.ones((1, HIDDEN), jnp.float32),
    }


def ava_model_forward(input_ids, params):
    """Equivalent of AvaModel.forward(input_ids)['last_hidden_state'] with
    attention_mask=None, use_cache=False, output_*=False."""
    B, S = input_ids.shape

    ids = input_ids.reshape(B * S, 1).astype(jnp.int32)   # embedding gather done in-kernel
    cos, sin = rope_tables(B, S)
    rot = rotate_half_matrix()

    fwd = build_ava_forward(B, S)
    out = fwd(ids, params["embed"], cos, sin, rot,
              params["ln1"], params["ln2"],
              params["wq"], params["wk"], params["wv"], params["wo"],
              params["wg"], params["wu"], params["wd"],
              params["final_norm"])
    return out.reshape(B, S, HIDDEN)


if __name__ == "__main__":
    key = jax.random.PRNGKey(0)
    pkey, ikey = jax.random.split(key)
    params = init_params(pkey)
    input_ids = jax.random.randint(ikey, (BATCH, SEQ), 0, VOCAB, dtype=jnp.int32)

    out = jax.jit(ava_model_forward)(input_ids, params)
    out = jax.block_until_ready(out)
    assert out.shape == (BATCH, SEQ, HIDDEN)
    assert bool(jnp.all(jnp.isfinite(out)))
    print("KERNEL_OK")
</pallas_src>

<mosaic_0001>
module attributes {stable_mosaic.version = 11 : i64} {
  func.func @kernel(%arg0: memref<16x1xi32, #tpu.memory_space<vmem>>, %arg1: memref<128x32xf32, #tpu.memory_space<vmem>>, %arg2: memref<128x8xf32, #tpu.memory_space<vmem>>, %arg3: memref<128x8xf32, #tpu.memory_space<vmem>>, %arg4: memref<8x8xbf16, #tpu.memory_space<vmem>>, %arg5: memref<2x1x32xf32, #tpu.memory_space<vmem>>, %arg6: memref<2x1x32xf32, #tpu.memory_space<vmem>>, %arg7: memref<2x4x32x8xbf16, #tpu.memory_space<vmem>>, %arg8: memref<2x4x32x8xbf16, #tpu.memory_space<vmem>>, %arg9: memref<2x4x32x8xbf16, #tpu.memory_space<vmem>>, %arg10: memref<2x4x8x32xbf16, #tpu.memory_space<vmem>>, %arg11: memref<2x32x64xbf16, #tpu.memory_space<vmem>>, %arg12: memref<2x32x64xbf16, #tpu.memory_space<vmem>>, %arg13: memref<2x64x32xbf16, #tpu.memory_space<vmem>>, %arg14: memref<1x32xf32, #tpu.memory_space<vmem>>, %arg15: memref<16x32xf32, #tpu.memory_space<vmem>>) attributes {dimension_semantics = [], scalar_prefetch = 0 : i64, scratch_operands = 0 : i64, tpu.core_type = #tpu.core_type<tc>} {
    %c0 = arith.constant 0 : index
    %c0_0 = arith.constant 0 : index
    %0 = vector.load %arg0[%c0, %c0_0] : memref<16x1xi32, #tpu.memory_space<vmem>>, vector<16x1xi32>
    %1 = tpu.iota {dimensions = array<i32: 1>} : vector<16x128xi32>
    %2 = vector.broadcast %0 : vector<16x1xi32> to vector<16x128xi32>
    %3 = arith.cmpi eq, %1, %2 : vector<16x128xi32>
    %cst = arith.constant 1.000000e+00 : f32
    %cst_1 = arith.constant 0.000000e+00 : f32
    %4 = vector.broadcast %cst : f32 to vector<16x128xf32>
    %5 = vector.broadcast %cst_1 : f32 to vector<16x128xf32>
    %6 = arith.select %3, %4, %5 : vector<16x128xi1>, vector<16x128xf32>
    %c0_2 = arith.constant 0 : index
    %c0_3 = arith.constant 0 : index
    %7 = vector.load %arg1[%c0_2, %c0_3] : memref<128x32xf32, #tpu.memory_space<vmem>>, vector<128x32xf32>
    %cst_4 = arith.constant dense<0.000000e+00> : vector<16x32xf32>
    %8 = tpu.matmul %6, %7, %cst_4 {dimension_numbers = #tpu.dot_dimension_numbers<[1], [0], [0], [1], [0, 0, 1, 1], [], []>} : vector<16x128xf32>, vector<128x32xf32>, vector<16x32xf32> -> vector<16x32xf32>
    %c0_5 = arith.constant 0 : index
    %c0_6 = arith.constant 0 : index
    %9 = vector.load %arg2[%c0_5, %c0_6] : memref<128x8xf32, #tpu.memory_space<vmem>>, vector<128x8xf32>
    %c0_7 = arith.constant 0 : index
    %c0_8 = arith.constant 0 : index
    %10 = vector.load %arg3[%c0_7, %c0_8] : memref<128x8xf32, #tpu.memory_space<vmem>>, vector<128x8xf32>
    %c0_9 = arith.constant 0 : index
    %c0_10 = arith.constant 0 : index
    %11 = vector.load %arg4[%c0_9, %c0_10] : memref<8x8xbf16, #tpu.memory_space<vmem>>, vector<8x8xbf16>
    %12 = tpu.iota {dimensions = array<i32: 0>} : vector<8x8xi32>
    %13 = tpu.iota {dimensions = array<i32: 1>} : vector<8x8xi32>
    %14 = arith.cmpi sgt, %13, %12 : vector<8x8xi32>
    %cst_11 = arith.constant -1.000000e+30 : f32
    %cst_12 = arith.constant 0.000000e+00 : f32
    %15 = vector.broadcast %cst_11 : f32 to vector<8x8xf32>
    %16 = vector.broadcast %cst_12 : f32 to vector<8x8xf32>
    %17 = arith.select %14, %15, %16 : vector<8x8xi1>, vector<8x8xf32>
    %18 = vector.shape_cast %17 : vector<8x8xf32> to vector<1x8x8xf32>
    %c0_13 = arith.constant 0 : index
    %c0_14 = arith.constant 0 : index
    %c0_15 = arith.constant 0 : index
    %19 = vector.load %arg5[%c0_13, %c0_14, %c0_15] : memref<2x1x32xf32, #tpu.memory_space<vmem>>, vector<1x1x32xf32>
    %20 = vector.shape_cast %19 : vector<1x1x32xf32> to vector<1x32xf32>
    %21 = arith.mulf %8, %8 : vector<16x32xf32>
    %cst_16 = arith.constant dense<0.000000e+00> : vector<16xf32>
    %22 = vector.multi_reduction <add>, %21, %cst_16 [1] : vector<16x32xf32> to vector<16xf32>
    %23 = vector.shape_cast %22 : vector<16xf32> to vector<16x1xf32>
    %cst_17 = arith.constant 3.200000e+01 : f32
    %24 = vector.broadcast %cst_17 : f32 to vector<16x1xf32>
    %25 = arith.divf %23, %24 : vector<16x1xf32>
    %cst_18 = arith.constant 9.99999997E-7 : f32
    %26 = vector.broadcast %cst_18 : f32 to vector<16x1xf32>
    %27 = arith.addf %25, %26 : vector<16x1xf32>
    %28 = math.rsqrt %27 : vector<16x1xf32>
    %29 = vector.broadcast %28 : vector<16x1xf32> to vector<16x32xf32>
    %30 = arith.mulf %8, %29 : vector<16x32xf32>
    %31 = vector.broadcast %20 : vector<1x32xf32> to vector<16x32xf32>
    %32 = arith.mulf %30, %31 : vector<16x32xf32>
    %33 = arith.truncf %32 : vector<16x32xf32> to vector<16x32xbf16>
    %34 = vector.shape_cast %33 : vector<16x32xbf16> to vector<1x16x32xbf16>
    %35 = vector.shape_cast %34 : vector<1x16x32xbf16> to vector<1x16x32xbf16>
    %36 = vector.broadcast %35 : vector<1x16x32xbf16> to vector<4x16x32xbf16>
    %c0_19 = arith.constant 0 : index
    %c0_20 = arith.constant 0 : index
    %c0_21 = arith.constant 0 : index
    %c0_22 = arith.constant 0 : index
    %37 = vector.load %arg7[%c0_19, %c0_20, %c0_21, %c0_22] : memref<2x4x32x8xbf16, #tpu.memory_space<vmem>>, vector<1x4x32x8xbf16>
    %38 = vector.shape_cast %37 : vector<1x4x32x8xbf16> to vector<4x32x8xbf16>
    "tpu.trace_start"() <{level = 10 : i32, message = "hme,hed->hmd"}> : () -> ()
    %cst_23 = arith.constant dense<0.000000e+00> : vector<4x16x8xf32>
    %39 = tpu.matmul %36, %38, %cst_23 {dimension_numbers = #tpu.dot_dimension_numbers<[2], [1], [1], [2], [0, 0, 0, 1, 1, 2], [0], [0]>} : vector<4x16x32xbf16>, vector<4x32x8xbf16>, vector<4x16x8xf32> -> vector<4x16x8xf32>
    "tpu.trace_stop"() : () -> ()
    %c0_24 = arith.constant 0 : index
    %c0_25 = arith.constant 0 : index
    %c0_26 = arith.constant 0 : index
    %c0_27 = arith.constant 0 : index
    %40 = vector.load %arg8[%c0_24, %c0_25, %c0_26, %c0_27] : memref<2x4x32x8xbf16, #tpu.memory_space<vmem>>, vector<1x4x32x8xbf16>
    %41 = vector.shape_cast %40 : vector<1x4x32x8xbf16> to vector<4x32x8xbf16>
    "tpu.trace_start"() <{level = 10 : i32, message = "hme,hed->hmd"}> : () -> ()
    %cst_28 = arith.constant dense<0.000000e+00> : vector<4x16x8xf32>
    %42 = tpu.matmul %36, %41, %cst_28 {dimension_numbers = #tpu.dot_dimension_numbers<[2], [1], [1], [2], [0, 0, 0, 1, 1, 2], [0], [0]>} : vector<4x16x32xbf16>, vector<4x32x8xbf16>, vector<4x16x8xf32> -> vector<4x16x8xf32>
    "tpu.trace_stop"() : () -> ()
    %c0_29 = arith.constant 0 : index
    %c0_30 = arith.constant 0 : index
    %c0_31 = arith.constant 0 : index
    %c0_32 = arith.constant 0 : index
    %43 = vector.load %arg9[%c0_29, %c0_30, %c0_31, %c0_32] : memref<2x4x32x8xbf16, #tpu.memory_space<vmem>>, vector<1x4x32x8xbf16>
    %44 = vector.shape_cast %43 : vector<1x4x32x8xbf16> to vector<4x32x8xbf16>
    "tpu.trace_start"() <{level = 10 : i32, message = "hme,hed->hmd"}> : () -> ()
    %cst_33 = arith.constant dense<0.000000e+00> : vector<4x16x8xf32>
    %45 = tpu.matmul %36, %44, %cst_33 {dimension_numbers = #tpu.dot_dimension_numbers<[2], [1], [1], [2], [0, 0, 0, 1, 1, 2], [0], [0]>} : vector<4x16x32xbf16>, vector<4x32x8xbf16>, vector<4x16x8xf32> -> vector<4x16x8xf32>
    "tpu.trace_stop"() : () -> ()
    %46 = vector.shape_cast %39 : vector<4x16x8xf32> to vector<64x8xf32>
    %47 = vector.shape_cast %42 : vector<4x16x8xf32> to vector<64x8xf32>
    %48 = tpu.concatenate %46, %47 in 0 : vector<64x8xf32>, vector<64x8xf32> -> vector<128x8xf32>
    %49 = arith.truncf %48 : vector<128x8xf32> to vector<128x8xbf16>
    %cst_34 = arith.constant dense<0.000000e+00> : vector<128x8xf32>
    %50 = tpu.matmul %49, %11, %cst_34 {dimension_numbers = #tpu.dot_dimension_numbers<[1], [0], [0], [1], [0, 0, 1, 1], [], []>} : vector<128x8xbf16>, vector<8x8xbf16>, vector<128x8xf32> -> vector<128x8xf32>
    %51 = arith.mulf %48, %9 : vector<128x8xf32>
    %52 = arith.mulf %50, %10 : vector<128x8xf32>
    %53 = arith.addf %51, %52 : vector<128x8xf32>
    %54 = vector.extract_strided_slice %53 {offsets = [0, 0], sizes = [64, 8], strides = [1, 1]} : vector<128x8xf32> to vector<64x8xf32>
    %55 = arith.truncf %54 : vector<64x8xf32> to vector<64x8xbf16>
    %56 = vector.shape_cast %55 : vector<64x8xbf16> to vector<8x8x8xbf16>
    %57 = vector.extract_strided_slice %53 {offsets = [64, 0], sizes = [64, 8], strides = [1, 1]} : vector<128x8xf32> to vector<64x8xf32>
    %58 = arith.truncf %57 : vector<64x8xf32> to vector<64x8xbf16>
    %59 = vector.shape_cast %58 : vector<64x8xbf16> to vector<8x8x8xbf16>
    %60 = arith.truncf %45 : vector<4x16x8xf32> to vector<4x16x8xbf16>
    %61 = vector.shape_cast %60 : vector<4x16x8xbf16> to vector<8x8x8xbf16>
    "tpu.trace_start"() <{level = 10 : i32, message = "bqd,bkd->bqk"}> : () -> ()
    %cst_35 = arith.constant dense<0.000000e+00> : vector<8x8x8xf32>
    %62 = tpu.matmul %56, %59, %cst_35 {dimension_numbers = #tpu.dot_dimension_numbers<[2], [2], [1], [1], [0, 0, 0, 1, 1, 1], [0], [0]>} : vector<8x8x8xbf16>, vector<8x8x8xbf16>, vector<8x8x8xf32> -> vector<8x8x8xf32>
    "tpu.trace_stop"() : () -> ()
    %cst_36 = arith.constant 0.353553385 : f32
    %63 = vector.broadcast %cst_36 : f32 to vector<8x8x8xf32>
    %64 = arith.mulf %62, %63 : vector<8x8x8xf32>
    %65 = vector.broadcast %18 : vector<1x8x8xf32> to vector<8x8x8xf32>
    %66 = arith.addf %64, %65 : vector<8x8x8xf32>
    %cst_37 = arith.constant dense<0xFF800000> : vector<8x8xf32>
    %67 = vector.multi_reduction <maximumf>, %66, %cst_37 [2] : vector<8x8x8xf32> to vector<8x8xf32>
    %68 = vector.shape_cast %67 : vector<8x8xf32> to vector<8x8x1xf32>
    %69 = vector.broadcast %68 : vector<8x8x1xf32> to vector<8x8x8xf32>
    %70 = arith.subf %66, %69 : vector<8x8x8xf32>
    %71 = math.exp %70 : vector<8x8x8xf32>
    %cst_38 = arith.constant dense<0.000000e+00> : vector<8x8xf32>
    %72 = vector.multi_reduction <add>, %71, %cst_38 [2] : vector<8x8x8xf32> to vector<8x8xf32>
    %73 = vector.shape_cast %72 : vector<8x8xf32> to vector<8x8x1xf32>
    %74 = tpu.reciprocal %73 {approx = true} : vector<8x8x1xf32> -> vector<8x8x1xf32>
    %75 = vector.broadcast %74 : vector<8x8x1xf32> to vector<8x8x8xf32>
    %76 = arith.mulf %71, %75 : vector<8x8x8xf32>
    %77 = arith.truncf %76 : vector<8x8x8xf32> to vector<8x8x8xbf16>
    "tpu.trace_start"() <{level = 10 : i32, message = "bqk,bkd->bqd"}> : () -> ()
    %cst_39 = arith.constant dense<0.000000e+00> : vector<8x8x8xf32>
    %78 = tpu.matmul %77, %61, %cst_39 {dimension_numbers = #tpu.dot_dimension_numbers<[2], [1], [1], [2], [0, 0, 0, 1, 1, 2], [0], [0]>} : vector<8x8x8xbf16>, vector<8x8x8xbf16>, vector<8x8x8xf32> -> vector<8x8x8xf32>
    "tpu.trace_stop"() : () -> ()
    %79 = vector.shape_cast %78 : vector<8x8x8xf32> to vector<4x16x8xf32>
    %80 = arith.truncf %79 : vector<4x16x8xf32> to vector<4x16x8xbf16>
    %c0_40 = arith.constant 0 : index
    %c0_41 = arith.constant 0 : index
    %c0_42 = arith.constant 0 : index
    %c0_43 = arith.constant 0 : index
    %81 = vector.load %arg10[%c0_40, %c0_41, %c0_42, %c0_43] : memref<2x4x8x32xbf16, #tpu.memory_space<vmem>>, vector<1x4x8x32xbf16>
    %82 = vector.shape_cast %81 : vector<1x4x8x32xbf16> to vector<4x8x32xbf16>
    "tpu.trace_start"() <{level = 10 : i32, message = "hmd,hdo->hmo"}> : () -> ()
    %cst_44 = arith.constant dense<0.000000e+00> : vector<4x16x32xf32>
    %83 = tpu.matmul %80, %82, %cst_44 {dimension_numbers = #tpu.dot_dimension_numbers<[2], [1], [1], [2], [0, 0, 0, 1, 1, 2], [0], [0]>} : vector<4x16x8xbf16>, vector<4x8x32xbf16>, vector<4x16x32xf32> -> vector<4x16x32xf32>
    "tpu.trace_stop"() : () -> ()
    %84 = vector.extract_strided_slice %83 {offsets = [0, 0, 0], sizes = [1, 16, 32], strides = [1, 1, 1]} : vector<4x16x32xf32> to vector<1x16x32xf32>
    %85 = vector.shape_cast %84 : vector<1x16x32xf32> to vector<16x32xf32>
    %86 = vector.extract_strided_slice %83 {offsets = [1, 0, 0], sizes = [1, 16, 32], strides = [1, 1, 1]} : vector<4x16x32xf32> to vector<1x16x32xf32>
    %87 = vector.shape_cast %86 : vector<1x16x32xf32> to vector<16x32xf32>
    %88 = arith.addf %85, %87 : vector<16x32xf32>
    %89 = vector.extract_strided_slice %83 {offsets = [2, 0, 0], sizes = [1, 16, 32], strides = [1, 1, 1]} : vector<4x16x32xf32> to vector<1x16x32xf32>
    %90 = vector.shape_cast %89 : vector<1x16x32xf32> to vector<16x32xf32>
    %91 = arith.addf %88, %90 : vector<16x32xf32>
    %92 = vector.extract_strided_slice %83 {offsets = [3, 0, 0], sizes = [1, 16, 32], strides = [1, 1, 1]} : vector<4x16x32xf32> to vector<1x16x32xf32>
    %93 = vector.shape_cast %92 : vector<1x16x32xf32> to vector<16x32xf32>
    %94 = arith.addf %91, %93 : vector<16x32xf32>
    %95 = arith.addf %8, %94 : vector<16x32xf32>
    %c0_45 = arith.constant 0 : index
    %c0_46 = arith.constant 0 : index
    %c0_47 = arith.constant 0 : index
    %96 = vector.load %arg6[%c0_45, %c0_46, %c0_47] : memref<2x1x32xf32, #tpu.memory_space<vmem>>, vector<1x1x32xf32>
    %97 = vector.shape_cast %96 : vector<1x1x32xf32> to vector<1x32xf32>
    %98 = arith.mulf %95, %95 : vector<16x32xf32>
    %cst_48 = arith.constant dense<0.000000e+00> : vector<16xf32>
    %99 = vector.multi_reduction <add>, %98, %cst_48 [1] : vector<16x32xf32> to vector<16xf32>
    %100 = vector.shape_cast %99 : vector<16xf32> to vector<16x1xf32>
    %cst_49 = arith.constant 3.200000e+01 : f32
    %101 = vector.broadcast %cst_49 : f32 to vector<16x1xf32>
    %102 = arith.divf %100, %101 : vector<16x1xf32>
    %cst_50 = arith.constant 9.99999997E-7 : f32
    %103 = vector.broadcast %cst_50 : f32 to vector<16x1xf32>
    %104 = arith.addf %102, %103 : vector<16x1xf32>
    %105 = math.rsqrt %104 : vector<16x1xf32>
    %106 = vector.broadcast %105 : vector<16x1xf32> to vector<16x32xf32>
    %107 = arith.mulf %95, %106 : vector<16x32xf32>
    %108 = vector.broadcast %97 : vector<1x32xf32> to vector<16x32xf32>
    %109 = arith.mulf %107, %108 : vector<16x32xf32>
    %110 = arith.truncf %109 : vector<16x32xf32> to vector<16x32xbf16>
    %c0_51 = arith.constant 0 : index
    %c0_52 = arith.constant 0 : index
    %c0_53 = arith.constant 0 : index
    %111 = vector.load %arg11[%c0_51, %c0_52, %c0_53] : memref<2x32x64xbf16, #tpu.memory_space<vmem>>, vector<1x32x64xbf16>
    %112 = vector.shape_cast %111 : vector<1x32x64xbf16> to vector<32x64xbf16>
    %cst_54 = arith.constant dense<0.000000e+00> : vector<16x64xf32>
    %113 = tpu.matmul %110, %112, %cst_54 {dimension_numbers = #tpu.dot_dimension_numbers<[1], [0], [0], [1], [0, 0, 1, 1], [], []>} : vector<16x32xbf16>, vector<32x64xbf16>, vector<16x64xf32> -> vector<16x64xf32>
    %c0_55 = arith.constant 0 : index
    %c0_56 = arith.constant 0 : index
    %c0_57 = arith.constant 0 : index
    %114 = vector.load %arg12[%c0_55, %c0_56, %c0_57] : memref<2x32x64xbf16, #tpu.memory_space<vmem>>, vector<1x32x64xbf16>
    %115 = vector.shape_cast %114 : vector<1x32x64xbf16> to vector<32x64xbf16>
    %cst_58 = arith.constant dense<0.000000e+00> : vector<16x64xf32>
    %116 = tpu.matmul %110, %115, %cst_58 {dimension_numbers = #tpu.dot_dimension_numbers<[1], [0], [0], [1], [0, 0, 1, 1], [], []>} : vector<16x32xbf16>, vector<32x64xbf16>, vector<16x64xf32> -> vector<16x64xf32>
    %117 = arith.negf %113 : vector<16x64xf32>
    %118 = math.exp %117 : vector<16x64xf32>
    %cst_59 = arith.constant 1.000000e+00 : f32
    %119 = vector.broadcast %cst_59 : f32 to vector<16x64xf32>
    %120 = arith.addf %119, %118 : vector<16x64xf32>
    %121 = arith.divf %119, %120 : vector<16x64xf32>
    %122 = arith.mulf %113, %121 : vector<16x64xf32>
    %123 = arith.mulf %122, %116 : vector<16x64xf32>
    %124 = arith.truncf %123 : vector<16x64xf32> to vector<16x64xbf16>
    %c0_60 = arith.constant 0 : index
    %c0_61 = arith.constant 0 : index
    %c0_62 = arith.constant 0 : index
    %125 = vector.load %arg13[%c0_60, %c0_61, %c0_62] : memref<2x64x32xbf16, #tpu.memory_space<vmem>>, vector<1x64x32xbf16>
    %126 = vector.shape_cast %125 : vector<1x64x32xbf16> to vector<64x32xbf16>
    %cst_63 = arith.constant dense<0.000000e+00> : vector<16x32xf32>
    %127 = tpu.matmul %124, %126, %cst_63 {dimension_numbers = #tpu.dot_dimension_numbers<[1], [0], [0], [1], [0, 0, 1, 1], [], []>} : vector<16x64xbf16>, vector<64x32xbf16>, vector<16x32xf32> -> vector<16x32xf32>
    %128 = arith.addf %95, %127 : vector<16x32xf32>
    %c1 = arith.constant 1 : index
    %c0_64 = arith.constant 0 : index
    %c0_65 = arith.constant 0 : index
    %129 = vector.load %arg5[%c1, %c0_64, %c0_65] : memref<2x1x32xf32, #tpu.memory_space<vmem>>, vector<1x1x32xf32>
    %130 = vector.shape_cast %129 : vector<1x1x32xf32> to vector<1x32xf32>
    %131 = arith.mulf %128, %128 : vector<16x32xf32>
    %cst_66 = arith.constant dense<0.000000e+00> : vector<16xf32>
    %132 = vector.multi_reduction <add>, %131, %cst_66 [1] : vector<16x32xf32> to vector<16xf32>
    %133 = vector.shape_cast %132 : vector<16xf32> to vector<16x1xf32>
    %cst_67 = arith.constant 3.200000e+01 : f32
    %134 = vector.broadcast %cst_67 : f32 to vector<16x1xf32>
    %135 = arith.divf %133, %134 : vector<16x1xf32>
    %cst_68 = arith.constant 9.99999997E-7 : f32
    %136 = vector.broadcast %cst_68 : f32 to vector<16x1xf32>
    %137 = arith.addf %135, %136 : vector<16x1xf32>
    %138 = math.rsqrt %137 : vector<16x1xf32>
    %139 = vector.broadcast %138 : vector<16x1xf32> to vector<16x32xf32>
    %140 = arith.mulf %128, %139 : vector<16x32xf32>
    %141 = vector.broadcast %130 : vector<1x32xf32> to vector<16x32xf32>
    %142 = arith.mulf %140, %141 : vector<16x32xf32>
    %143 = arith.truncf %142 : vector<16x32xf32> to vector<16x32xbf16>
    %144 = vector.shape_cast %143 : vector<16x32xbf16> to vector<1x16x32xbf16>
    %145 = vector.shape_cast %144 : vector<1x16x32xbf16> to vector<1x16x32xbf16>
    %146 = vector.broadcast %145 : vector<1x16x32xbf16> to vector<4x16x32xbf16>
    %c1_69 = arith.constant 1 : index
    %c0_70 = arith.constant 0 : index
    %c0_71 = arith.constant 0 : index
    %c0_72 = arith.constant 0 : index
    %147 = vector.load %arg7[%c1_69, %c0_70, %c0_71, %c0_72] : memref<2x4x32x8xbf16, #tpu.memory_space<vmem>>, vector<1x4x32x8xbf16>
    %148 = vector.shape_cast %147 : vector<1x4x32x8xbf16> to vector<4x32x8xbf16>
    "tpu.trace_start"() <{level = 10 : i32, message = "hme,hed->hmd"}> : () -> ()
    %cst_73 = arith.constant dense<0.000000e+00> : vector<4x16x8xf32>
    %149 = tpu.matmul %146, %148, %cst_73 {dimension_numbers = #tpu.dot_dimension_numbers<[2], [1], [1], [2], [0, 0, 0, 1, 1, 2], [0], [0]>} : vector<4x16x32xbf16>, vector<4x32x8xbf16>, vector<4x16x8xf32> -> vector<4x16x8xf32>
    "tpu.trace_stop"() : () -> ()
    %c1_74 = arith.constant 1 : index
    %c0_75 = arith.constant 0 : index
    %c0_76 = arith.constant 0 : index
    %c0_77 = arith.constant 0 : index
    %150 = vector.load %arg8[%c1_74, %c0_75, %c0_76, %c0_77] : memref<2x4x32x8xbf16, #tpu.memory_space<vmem>>, vector<1x4x32x8xbf16>
    %151 = vector.shape_cast %150 : vector<1x4x32x8xbf16> to vector<4x32x8xbf16>
    "tpu.trace_start"() <{level = 10 : i32, message = "hme,hed->hmd"}> : () -> ()
    %cst_78 = arith.constant dense<0.000000e+00> : vector<4x16x8xf32>
    %152 = tpu.matmul %146, %151, %cst_78 {dimension_numbers = #tpu.dot_dimension_numbers<[2], [1], [1], [2], [0, 0, 0, 1, 1, 2], [0], [0]>} : vector<4x16x32xbf16>, vector<4x32x8xbf16>, vector<4x16x8xf32> -> vector<4x16x8xf32>
    "tpu.trace_stop"() : () -> ()
    %c1_79 = arith.constant 1 : index
    %c0_80 = arith.constant 0 : index
    %c0_81 = arith.constant 0 : index
    %c0_82 = arith.constant 0 : index
    %153 = vector.load %arg9[%c1_79, %c0_80, %c0_81, %c0_82] : memref<2x4x32x8xbf16, #tpu.memory_space<vmem>>, vector<1x4x32x8xbf16>
    %154 = vector.shape_cast %153 : vector<1x4x32x8xbf16> to vector<4x32x8xbf16>
    "tpu.trace_start"() <{level = 10 : i32, message = "hme,hed->hmd"}> : () -> ()
    %cst_83 = arith.constant dense<0.000000e+00> : vector<4x16x8xf32>
    %155 = tpu.matmul %146, %154, %cst_83 {dimension_numbers = #tpu.dot_dimension_numbers<[2], [1], [1], [2], [0, 0, 0, 1, 1, 2], [0], [0]>} : vector<4x16x32xbf16>, vector<4x32x8xbf16>, vector<4x16x8xf32> -> vector<4x16x8xf32>
    "tpu.trace_stop"() : () -> ()
    %156 = vector.shape_cast %149 : vector<4x16x8xf32> to vector<64x8xf32>
    %157 = vector.shape_cast %152 : vector<4x16x8xf32> to vector<64x8xf32>
    %158 = tpu.concatenate %156, %157 in 0 : vector<64x8xf32>, vector<64x8xf32> -> vector<128x8xf32>
    %159 = arith.truncf %158 : vector<128x8xf32> to vector<128x8xbf16>
    %cst_84 = arith.constant dense<0.000000e+00> : vector<128x8xf32>
    %160 = tpu.matmul %159, %11, %cst_84 {dimension_numbers = #tpu.dot_dimension_numbers<[1], [0], [0], [1], [0, 0, 1, 1], [], []>} : vector<128x8xbf16>, vector<8x8xbf16>, vector<128x8xf32> -> vector<128x8xf32>
    %161 = arith.mulf %158, %9 : vector<128x8xf32>
    %162 = arith.mulf %160, %10 : vector<128x8xf32>
    %163 = arith.addf %161, %162 : vector<128x8xf32>
    %164 = vector.extract_strided_slice %163 {offsets = [0, 0], sizes = [64, 8], strides = [1, 1]} : vector<128x8xf32> to vector<64x8xf32>
    %165 = arith.truncf %164 : vector<64x8xf32> to vector<64x8xbf16>
    %166 = vector.shape_cast %165 : vector<64x8xbf16> to vector<8x8x8xbf16>
    %167 = vector.extract_strided_slice %163 {offsets = [64, 0], sizes = [64, 8], strides = [1, 1]} : vector<128x8xf32> to vector<64x8xf32>
    %168 = arith.truncf %167 : vector<64x8xf32> to vector<64x8xbf16>
    %169 = vector.shape_cast %168 : vector<64x8xbf16> to vector<8x8x8xbf16>
    %170 = arith.truncf %155 : vector<4x16x8xf32> to vector<4x16x8xbf16>
    %171 = vector.shape_cast %170 : vector<4x16x8xbf16> to vector<8x8x8xbf16>
    "tpu.trace_start"() <{level = 10 : i32, message = "bqd,bkd->bqk"}> : () -> ()
    %cst_85 = arith.constant dense<0.000000e+00> : vector<8x8x8xf32>
    %172 = tpu.matmul %166, %169, %cst_85 {dimension_numbers = #tpu.dot_dimension_numbers<[2], [2], [1], [1], [0, 0, 0, 1, 1, 1], [0], [0]>} : vector<8x8x8xbf16>, vector<8x8x8xbf16>, vector<8x8x8xf32> -> vector<8x8x8xf32>
    "tpu.trace_stop"() : () -> ()
    %cst_86 = arith.constant 0.353553385 : f32
    %173 = vector.broadcast %cst_86 : f32 to vector<8x8x8xf32>
    %174 = arith.mulf %172, %173 : vector<8x8x8xf32>
    %175 = vector.broadcast %18 : vector<1x8x8xf32> to vector<8x8x8xf32>
    %176 = arith.addf %174, %175 : vector<8x8x8xf32>
    %cst_87 = arith.constant dense<0xFF800000> : vector<8x8xf32>
    %177 = vector.multi_reduction <maximumf>, %176, %cst_87 [2] : vector<8x8x8xf32> to vector<8x8xf32>
    %178 = vector.shape_cast %177 : vector<8x8xf32> to vector<8x8x1xf32>
    %179 = vector.broadcast %178 : vector<8x8x1xf32> to vector<8x8x8xf32>
    %180 = arith.subf %176, %179 : vector<8x8x8xf32>
    %181 = math.exp %180 : vector<8x8x8xf32>
    %cst_88 = arith.constant dense<0.000000e+00> : vector<8x8xf32>
    %182 = vector.multi_reduction <add>, %181, %cst_88 [2] : vector<8x8x8xf32> to vector<8x8xf32>
    %183 = vector.shape_cast %182 : vector<8x8xf32> to vector<8x8x1xf32>
    %184 = tpu.reciprocal %183 {approx = true} : vector<8x8x1xf32> -> vector<8x8x1xf32>
    %185 = vector.broadcast %184 : vector<8x8x1xf32> to vector<8x8x8xf32>
    %186 = arith.mulf %181, %185 : vector<8x8x8xf32>
    %187 = arith.truncf %186 : vector<8x8x8xf32> to vector<8x8x8xbf16>
    "tpu.trace_start"() <{level = 10 : i32, message = "bqk,bkd->bqd"}> : () -> ()
    %cst_89 = arith.constant dense<0.000000e+00> : vector<8x8x8xf32>
    %188 = tpu.matmul %187, %171, %cst_89 {dimension_numbers = #tpu.dot_dimension_numbers<[2], [1], [1], [2], [0, 0, 0, 1, 1, 2], [0], [0]>} : vector<8x8x8xbf16>, vector<8x8x8xbf16>, vector<8x8x8xf32> -> vector<8x8x8xf32>
    "tpu.trace_stop"() : () -> ()
    %189 = vector.shape_cast %188 : vector<8x8x8xf32> to vector<4x16x8xf32>
    %190 = arith.truncf %189 : vector<4x16x8xf32> to vector<4x16x8xbf16>
    %c1_90 = arith.constant 1 : index
    %c0_91 = arith.constant 0 : index
    %c0_92 = arith.constant 0 : index
    %c0_93 = arith.constant 0 : index
    %191 = vector.load %arg10[%c1_90, %c0_91, %c0_92, %c0_93] : memref<2x4x8x32xbf16, #tpu.memory_space<vmem>>, vector<1x4x8x32xbf16>
    %192 = vector.shape_cast %191 : vector<1x4x8x32xbf16> to vector<4x8x32xbf16>
    "tpu.trace_start"() <{level = 10 : i32, message = "hmd,hdo->hmo"}> : () -> ()
    %cst_94 = arith.constant dense<0.000000e+00> : vector<4x16x32xf32>
    %193 = tpu.matmul %190, %192, %cst_94 {dimension_numbers = #tpu.dot_dimension_numbers<[2], [1], [1], [2], [0, 0, 0, 1, 1, 2], [0], [0]>} : vector<4x16x8xbf16>, vector<4x8x32xbf16>, vector<4x16x32xf32> -> vector<4x16x32xf32>
    "tpu.trace_stop"() : () -> ()
    %194 = vector.extract_strided_slice %193 {offsets = [0, 0, 0], sizes = [1, 16, 32], strides = [1, 1, 1]} : vector<4x16x32xf32> to vector<1x16x32xf32>
    %195 = vector.shape_cast %194 : vector<1x16x32xf32> to vector<16x32xf32>
    %196 = vector.extract_strided_slice %193 {offsets = [1, 0, 0], sizes = [1, 16, 32], strides = [1, 1, 1]} : vector<4x16x32xf32> to vector<1x16x32xf32>
    %197 = vector.shape_cast %196 : vector<1x16x32xf32> to vector<16x32xf32>
    %198 = arith.addf %195, %197 : vector<16x32xf32>
    %199 = vector.extract_strided_slice %193 {offsets = [2, 0, 0], sizes = [1, 16, 32], strides = [1, 1, 1]} : vector<4x16x32xf32> to vector<1x16x32xf32>
    %200 = vector.shape_cast %199 : vector<1x16x32xf32> to vector<16x32xf32>
    %201 = arith.addf %198, %200 : vector<16x32xf32>
    %202 = vector.extract_strided_slice %193 {offsets = [3, 0, 0], sizes = [1, 16, 32], strides = [1, 1, 1]} : vector<4x16x32xf32> to vector<1x16x32xf32>
    %203 = vector.shape_cast %202 : vector<1x16x32xf32> to vector<16x32xf32>
    %204 = arith.addf %201, %203 : vector<16x32xf32>
    %205 = arith.addf %128, %204 : vector<16x32xf32>
    %c1_95 = arith.constant 1 : index
    %c0_96 = arith.constant 0 : index
    %c0_97 = arith.constant 0 : index
    %206 = vector.load %arg6[%c1_95, %c0_96, %c0_97] : memref<2x1x32xf32, #tpu.memory_space<vmem>>, vector<1x1x32xf32>
    %207 = vector.shape_cast %206 : vector<1x1x32xf32> to vector<1x32xf32>
    %208 = arith.mulf %205, %205 : vector<16x32xf32>
    %cst_98 = arith.constant dense<0.000000e+00> : vector<16xf32>
    %209 = vector.multi_reduction <add>, %208, %cst_98 [1] : vector<16x32xf32> to vector<16xf32>
    %210 = vector.shape_cast %209 : vector<16xf32> to vector<16x1xf32>
    %cst_99 = arith.constant 3.200000e+01 : f32
    %211 = vector.broadcast %cst_99 : f32 to vector<16x1xf32>
    %212 = arith.divf %210, %211 : vector<16x1xf32>
    %cst_100 = arith.constant 9.99999997E-7 : f32
    %213 = vector.broadcast %cst_100 : f32 to vector<16x1xf32>
    %214 = arith.addf %212, %213 : vector<16x1xf32>
    %215 = math.rsqrt %214 : vector<16x1xf32>
    %216 = vector.broadcast %215 : vector<16x1xf32> to vector<16x32xf32>
    %217 = arith.mulf %205, %216 : vector<16x32xf32>
    %218 = vector.broadcast %207 : vector<1x32xf32> to vector<16x32xf32>
    %219 = arith.mulf %217, %218 : vector<16x32xf32>
    %220 = arith.truncf %219 : vector<16x32xf32> to vector<16x32xbf16>
    %c1_101 = arith.constant 1 : index
    %c0_102 = arith.constant 0 : index
    %c0_103 = arith.constant 0 : index
    %221 = vector.load %arg11[%c1_101, %c0_102, %c0_103] : memref<2x32x64xbf16, #tpu.memory_space<vmem>>, vector<1x32x64xbf16>
    %222 = vector.shape_cast %221 : vector<1x32x64xbf16> to vector<32x64xbf16>
    %cst_104 = arith.constant dense<0.000000e+00> : vector<16x64xf32>
    %223 = tpu.matmul %220, %222, %cst_104 {dimension_numbers = #tpu.dot_dimension_numbers<[1], [0], [0], [1], [0, 0, 1, 1], [], []>} : vector<16x32xbf16>, vector<32x64xbf16>, vector<16x64xf32> -> vector<16x64xf32>
    %c1_105 = arith.constant 1 : index
    %c0_106 = arith.constant 0 : index
    %c0_107 = arith.constant 0 : index
    %224 = vector.load %arg12[%c1_105, %c0_106, %c0_107] : memref<2x32x64xbf16, #tpu.memory_space<vmem>>, vector<1x32x64xbf16>
    %225 = vector.shape_cast %224 : vector<1x32x64xbf16> to vector<32x64xbf16>
    %cst_108 = arith.constant dense<0.000000e+00> : vector<16x64xf32>
    %226 = tpu.matmul %220, %225, %cst_108 {dimension_numbers = #tpu.dot_dimension_numbers<[1], [0], [0], [1], [0, 0, 1, 1], [], []>} : vector<16x32xbf16>, vector<32x64xbf16>, vector<16x64xf32> -> vector<16x64xf32>
    %227 = arith.negf %223 : vector<16x64xf32>
    %228 = math.exp %227 : vector<16x64xf32>
    %cst_109 = arith.constant 1.000000e+00 : f32
    %229 = vector.broadcast %cst_109 : f32 to vector<16x64xf32>
    %230 = arith.addf %229, %228 : vector<16x64xf32>
    %231 = arith.divf %229, %230 : vector<16x64xf32>
    %232 = arith.mulf %223, %231 : vector<16x64xf32>
    %233 = arith.mulf %232, %226 : vector<16x64xf32>
    %234 = arith.truncf %233 : vector<16x64xf32> to vector<16x64xbf16>
    %c1_110 = arith.constant 1 : index
    %c0_111 = arith.constant 0 : index
    %c0_112 = arith.constant 0 : index
    %235 = vector.load %arg13[%c1_110, %c0_111, %c0_112] : memref<2x64x32xbf16, #tpu.memory_space<vmem>>, vector<1x64x32xbf16>
    %236 = vector.shape_cast %235 : vector<1x64x32xbf16> to vector<64x32xbf16>
    %cst_113 = arith.constant dense<0.000000e+00> : vector<16x32xf32>
    %237 = tpu.matmul %234, %236, %cst_113 {dimension_numbers = #tpu.dot_dimension_numbers<[1], [0], [0], [1], [0, 0, 1, 1], [], []>} : vector<16x64xbf16>, vector<64x32xbf16>, vector<16x32xf32> -> vector<16x32xf32>
    %238 = arith.addf %205, %237 : vector<16x32xf32>
    %c0_114 = arith.constant 0 : index
    %c0_115 = arith.constant 0 : index
    %239 = vector.load %arg14[%c0_114, %c0_115] : memref<1x32xf32, #tpu.memory_space<vmem>>, vector<1x32xf32>
    %240 = arith.mulf %238, %238 : vector<16x32xf32>
    %cst_116 = arith.constant dense<0.000000e+00> : vector<16xf32>
    %241 = vector.multi_reduction <add>, %240, %cst_116 [1] : vector<16x32xf32> to vector<16xf32>
    %242 = vector.shape_cast %241 : vector<16xf32> to vector<16x1xf32>
    %cst_117 = arith.constant 3.200000e+01 : f32
    %243 = vector.broadcast %cst_117 : f32 to vector<16x1xf32>
    %244 = arith.divf %242, %243 : vector<16x1xf32>
    %cst_118 = arith.constant 9.99999997E-7 : f32
    %245 = vector.broadcast %cst_118 : f32 to vector<16x1xf32>
    %246 = arith.addf %244, %245 : vector<16x1xf32>
    %247 = math.rsqrt %246 : vector<16x1xf32>
    %248 = vector.broadcast %247 : vector<16x1xf32> to vector<16x32xf32>
    %249 = arith.mulf %238, %248 : vector<16x32xf32>
    %250 = vector.broadcast %239 : vector<1x32xf32> to vector<16x32xf32>
    %251 = arith.mulf %249, %250 : vector<16x32xf32>
    %c0_119 = arith.constant 0 : index
    %c0_120 = arith.constant 0 : index
    %252 = vector.load %arg15[%c0_119, %c0_120] : memref<16x32xf32, #tpu.memory_space<vmem>>, vector<16x32xf32>
    tpu.vector_store %arg15[%c0_119, %c0_120], %251 {strides = array<i32>} : memref<16x32xf32, #tpu.memory_space<vmem>>, vector<16x32xf32>,
    return
  }
}

</mosaic_0001>

<bundles_post_ra>
// kernel: ava_model_forward.1
= control target key start
LH: loop header
LB: loop body
LE: loop exit
PB: predicated region body
PF: predicated region fallthrough
CT: control target
= control target key end

     0   :  { %v6117_v2 = vmov 0   ;;  %v6118_v11 = vmov 0.0   ;;  %s7498_s0 = inlined_call_operand.vmem [shape: s32[16,1], index: 0, kind: input, shape index: {}]   ;;  %s7499_s1 = inlined_call_operand.vmem [shape: f32[128,32], index: 1, kind: input, shape index: {}]   ;;  %s7500_s2 = inlined_call_operand.vmem [shape: f32[128,8], index: 2, kind: input, shape index: {}]   ;;  %s7501_s3 = inlined_call_operand.vmem [shape: f32[128,8], index: 3, kind: input, shape index: {}]   ;;  %s7502_s4 = inlined_call_operand.vmem [shape: bf16[8,8], index: 4, kind: input, shape index: {}]   ;;  %s7503_s5 = inlined_call_operand.vmem [shape: f32[2,1,32], index: 5, kind: input, shape index: {}]   ;;  %s7504_s6 = inlined_call_operand.vmem [shape: f32[2,1,32], index: 6, kind: input, shape index: {}]   ;;  %s7505_s7 = inlined_call_operand.vmem [shape: bf16[2,4,32,8], index: 7, kind: input, shape index: {}]   ;;  %s7506_s8 = inlined_call_operand.vmem [shape: bf16[2,4,32,8], index: 8, kind: input, shape index: {}]   ;;  %s7507_s9 = inlined_call_operand.vmem [shape: bf16[2,4,32,8], index: 9, kind: input, shape index: {}]   ;;  %s7508_s10 = inlined_call_operand.vmem [shape: bf16[2,4,8,32], index: 10, kind: input, shape index: {}]   ;;  %s7509_s11 = inlined_call_operand.vmem [shape: bf16[2,32,64], index: 11, kind: input, shape index: {}]   ;;  %s7510_s12 = inlined_call_operand.vmem [shape: bf16[2,32,64], index: 12, kind: input, shape index: {}]   ;;  %s7511_s13 = inlined_call_operand.vmem [shape: bf16[2,64,32], index: 13, kind: input, shape index: {}]   ;;  %s7512_s14 = inlined_call_operand.vmem [shape: f32[1,32], index: 14, kind: input, shape index: {}]   ;;  %s7513_s15 = inlined_call_operand.hbm [shape: f32[16,32], index: 15, kind: output, shape index: {}]  }
   0x1   :  { %v52_v0 = vld [vmem:[%s7498_s0] sm:$0xff]  ;;  %5895 = vset.pattern.permute.xlu0 %v6117_v2  ;;  %v67_v3 = vld [vmem:[%s7499_s1 + $0x8] sm:$0xff]  ;;  %v68_v4 = vld [vmem:[%s7499_s1 + $0x10] sm:$0xff]  ;;  %5330 = vmatprep.subr.bf16.mxu1 %v6118_v11 }
   0x2   :  { %v66_v1 = vld [vmem:[%s7499_s1] sm:$0xff]  ;;  %v69_v5 = vld [vmem:[%s7499_s1 + $0x18] sm:$0xff]  ;;  %57 = vperm.xlu0 %5895, %v52_v0   ;;  %v53_v8 = vld [vmem:[%s7498_s0 + $0x8] sm:$0xff] }
   0x3   :  { %v5854_v6 = vpack.c.bf16 %v67_v3, %v66_v1  ;;  %v5858_v7 = vpack.c.bf16 %v69_v5, %v68_v4  ;;  %v70_v9 = vld [vmem:[%s7499_s1 + $0x20] sm:$0xff]  ;;  %v71_v10 = vld [vmem:[%s7499_s1 + $0x28] sm:$0xff]  ;;  %v72_v12 = vld [vmem:[%s7499_s1 + $0x30] sm:$0xff] }
   0x4   :  { %v5862_v13 = vpack.c.bf16 %v71_v10, %v70_v9  ;;  %v73_v14 = vld [vmem:[%s7499_s1 + $0x38] sm:$0xff]  ;;  %v74_v15 = vld [vmem:[%s7499_s1 + $0x40] sm:$0xff]  ;;  %v75_v16 = vld [vmem:[%s7499_s1 + $0x48] sm:$0xff] }
   0x5   :  { %5855 = vmatprep.subr.bf16.mxu0 %v5854_v6  ;;  %v5866_v17 = vpack.c.bf16 %v73_v14, %v72_v12  ;;  %v76_v18 = vld [vmem:[%s7499_s1 + $0x50] sm:$0xff]  ;;  %v77_v19 = vld [vmem:[%s7499_s1 + $0x58] sm:$0xff]  ;;  %v5870_v20 = vpack.c.bf16 %v75_v16, %v74_v15  ;;  %v78_v21 = vld [vmem:[%s7499_s1 + $0x60] sm:$0xff] }
   0x6   :  { %5857 = vmatpush3.bf16.msra.mxu0 %v5854_v6  ;;  %60 = vperm.xlu0 %5895, %v53_v8   ;;  %v79_v22 = vld [vmem:[%s7499_s1 + $0x68] sm:$0xff]  ;;  %v5874_v23 = vpack.c.bf16 %v77_v19, %v76_v18  ;;  %v80_v24 = vld [vmem:[%s7499_s1 + $0x70] sm:$0xff]  ;;  %v81_v25 = vld [vmem:[%s7499_s1 + $0x78] sm:$0xff] }
   0x7   :  { %5859 = vmatprep.subr.bf16.mxu0 %v5858_v7  ;;  %v5878_v26 = vpack.c.bf16 %v79_v22, %v78_v21  ;;  %v5882_v27 = vpack.c.bf16 %v81_v25, %v80_v24 }
   0xa   :  { %5861 = vmatpush3.bf16.msra.mxu0 %v5858_v7 }
   0xb   :  { %5863 = vmatprep.subr.bf16.mxu0 %v5862_v13 }
   0xe   :  { %5865 = vmatpush3.bf16.msra.mxu0 %v5862_v13 }
   0xf   :  { %5867 = vmatprep.subr.bf16.mxu0 %v5866_v17 }
  0x12   :  { %5869 = vmatpush3.bf16.msra.mxu0 %v5866_v17 }
  0x13   :  { %5871 = vmatprep.subr.bf16.mxu0 %v5870_v20 }
  0x16   :  { %5873 = vmatpush3.bf16.msra.mxu0 %v5870_v20 }
  0x17   :  { %5875 = vmatprep.subr.bf16.mxu0 %v5874_v23 }
  0x1a   :  { %5877 = vmatpush3.bf16.msra.mxu0 %v5874_v23 }
  0x1b   :  { %5879 = vmatprep.subr.bf16.mxu0 %v5878_v26 }
  0x1e   :  { %5881 = vmatpush3.bf16.msra.mxu0 %v5878_v26 }
  0x1f   :  { %5883 = vmatprep.subr.bf16.mxu0 %v5882_v27 }
  0x22   :  { %5885 = vmatpush3.bf16.msra.mxu0 %v5882_v27 }
  0x23   :  { %5378 = vmatprep.subr.bf16.mxu0 %v6118_v11 }
  0x24   :  { %20 = vsyncpa [#allocation3], 0  ;;  %v54_v28 = vlaneseq  ;;  %v6119_v31 = vmov 1.0   ;;  %vm197_vm2 = vcmask 261120   ;;  %v5896_v39 = vld [vmem:[%s7505_s7] sm:$0xff]   ;;  %v5898_v41 = vld [vmem:[%s7505_s7 + $0x8] sm:$0xff]  }
  0x25   :  { %v5897_v40 = vld [vmem:[%s7506_s8 + $0x20] sm:$0xff]   ;;  %5331 = vmatpush3.bf16.msra.mxu1 %v5896_v39  ;;  %v5899_v42 = vld [vmem:[%s7506_s8 + $0x28] sm:$0xff]   ;;  %vm6120_vm3 = vmmov 0   ;;  %v5900_v56 = vld [vmem:[%s7505_s7 + $0x10] sm:$0xff]   ;;  %vm942_vm4 = vcmask 1043456   ;;  %vm917_vm5 = vcmask 64512  }
  0x26   :  { %v6261_v29 = vand.u32 127, %v54_v28  ;;  %5332 = vmatprep.subr.bf16.mxu1 %v6118_v11  ;;  %5334 = vmatprep.mubr.msk.bf16.mxu1 %vm6120_vm3, %v6118_v11  ;;  %v4760_v52 = vld [vmem:[%s7503_s5] ss:$0 sm:$0xff]  ;;  %v5902_v59 = vld [vmem:[%s7505_s7 + $0x18] sm:$0xff]   ;;  %v5903_v60 = vld [vmem:[%s7507_s9 + $0x8] sm:$0xff]   ;;  %vm2407_vm7 = vcmask 523264  }
  0x27   :  { %v5901_v57 = vld [vmem:[%s7507_s9] sm:$0xff]   ;;  %v5906_v63 = vld [vmem:[%s7505_s7 + $0x28] sm:$0xff]   ;;  %v5908_v1 = vld [vmem:[%s7505_s7 + $0x30] sm:$0xff]  }
  0x28   :  { %v5904_v61 = vld [vmem:[%s7505_s7 + $0x20] sm:$0xff]   ;;  %v5907_v0 = vld [vmem:[%s7507_s9 + $0x28] sm:$0xff]   ;;  %v5909_v2 = vld [vmem:[%s7505_s7 + $0x38] sm:$0xff]  }
  0x29   :  { %5333 = vmatpush3.bf16.msra.mxu1 %v5898_v41  ;;  %v5905_v62 = vld [vmem:[%s7507_s9 + $0x20] sm:$0xff]   ;;  %v5911_v4 = vld [vmem:[%s7506_s8 + $0x8] sm:$0xff]   ;;  %v5912_v5 = vld [vmem:[%s7506_s8 + $0x10] sm:$0xff]  }
  0x2a   :  { %5338 = vmatprep.subr.bf16.mxu1 %v6118_v11  ;;  %v5910_v3 = vld [vmem:[%s7506_s8] sm:$0xff]   ;;  %v5913_v6 = vld [vmem:[%s7506_s8 + $0x18] sm:$0xff]   ;;  %v5914_v7 = vld [vmem:[%s7506_s8 + $0x30] sm:$0xff]  }
  0x2b   :  { %v5915_v8 = vld [vmem:[%s7506_s8 + $0x38] sm:$0xff]   ;;  %v5916_v9 = vld [vmem:[%s7507_s9 + $0x10] sm:$0xff]   ;;  %v189_v14 = vld [vmem:[%s7502_s4] sm:$0xf] }
  0x2c   :  { %v5917_v10 = vld [vmem:[%s7507_s9 + $0x18] sm:$0xff]   ;;  %v5918_v12 = vld [vmem:[%s7507_s9 + $0x30] sm:$0xff]   ;;  %v6432_v15 = vsel %vm942_vm4, %v189_v14, 0 }
  0x2d   :  { %v5919_v13 = vld [vmem:[%s7507_s9 + $0x38] sm:$0xff]  }
  0x81   :  { %v58_v30 = vpop.permute.xlu0 %57 }
  0x82   :  { %vm62_vm0 = vcmp.eq.s32.totalorder %v6261_v29, %v58_v30 }
  0x83   :  { %5327 = vmatprep.mubr.msk.f32.mxu0 %vm62_vm0, %v6119_v31 }
  0x85   :  { %v61_v32 = vpop.permute.xlu0 %60 }
  0x86   :  { %vm63_vm1 = vcmp.eq.s32.totalorder %v6261_v29, %v61_v32 }
  0x87   :  { %5328 = vmatmul.mubr.msk.f32.vlgmr.msra.gmra.mrb[0].mxu0 %vm63_vm1, %v6119_v31 }
  0x88   :  { %5379 = vmatpush3.bf16.msra.mxu0 %v5897_v40  ;;  %5382 = vmatprep.mubr.msk.bf16.mxu0 %vm6120_vm3, %v6118_v11 }
  0x89   :  { %5380 = vmatprep.subr.bf16.mxu0 %v6118_v11 }
  0x8c   :  { %5381 = vmatpush3.bf16.msra.mxu0 %v5899_v42 }
  0x8d   :  { %5394 = vmatprep.subr.bf16.mxu0 %v6118_v11 }
 0x15a   :  { %v6265_v33 = vpop.f32.mrb[0].mxu0 }
 0x15b   :  { %v6267_v34 = vpop.f32.mrb[1].mxu0  ;;  %v196_v37 = vmul.f32 %v6265_v33, %v6265_v33 }
 0x15c   :  { %v195_v35 = vmul.f32 %v6267_v34, %v6267_v34 }
 0x15d   :  { %v201_v38 = vsel %vm197_vm2, %v196_v37, 0.0 }
 0x15e   :  { %v198_v36 = vsel %vm197_vm2, %v195_v35, 0.0 }
 0x15f   :  { %199 = vadd.xlane.f32.xlu1 %v198_v36 }
 0x163   :  { %202 = vadd.xlane.f32.xlu1 %v201_v38 }
 0x1ec   :  { %v200_v43 = vpop.xlane.xlu1 %199 }
 0x1ed   :  { %v205_v44 = vmul.f32 0.03125, %v200_v43 }
 0x1ef   :  { %v207_v45 = vadd.f32 1e-06, %v205_v44 }
 0x1f0   :  { %v203_v46 = vpop.xlane.xlu1 %202 }
 0x1f1   :  { %5960 = vrsqrt.f32 %v207_v45  ;;  %v206_v47 = vmul.f32 0.03125, %v203_v46 }
 0x1f3   :  { %v208_v48 = vadd.f32 1e-06, %v206_v47 }
 0x1f5   :  { %5962 = vrsqrt.f32 %v208_v48 }
 0x1fb   :  { %v5961_v49 = vpop.eup %5960 }
 0x1fc   :  { %v211_v50 = vmul.f32 %v5961_v49, %v6267_v34 }
 0x1fe   :  { %v219_v54 = vmul.f32 %v4760_v52, %v211_v50 }
 0x1ff   :  { %v5963_v51 = vpop.eup %5962 }
 0x200   :  { %v212_v53 = vmul.f32 %v5963_v51, %v6265_v33 }
 0x202   :  { %v220_v55 = vmul.f32 %v4760_v52, %v212_v53 }
 0x204   :  { %v6306_v58 = vpack.c.bf16 %v220_v55, %v219_v54 }
 0x206   :  { %5335 = vmatmul.mubr.msk.bf16.vlgmr.msra.gmra.mrb[0].mxu1 %vm197_vm2, %v6306_v58  ;;  %5383 = vmatmul.mubr.msk.bf16.vlgmr.msra.gmra.mrb[4].mxu0 %vm197_vm2, %v6306_v58 }
 0x207   :  { %5339 = vmatpush3.bf16.msra.mxu1 %v5900_v56  ;;  %5395 = vmatpush3.bf16.msra.mxu0 %v5901_v57 }
 0x208   :  { %5340 = vmatprep.subr.bf16.mxu1 %v6118_v11  ;;  %5396 = vmatprep.subr.bf16.mxu0 %v6118_v11 }
 0x209   :  { %5342 = vmatprep.mubr.msk.bf16.mxu1 %vm6120_vm3, %v6118_v11  ;;  %5398 = vmatprep.mubr.msk.bf16.mxu0 %vm6120_vm3, %v6118_v11 }
 0x20b   :  { %5341 = vmatpush3.bf16.msra.mxu1 %v5902_v59  ;;  %5397 = vmatpush3.bf16.msra.mxu0 %v5903_v60 }
 0x20c   :  { %5346 = vmatprep.subr.bf16.mxu1 %v6118_v11  ;;  %5410 = vmatprep.subr.bf16.mxu0 %v6118_v11 }
 0x20e   :  { %5343 = vmatmul.mubr.msk.bf16.vlgmr.msra.gmra.mrb[4].mxu1 %vm197_vm2, %v6306_v58  ;;  %5399 = vmatmul.mubr.msk.bf16.vlgmr.msra.gmra.mrb[8].mxu0 %vm197_vm2, %v6306_v58 }
 0x20f   :  { %5347 = vmatpush3.bf16.msra.mxu1 %v5904_v61  ;;  %5411 = vmatpush3.bf16.msra.mxu0 %v5905_v62 }
 0x210   :  { %5348 = vmatprep.subr.bf16.mxu1 %v6118_v11  ;;  %5412 = vmatprep.subr.bf16.mxu0 %v6118_v11 }
 0x211   :  { %5350 = vmatprep.mubr.msk.bf16.mxu1 %vm6120_vm3, %v6118_v11  ;;  %5414 = vmatprep.mubr.msk.bf16.mxu0 %vm6120_vm3, %v6118_v11 }
 0x213   :  { %5349 = vmatpush3.bf16.msra.mxu1 %v5906_v63  ;;  %5413 = vmatpush3.bf16.msra.mxu0 %v5907_v0 }
 0x214   :  { %5354 = vmatprep.subr.bf16.mxu1 %v6118_v11  ;;  %5886 = vmatprep.subr.msk.bf16.mxu0 %vm942_vm4, %v189_v14  ;;  %v175_v14 = vld [vmem:[%s7501_s3 + $0x10] sm:$0xff] }
 0x216   :  { %5351 = vmatmul.mubr.msk.bf16.vlgmr.msra.gmra.mrb[8].mxu1 %vm197_vm2, %v6306_v58  ;;  %5415 = vmatmul.mubr.msk.bf16.vlgmr.msra.gmra.mrb[12].mxu0 %vm197_vm2, %v6306_v58 }
 0x217   :  { %5355 = vmatpush3.bf16.msra.mxu1 %v5908_v1  ;;  %5358 = vmatprep.mubr.msk.bf16.mxu1 %vm6120_vm3, %v6118_v11 }
 0x218   :  { %5356 = vmatprep.subr.bf16.mxu1 %v6118_v11  ;;  %5427 = vmatpush3.bf16.msra.mxu0 %v6432_v15 }
 0x219   :  { %5468 = vmatprep.subr.bf16.mxu0 %v6118_v11 }
 0x21b   :  { %5357 = vmatpush3.bf16.msra.mxu1 %v5909_v2 }
 0x21c   :  { %5362 = vmatprep.subr.bf16.mxu1 %v6118_v11 }
 0x21e   :  { %5359 = vmatmul.mubr.msk.bf16.vlgmr.msra.gmra.mrb[12].mxu1 %vm197_vm2, %v6306_v58 }
 0x21f   :  { %5363 = vmatpush3.bf16.msra.mxu1 %v5910_v3  ;;  %5366 = vmatprep.mubr.msk.bf16.mxu1 %vm6120_vm3, %v6118_v11 }
 0x220   :  { %5364 = vmatprep.subr.bf16.mxu1 %v6118_v11 }
 0x223   :  { %5365 = vmatpush3.bf16.msra.mxu1 %v5911_v4 }
 0x224   :  { %5370 = vmatprep.subr.bf16.mxu1 %v6118_v11 }
 0x226   :  { %5367 = vmatmul.mubr.msk.bf16.vlgmr.msra.gmra.mrb[16].mxu1 %vm197_vm2, %v6306_v58 }
 0x227   :  { %5371 = vmatpush3.bf16.msra.mxu1 %v5912_v5  ;;  %5374 = vmatprep.mubr.msk.bf16.mxu1 %vm6120_vm3, %v6118_v11 }
 0x228   :  { %5372 = vmatprep.subr.bf16.mxu1 %v6118_v11 }
 0x22b   :  { %5373 = vmatpush3.bf16.msra.mxu1 %v5913_v6 }
 0x22c   :  { %5386 = vmatprep.subr.bf16.mxu1 %v6118_v11 }
 0x22e   :  { %5375 = vmatmul.mubr.msk.bf16.vlgmr.msra.gmra.mrb[20].mxu1 %vm197_vm2, %v6306_v58 }
 0x22f   :  { %5387 = vmatpush3.bf16.msra.mxu1 %v5914_v7  ;;  %5390 = vmatprep.mubr.msk.bf16.mxu1 %vm6120_vm3, %v6118_v11 }
 0x230   :  { %5388 = vmatprep.subr.bf16.mxu1 %v6118_v11 }
 0x233   :  { %5389 = vmatpush3.bf16.msra.mxu1 %v5915_v8 }
 0x234   :  { %5402 = vmatprep.subr.bf16.mxu1 %v6118_v11 }
 0x236   :  { %5391 = vmatmul.mubr.msk.bf16.vlgmr.msra.gmra.mrb[24].mxu1 %vm197_vm2, %v6306_v58 }
 0x237   :  { %5403 = vmatpush3.bf16.msra.mxu1 %v5916_v9  ;;  %5406 = vmatprep.mubr.msk.bf16.mxu1 %vm6120_vm3, %v6118_v11 }
 0x238   :  { %5404 = vmatprep.subr.bf16.mxu1 %v6118_v11 }
 0x23b   :  { %5405 = vmatpush3.bf16.msra.mxu1 %v5917_v10 }
 0x23c   :  { %5418 = vmatprep.subr.bf16.mxu1 %v6118_v11 }
 0x23e   :  { %5407 = vmatmul.mubr.msk.bf16.vlgmr.msra.gmra.mrb[28].mxu1 %vm197_vm2, %v6306_v58 }
 0x23f   :  { %5419 = vmatpush3.bf16.msra.mxu1 %v5918_v12  ;;  %5422 = vmatprep.mubr.msk.bf16.mxu1 %vm6120_vm3, %v6118_v11 }
 0x240   :  { %5420 = vmatprep.subr.bf16.mxu1 %v6118_v11 }
 0x243   :  { %5421 = vmatpush3.bf16.msra.mxu1 %v5919_v13  ;;  %v159_v13 = vld [vmem:[%s7500_s2 + $0x10] sm:$0xff] }
 0x244   :  { %5444 = vmatprep.subr.bf16.mxu1 %v6118_v11 }
 0x246   :  { %5423 = vmatmul.mubr.msk.bf16.vlgmr.msra.gmra.mrb[32].mxu1 %vm197_vm2, %v6306_v58 }
 0x247   :  { %5446 = vmatprep.mubr.msk.bf16.mxu1 %vm6120_vm3, %v6118_v11 }
 0x2d9   :  { %v6436_v16 = vpop.f32.mrb[0].mxu1  ;;  %v6438_v17 = vpop.f32.mrb[4].mxu0 }
 0x2da   :  { %v5336_v18 = vpop.f32.mrb[1].mxu1  ;;  %v5384_v19 = vpop.f32.mrb[5].mxu0 }
 0x2db   :  { %v6440_v20 = vpop.f32.mrb[2].mxu1  ;;  %v6442_v21 = vpop.f32.mrb[6].mxu0  ;;  %v157_v18 = vld [vmem:[%s7500_s2] sm:$0xff] }
 0x2dc   :  { %v909_v22 = vpack.c.bf16 %v6440_v20, %v6436_v16  ;;  %v915_v23 = vpack.c.bf16 %v6442_v21, %v6438_v17  ;;  %v5337_v24 = vpop.f32.mrb[3].mxu1  ;;  %v5385_v25 = vpop.f32.mrb[7].mxu0  ;;  %v173_v19 = vld [vmem:[%s7501_s3] sm:$0xff] }
 0x2dd   :  { %v176_v24 = vld [vmem:[%s7501_s3 + $0x18] sm:$0xff]  ;;  %v158_v25 = vld [vmem:[%s7500_s2 + $0x8] sm:$0xff] }
 0x2de   :  { %5428 = vmatprep.mubr.msk.bf16.mxu0 %vm917_vm5, %v909_v22  ;;  %v160_v22 = vld [vmem:[%s7500_s2 + $0x18] sm:$0xff] }
 0x2e1   :  { %v340_v26 = vpop.f32.mrb[4].mxu1  ;;  %v6449_v27 = vpop.f32.mrb[8].mxu0 }
 0x2e2   :  { %v5344_v30 = vpop.f32.mrb[5].mxu1  ;;  %v5400_v31 = vpop.f32.mrb[9].mxu0 }
 0x2e3   :  { %v6451_v32 = vpop.f32.mrb[6].mxu1  ;;  %v6453_v35 = vpop.f32.mrb[10].mxu0  ;;  %v1045_v30 = vmul.f32 %v340_v26, %v159_v13 }
 0x2e4   :  { %v910_v36 = vpack.c.bf16 %v6451_v32, %v340_v26  ;;  %v5345_v37 = vpop.f32.mrb[7].mxu1  ;;  %v5401_v38 = vpop.f32.mrb[11].mxu0 }
 0x2e5   :  { %v174_v37 = vld [vmem:[%s7501_s3 + $0x8] sm:$0xff]  ;;  %v1043_v38 = vmul.f32 %v6436_v16, %v157_v18  ;;  %v163_v16 = vld [vmem:[%s7500_s2 + $0x30] sm:$0xff] }
 0x2e6   :  { %5429 = vmatmul.mubr.msk.bf16.vlgmr.msra.gmra.mrb[16].mxu0 %vm917_vm5, %v910_v36 }
 0x2e9   :  { %v6457_v39 = vpop.f32.mrb[8].mxu1  ;;  %v6459_v40 = vpop.f32.mrb[12].mxu0 }
 0x2ea   :  { %v5352_v41 = vpop.f32.mrb[9].mxu1  ;;  %v5416_v42 = vpop.f32.mrb[13].mxu0 }
 0x2eb   :  { %v6461_v43 = vpop.f32.mrb[10].mxu1  ;;  %v6463_v44 = vpop.f32.mrb[14].mxu0 }
 0x2ec   :  { %v911_v45 = vpack.c.bf16 %v6461_v43, %v6457_v39  ;;  %v5353_v46 = vpop.f32.mrb[11].mxu1  ;;  %v5417_v47 = vpop.f32.mrb[15].mxu0 }
 0x2ee   :  { %5432 = vmatprep.mubr.msk.bf16.mxu0 %vm917_vm5, %v911_v45  ;;  %v1046_v45 = vmul.f32 %v6451_v32, %v160_v22  ;;  %v179_v32 = vld [vmem:[%s7501_s3 + $0x30] sm:$0xff] }
 0x2f1   :  { %v6468_v48 = vpop.f32.mrb[12].mxu1 }
 0x2f2   :  { %v5360_v49 = vpop.f32.mrb[13].mxu1 }
 0x2f3   :  { %v6470_v50 = vpop.f32.mrb[14].mxu1 }
 0x2f4   :  { %v912_v51 = vpack.c.bf16 %v6470_v50, %v6468_v48  ;;  %v5361_v52 = vpop.f32.mrb[15].mxu1 }
 0x2f6   :  { %5433 = vmatmul.mubr.msk.bf16.gmra.mrb[20].mxu0 %vm917_vm5, %v912_v51  ;;  %v1044_v51 = vmul.f32 %v6440_v20, %v158_v25  ;;  %v177_v20 = vld [vmem:[%s7501_s3 + $0x20] sm:$0xff] }
 0x2f9   :  { %v6475_v53 = vpop.f32.mrb[16].mxu1 }
 0x2fa   :  { %v5368_v54 = vpop.f32.mrb[17].mxu1 }
 0x2fb   :  { %v6477_v55 = vpop.f32.mrb[18].mxu1 }
 0x2fc   :  { %v913_v56 = vpack.c.bf16 %v6477_v55, %v6475_v53  ;;  %v5369_v57 = vpop.f32.mrb[19].mxu1 }
 0x2fd   :  { %v161_v57 = vld [vmem:[%s7500_s2 + $0x20] sm:$0xff] }
 0x2fe   :  { %5436 = vmatprep.mubr.msk.bf16.mxu0 %vm917_vm5, %v913_v56 }
 0x301   :  { %v6482_v58 = vpop.f32.mrb[20].mxu1 }
 0x302   :  { %v5376_v59 = vpop.f32.mrb[21].mxu1 }
 0x303   :  { %v6484_v60 = vpop.f32.mrb[22].mxu1  ;;  %v164_v59 = vld [vmem:[%s7500_s2 + $0x38] sm:$0xff] }
 0x304   :  { %v914_v61 = vpack.c.bf16 %v6484_v60, %v6482_v58  ;;  %v5377_v62 = vpop.f32.mrb[23].mxu1 }
 0x305   :  { %v180_v62 = vld [vmem:[%s7501_s3 + $0x38] sm:$0xff] }
 0x306   :  { %5437 = vmatmul.mubr.msk.bf16.gmra.mrb[24].mxu0 %vm917_vm5, %v914_v61 }
 0x307   :  { %5440 = vmatprep.mubr.msk.bf16.mxu0 %vm917_vm5, %v915_v23 }
 0x309   :  { %v6490_v63 = vpop.f32.mrb[24].mxu1 }
 0x30a   :  { %v5392_v0 = vpop.f32.mrb[25].mxu1 }
 0x30b   :  { %v6492_v1 = vpop.f32.mrb[26].mxu1  ;;  %v162_v0 = vld [vmem:[%s7500_s2 + $0x28] sm:$0xff] }
 0x30c   :  { %v916_v2 = vpack.c.bf16 %v6492_v1, %v6490_v63  ;;  %v5393_v3 = vpop.f32.mrb[27].mxu1 }
 0x30e   :  { %5441 = vmatmul.mubr.msk.bf16.gmra.mrb[28].mxu0 %vm917_vm5, %v916_v2  ;;  %v1049_v2 = vmul.f32 %v6468_v48, %v163_v16 }
 0x30f   :  { %5470 = vmatprep.mubr.msk.bf16.mxu0 %vm6120_vm3, %v6118_v11 }
 0x311   :  { %v6499_v4 = vpop.f32.mrb[28].mxu1 }
 0x312   :  { %v5408_v5 = vpop.f32.mrb[29].mxu1 }
 0x313   :  { %v6501_v6 = vpop.f32.mrb[30].mxu1 }
 0x314   :  { %v5409_v7 = vpop.f32.mrb[31].mxu1 }
 0x315   :  { %v178_v7 = vld [vmem:[%s7501_s3 + $0x28] sm:$0xff] }
 0x319   :  { %v6503_v8 = vpop.f32.mrb[32].mxu1 }
 0x31a   :  { %v5424_v9 = vpop.f32.mrb[33].mxu1 }
 0x31b   :  { %v6505_v10 = vpop.f32.mrb[34].mxu1  ;;  %v1047_v9 = vmul.f32 %v6457_v39, %v161_v57  ;;  %v167_v39 = vld [vmem:[%s7500_s2 + $0x50] sm:$0xff] }
 0x31c   :  { %v5425_v12 = vpop.f32.mrb[35].mxu1 }
 0x3b9   :  { %v5430_v23 = vpop.f32.mrb[16].mxu0 }
 0x3ba   :  { %v1061_v31 = vmul.f32 %v5430_v23, %v175_v14  ;;  %v980_v36 = vpop.f32.mrb[17].mxu0  ;;  %v1050_v14 = vmul.f32 %v6470_v50, %v164_v59  ;;  %v1048_v23 = vmul.f32 %v6461_v43, %v162_v0  ;;  %v183_v50 = vld [vmem:[%s7501_s3 + $0x50] sm:$0xff]  ;;  %v181_v43 = vld [vmem:[%s7501_s3 + $0x40] sm:$0xff] }
 0x3bb   :  { %v1059_v41 = vmul.f32 %v980_v36, %v173_v19  ;;  %v5431_v42 = vpop.f32.mrb[18].mxu0  ;;  %v168_v36 = vld [vmem:[%s7500_s2 + $0x58] sm:$0xff] }
 0x3bc   :  { %v6533_v46 = vadd.f32 %v1061_v31, %v1045_v30  ;;  %v1062_v47 = vmul.f32 %v5431_v42, %v176_v24  ;;  %v983_v49 = vpop.f32.mrb[19].mxu0  ;;  %v165_v31 = vld [vmem:[%s7500_s2 + $0x40] sm:$0xff]  ;;  %v1053_v42 = vmul.f32 %v6482_v58, %v167_v39 }
 0x3bd   :  { %v6536_v52 = vadd.f32 %v1059_v41, %v1043_v38  ;;  %v1060_v26 = vmul.f32 %v983_v49, %v174_v37  ;;  %v184_v38 = vld [vmem:[%s7501_s3 + $0x58] sm:$0xff]  ;;  %v166_v41 = vld [vmem:[%s7500_s2 + $0x48] sm:$0xff] }
 0x3be   :  { %v6538_v54 = vadd.f32 %v1062_v47, %v1046_v45  ;;  %v182_v49 = vld [vmem:[%s7501_s3 + $0x48] sm:$0xff] }
 0x3bf   :  { %v6540_v56 = vadd.f32 %v1060_v26, %v1044_v51  ;;  %v1051_v51 = vmul.f32 %v6475_v53, %v165_v31  ;;  %v187_v53 = vld [vmem:[%s7501_s3 + $0x70] sm:$0xff] }
 0x3c9   :  { %v5434_v61 = vpop.f32.mrb[20].mxu0 }
 0x3ca   :  { %v1065_v3 = vmul.f32 %v5434_v61, %v179_v32  ;;  %v996_v5 = vpop.f32.mrb[21].mxu0  ;;  %v1054_v32 = vmul.f32 %v6484_v60, %v168_v36  ;;  %v1052_v61 = vmul.f32 %v6477_v55, %v166_v41  ;;  %v169_v60 = vld [vmem:[%s7500_s2 + $0x60] sm:$0xff] }
 0x3cb   :  { %v1063_v12 = vmul.f32 %v996_v5, %v177_v20  ;;  %v5435_v13 = vpop.f32.mrb[22].mxu0  ;;  %v185_v55 = vld [vmem:[%s7501_s3 + $0x60] sm:$0xff]  ;;  %v1055_v39 = vmul.f32 %v6438_v17, %v169_v60 }
 0x3cc   :  { %v6569_v18 = vadd.f32 %v1065_v3, %v1049_v2  ;;  %v1066_v19 = vmul.f32 %v5435_v13, %v180_v62  ;;  %v999_v22 = vpop.f32.mrb[23].mxu0  ;;  %v171_v2 = vld [vmem:[%s7500_s2 + $0x70] sm:$0xff]  ;;  %v188_v13 = vld [vmem:[%s7501_s3 + $0x78] sm:$0xff] }
 0x3cd   :  { %v6572_v24 = vadd.f32 %v1063_v12, %v1047_v9  ;;  %v1064_v48 = vmul.f32 %v999_v22, %v178_v7  ;;  %v172_v7 = vld [vmem:[%s7500_s2 + $0x78] sm:$0xff] }
 0x3ce   :  { %v6574_v25 = vadd.f32 %v1066_v19, %v1050_v14  ;;  %v170_v14 = vld [vmem:[%s7500_s2 + $0x68] sm:$0xff]  ;;  %v1057_v19 = vmul.f32 %v6490_v63, %v171_v2 }
 0x3cf   :  { %v6576_v30 = vadd.f32 %v1064_v48, %v1048_v23  ;;  %v186_v48 = vld [vmem:[%s7501_s3 + $0x68] sm:$0xff]  ;;  %v1056_v63 = vmul.f32 %v6442_v21, %v170_v14 }
 0x3d1   :  { %v5042_v2 = vpack.c.bf16 %v6576_v30, %v6576_v30  ;;  %v191_v30 = vshrl.u32 %v54_v28, 7 }
 0x3d3   :  { %vm192_vm6 = vcmp.gt.s32.totalorder %v6261_v29, %v191_v30 }
 0x3d4   :  { %v6705_v60 = vsel %vm192_vm6, -1e+30, %v6118_v11 }
 0x3d9   :  { %v5438_v37 = vpop.f32.mrb[24].mxu0 }
 0x3da   :  { %v1069_v45 = vmul.f32 %v5438_v37, %v183_v50  ;;  %v1012_v47 = vpop.f32.mrb[25].mxu0 }
 0x3db   :  { %v1067_v26 = vmul.f32 %v1012_v47, %v181_v43  ;;  %v5439_v16 = vpop.f32.mrb[26].mxu0  ;;  %v1058_v43 = vmul.f32 %v6492_v1, %v172_v7 }
 0x3dc   :  { %v1085_v57 = vadd.f32 %v1069_v45, %v1053_v42  ;;  %v1070_v20 = vmul.f32 %v5439_v16, %v184_v38  ;;  %v1015_v59 = vpop.f32.mrb[27].mxu0 }
 0x3dd   :  { %v1083_v62 = vadd.f32 %v1067_v26, %v1051_v51  ;;  %v1068_v0 = vmul.f32 %v1015_v59, %v182_v49  ;;  %v5037_v49 = vpack.c.bf16 %v6536_v52, %v6536_v52  ;;  %v5038_v52 = vpack.c.bf16 %v6540_v56, %v6540_v56 }
 0x3de   :  { %v6606_v58 = vadd.f32 %v1070_v20, %v1054_v32  ;;  %v5047_v21 = vpack.c.bf16 %v1085_v57, %v1085_v57  ;;  %v5041_v32 = vpack.c.bf16 %v6572_v24, %v6572_v24  ;;  %v5053_v56 = vpack.c.bf16 %v6449_v27, %v6449_v27 }
 0x3df   :  { %v5045_v3 = vpack.c.bf16 %v1083_v62, %v1083_v62  ;;  %v1084_v5 = vadd.f32 %v1068_v0, %v1052_v61  ;;  %v5039_v57 = vpack.c.bf16 %v6533_v46, %v6533_v46  ;;  %v5043_v61 = vpack.c.bf16 %v6569_v18, %v6569_v18 }
 0x3e0   :  { %v1259_v20 = vsel %vm917_vm5, %v5047_v21, 0  ;;  %v5048_v24 = vpack.c.bf16 %v6606_v58, %v6606_v58  ;;  %v1647_v62 = vsel %vm942_vm4, %v5053_v56, 0  ;;  %v5040_v46 = vpack.c.bf16 %v6538_v54, %v6538_v54 }
 0x3e1   :  { %v5442_v9 = vpop.f32.mrb[28].mxu0  ;;  %v1167_v12 = vsel %vm917_vm5, %v5045_v3, 0  ;;  %v5046_v41 = vpack.c.bf16 %v1084_v5, %v1084_v5  ;;  %v5054_v54 = vpack.c.bf16 %v6453_v35, %v6453_v35  ;;  %v5044_v5 = vpack.c.bf16 %v6574_v25, %v6574_v25 }
 0x3e2   :  { %v1073_v22 = vmul.f32 %v5442_v9, %v187_v53  ;;  %v1028_v23 = vpop.f32.mrb[29].mxu0  ;;  %5445 = vmatpush3.bf16.xpose.msra.mxu1 %v1167_v12  ;;  %v1305_v0 = vsel %vm917_vm5, %v5048_v24, 0 }
 0x3e3   :  { %v1071_v50 = vmul.f32 %v1028_v23, %v185_v55  ;;  %v5443_v31 = vpop.f32.mrb[30].mxu0  ;;  %5450 = vmatprep.subr.bf16.mxu1 %v6118_v11  ;;  %v1213_v26 = vsel %vm917_vm5, %v5046_v41, 0  ;;  %v1693_v53 = vsel %vm942_vm4, %v5054_v54, 0 }
 0x3e4   :  { %v1089_v36 = vadd.f32 %v1073_v22, %v1057_v19  ;;  %v1074_v37 = vmul.f32 %v5443_v31, %v188_v13  ;;  %v1031_v38 = vpop.f32.mrb[31].mxu0 }
 0x3e5   :  { %v1087_v42 = vadd.f32 %v1071_v50, %v1055_v39  ;;  %v1072_v45 = vmul.f32 %v1031_v38, %v186_v48 }
 0x3e6   :  { %v1090_v47 = vadd.f32 %v1074_v37, %v1058_v43  ;;  %v5051_v16 = vpack.c.bf16 %v1089_v36, %v1089_v36 }
 0x3e7   :  { %v5049_v51 = vpack.c.bf16 %v1087_v42, %v1087_v42  ;;  %v1088_v17 = vadd.f32 %v1072_v45, %v1056_v63 }
 0x3e8   :  { %v1443_v59 = vsel %vm917_vm5, %v5051_v16, 0  ;;  %v5052_v58 = vpack.c.bf16 %v1090_v47, %v1090_v47 }
 0x3e9   :  { %5447 = vmatmul.mubr.msk.bf16.vlgmr.msra.gmra.mrb[36].mxu1 %vm917_vm5, %v5037_v49  ;;  %v1351_v1 = vsel %vm917_vm5, %v5049_v51, 0  ;;  %v5050_v27 = vpack.c.bf16 %v1088_v17, %v1088_v17 }
 0x3ea   :  { %5451 = vmatpush3.bf16.xpose.msra.mxu1 %v1213_v26  ;;  %5469 = vmatpush3.bf16.xpose.msra.mxu0 %v1351_v1  ;;  %v1489_v3 = vsel %vm917_vm5, %v5052_v58, 0 }
 0x3eb   :  { %5452 = vmatprep.mubr.msk.bf16.mxu1 %vm6120_vm3, %v6118_v11  ;;  %5456 = vmatprep.subr.bf16.mxu1 %v6118_v11  ;;  %v1397_v18 = vsel %vm917_vm5, %v5050_v27, 0 }
 0x3ec   :  { %5480 = vmatprep.subr.bf16.mxu0 %v6118_v11 }
 0x3f1   :  { %5453 = vmatmul.mubr.msk.bf16.vlgmr.msra.gmra.mrb[40].mxu1 %vm917_vm5, %v5038_v52  ;;  %5471 = vmatmul.mubr.msk.bf16.vlgmr.msra.gmra.mrb[32].mxu0 %vm917_vm5, %v5041_v32 }
 0x3f2   :  { %5457 = vmatpush3.bf16.xpose.msra.mxu1 %v1259_v20  ;;  %5481 = vmatpush3.bf16.xpose.msra.mxu0 %v1443_v59 }
 0x3f3   :  { %5458 = vmatprep.mubr.msk.bf16.mxu1 %vm6120_vm3, %v6118_v11  ;;  %5482 = vmatprep.mubr.msk.bf16.mxu0 %vm6120_vm3, %v6118_v11 }
 0x3f4   :  { %5462 = vmatprep.subr.bf16.mxu1 %v6118_v11  ;;  %5492 = vmatprep.subr.bf16.mxu0 %v6118_v11 }
 0x3f9   :  { %5459 = vmatmul.mubr.msk.bf16.vlgmr.msra.gmra.mrb[44].mxu1 %vm917_vm5, %v5039_v57  ;;  %5483 = vmatmul.mubr.msk.bf16.vlgmr.msra.gmra.mrb[36].mxu0 %vm917_vm5, %v5043_v61 }
 0x3fa   :  { %5463 = vmatpush3.bf16.xpose.msra.mxu1 %v1305_v0  ;;  %5493 = vmatpush3.bf16.msra.mxu0 %v1647_v62 }
 0x3fb   :  { %5464 = vmatprep.mubr.msk.bf16.mxu1 %vm6120_vm3, %v6118_v11  ;;  %5474 = vmatprep.subr.bf16.mxu1 %v6118_v11 }
 0x3fc   :  { %5494 = vmatprep.mubr.msk.bf16.mxu0 %vm6120_vm3, %v6118_v11  ;;  %5504 = vmatprep.subr.bf16.mxu0 %v6118_v11 }
 0x401   :  { %5465 = vmatmul.mubr.msk.bf16.vlgmr.msra.gmra.mrb[48].mxu1 %vm917_vm5, %v5040_v46 }
 0x402   :  { %5475 = vmatpush3.bf16.xpose.msra.mxu1 %v1397_v18  ;;  %5476 = vmatprep.mubr.msk.bf16.mxu1 %vm6120_vm3, %v6118_v11 }
 0x403   :  { %5486 = vmatprep.subr.bf16.mxu1 %v6118_v11 }
 0x409   :  { %5477 = vmatmul.mubr.msk.bf16.vlgmr.msra.gmra.mrb[52].mxu1 %vm917_vm5, %v5042_v2 }
 0x40a   :  { %5487 = vmatpush3.bf16.xpose.msra.mxu1 %v1489_v3  ;;  %5488 = vmatprep.mubr.msk.bf16.mxu1 %vm6120_vm3, %v6118_v11 }
 0x40b   :  { %5498 = vmatprep.subr.bf16.mxu1 %v6118_v11 }
 0x411   :  { %5489 = vmatmul.mubr.msk.bf16.vlgmr.msra.gmra.mrb[56].mxu1 %vm917_vm5, %v5044_v5 }
 0x412   :  { %5499 = vmatpush3.bf16.msra.mxu1 %v1693_v53  ;;  %5500 = vmatprep.mubr.msk.bf16.mxu1 %vm6120_vm3, %v6118_v11 }
 0x413   :  { %5510 = vmatprep.subr.bf16.mxu1 %v6118_v11 }
 0x4bc   :  { %v1203_v35 = vpop.f32.mrb[36].mxu1 }
 0x4bd   :  { %v1531_v55 = vmul.f32 0.35355338, %v1203_v35  ;;  %v5448_v25 = vpop.f32.mrb[37].mxu1 }
 0x4be   :  { %v1206_v7 = vpop.f32.mrb[38].mxu1 }
 0x4bf   :  { %v5449_v9 = vpop.f32.mrb[39].mxu1  ;;  %v1539_v12 = vadd.f32 %v1531_v55, %v6705_v60 }
 0x4c1   :  { %v1547_v13 = vsel %vm917_vm5, %v1539_v12, -inf }
 0x4c2   :  { %1548 = vmax.xlane.f32.xlu0 %v1547_v13 }
 0x4c4   :  { %v1249_v14 = vpop.f32.mrb[40].mxu1  ;;  %v1387_v19 = vpop.f32.mrb[32].mxu0 }
 0x4c5   :  { %v1532_v22 = vmul.f32 0.35355338, %v1249_v14  ;;  %v5454_v23 = vpop.f32.mrb[41].mxu1  ;;  %v5472_v28 = vpop.f32.mrb[33].mxu0  ;;  %v1535_v1 = vmul.f32 0.35355338, %v1387_v19 }
 0x4c6   :  { %v1252_v48 = vpop.f32.mrb[42].mxu1  ;;  %v1390_v29 = vpop.f32.mrb[34].mxu0 }
 0x4c7   :  { %v5455_v39 = vpop.f32.mrb[43].mxu1  ;;  %v5473_v50 = vpop.f32.mrb[35].mxu0  ;;  %v1540_v31 = vadd.f32 %v1532_v22, %v6705_v60  ;;  %v1543_v56 = vadd.f32 %v1535_v1, %v6705_v60 }
 0x4c9   :  { %v1550_v43 = vsel %vm917_vm5, %v1540_v31, -inf  ;;  %v1559_v0 = vsel %vm917_vm5, %v1543_v56, -inf }
 0x4ca   :  { %1551 = vmax.xlane.f32.xlu1 %v1550_v43 }
 0x4cc   :  { %v1295_v36 = vpop.f32.mrb[44].mxu1  ;;  %v1479_v37 = vpop.f32.mrb[36].mxu0 }
 0x4cd   :  { %v1533_v38 = vmul.f32 0.35355338, %v1295_v36  ;;  %v5460_v63 = vpop.f32.mrb[45].mxu1  ;;  %v5484_v41 = vpop.f32.mrb[37].mxu0  ;;  %v1537_v57 = vmul.f32 0.35355338, %v1479_v37 }
 0x4ce   :  { %v1298_v42 = vpop.f32.mrb[46].mxu1  ;;  %v1482_v45 = vpop.f32.mrb[38].mxu0 }
 0x4cf   :  { %v5461_v47 = vpop.f32.mrb[47].mxu1  ;;  %v5485_v49 = vpop.f32.mrb[39].mxu0  ;;  %v1541_v51 = vadd.f32 %v1533_v38, %v6705_v60  ;;  %v1545_v2 = vadd.f32 %v1537_v57, %v6705_v60 }
 0x4d1   :  { %v1553_v17 = vsel %vm917_vm5, %v1541_v51, -inf  ;;  %v1565_v53 = vsel %vm917_vm5, %v1545_v2, -inf }
 0x4d2   :  { %1554 = vmax.xlane.f32.xlu1 %v1553_v17 }
 0x4d4   :  { %v1341_v26 = vpop.f32.mrb[48].mxu1 }
 0x4d5   :  { %v1534_v21 = vmul.f32 0.35355338, %v1341_v26  ;;  %v5466_v16 = vpop.f32.mrb[49].mxu1 }
 0x4d6   :  { %v1344_v52 = vpop.f32.mrb[50].mxu1 }
 0x4d7   :  { %v5467_v32 = vpop.f32.mrb[51].mxu1  ;;  %v1542_v20 = vadd.f32 %v1534_v21, %v6705_v60 }
 0x4d9   :  { %v1556_v59 = vsel %vm917_vm5, %v1542_v20, -inf }
 0x4da   :  { %1557 = vmax.xlane.f32.xlu1 %v1556_v59 }
 0x4dc   :  { %v1433_v24 = vpop.f32.mrb[52].mxu1 }
 0x4dd   :  { %v1536_v61 = vmul.f32 0.35355338, %v1433_v24  ;;  %v5478_v62 = vpop.f32.mrb[53].mxu1 }
 0x4de   :  { %1560 = vmax.xlane.f32.xlu1 %v1559_v0  ;;  %v1436_v27 = vpop.f32.mrb[54].mxu1 }
 0x4df   :  { %v5479_v46 = vpop.f32.mrb[55].mxu1  ;;  %v1544_v18 = vadd.f32 %v1536_v61, %v6705_v60 }
 0x4e1   :  { %v1562_v58 = vsel %vm917_vm5, %v1544_v18, -inf }
 0x4e2   :  { %1563 = vmax.xlane.f32.xlu1 %v1562_v58  ;;  %v5055_v58 = vpack.c.bf16 %v6499_v4, %v6499_v4 }
 0x4e4   :  { %v1525_v3 = vpop.f32.mrb[56].mxu1 }
 0x4e5   :  { %v1538_v54 = vmul.f32 0.35355338, %v1525_v3  ;;  %v5490_v5 = vpop.f32.mrb[57].mxu1 }
 0x4e6   :  { %1566 = vmax.xlane.f32.xlu1 %v1565_v53  ;;  %v1528_v30 = vpop.f32.mrb[58].mxu1 }
 0x4e7   :  { %v5491_v35 = vpop.f32.mrb[59].mxu1  ;;  %v1546_v55 = vadd.f32 %v1538_v54, %v6705_v60  ;;  %v1739_v54 = vsel %vm942_vm4, %v5055_v58, 0  ;;  %v5056_v30 = vpack.c.bf16 %v6501_v6, %v6501_v6 }
 0x4e9   :  { %v1568_v25 = vsel %vm917_vm5, %v1546_v55, -inf }
 0x4ea   :  { %1569 = vmax.xlane.f32.xlu1 %v1568_v25 }
 0x54f   :  { %v1549_v7 = vpop.xlane.xlu0 %1548 }
 0x550   :  { %v1571_v9 = vsub.f32 %v1539_v12, %v1549_v7 }
 0x552   :  { %v1579_v13 = vmul.f32 1.442695, %v1571_v9  ;;  %v5057_v9 = vpack.c.bf16 %v6459_v40, %v6459_v40  ;;  %v5058_v40 = vpack.c.bf16 %v6463_v44, %v6463_v44 }
 0x554   :  { %5964 = vpow2.f32 %v1579_v13 }
 0x557   :  { %v1552_v14 = vpop.xlane.xlu1 %1551 }
 0x558   :  { %v1572_v19 = vsub.f32 %v1540_v31, %v1552_v14 }
 0x55a   :  { %v1581_v22 = vmul.f32 1.442695, %v1572_v19  ;;  %v1831_v19 = vsel %vm942_vm4, %v5057_v9, 0 }
 0x55c   :  { %5966 = vpow2.f32 %v1581_v22 }
 0x55e   :  { %v5965_v23 = vpop.eup %5964 }
 0x55f   :  { %v1555_v28 = vpop.xlane.xlu1 %1554  ;;  %v1595_v48 = vsel %vm917_vm5, %v5965_v23, 0.0 }
 0x560   :  { %v1573_v29 = vsub.f32 %v1541_v51, %v1555_v28  ;;  %1596 = vadd.xlane.f32.xlu1 %v1595_v48 }
 0x562   :  { %v1583_v39 = vmul.f32 1.442695, %v1573_v29 }
 0x564   :  { %5968 = vpow2.f32 %v1583_v39 }
 0x566   :  { %v5967_v50 = vpop.eup %5966 }
 0x567   :  { %v1558_v43 = vpop.xlane.xlu1 %1557  ;;  %v1598_v36 = vsel %vm917_vm5, %v5967_v50, 0.0 }
 0x568   :  { %v1574_v37 = vsub.f32 %v1542_v20, %v1558_v43  ;;  %1599 = vadd.xlane.f32.xlu0 %v1598_v36  ;;  %v5059_v43 = vpack.c.bf16 %v6503_v8, %v6503_v8 }
 0x56a   :  { %v1585_v12 = vmul.f32 1.442695, %v1574_v37 }
 0x56b   :  { %v1561_v38 = vpop.xlane.xlu1 %1560 }
 0x56c   :  { %5970 = vpow2.f32 %v1585_v12  ;;  %v1575_v31 = vsub.f32 %v1543_v56, %v1561_v38  ;;  %v1923_v38 = vsel %vm942_vm4, %v5059_v43, 0 }
 0x56e   :  { %v5969_v63 = vpop.eup %5968  ;;  %v1587_v41 = vmul.f32 1.442695, %v1575_v31  ;;  %v5060_v31 = vpack.c.bf16 %v6505_v10, %v6505_v10 }
 0x56f   :  { %v1564_v42 = vpop.xlane.xlu1 %1563  ;;  %v1601_v45 = vsel %vm917_vm5, %v5969_v63, 0.0 }
 0x570   :  { %5972 = vpow2.f32 %v1587_v41  ;;  %v1576_v47 = vsub.f32 %v1544_v18, %v1564_v42  ;;  %1602 = vadd.xlane.f32.xlu1 %v1601_v45  ;;  %v1969_v42 = vsel %vm942_vm4, %v5060_v31, 0 }
 0x572   :  { %v1589_v49 = vmul.f32 1.442695, %v1576_v47 }
 0x573   :  { %v1567_v51 = vpop.xlane.xlu1 %1566 }
 0x574   :  { %5974 = vpow2.f32 %v1589_v49  ;;  %v1577_v17 = vsub.f32 %v1545_v2, %v1567_v51 }
 0x576   :  { %v5971_v26 = vpop.eup %5970  ;;  %v1591_v1 = vmul.f32 1.442695, %v1577_v17  ;;  %v2015_v17 = vld [vmem:[%s7508_s10] sm:$0xf] }
 0x577   :  { %v1570_v21 = vpop.xlane.xlu1 %1569  ;;  %v1604_v16 = vsel %vm917_vm5, %v5971_v26, 0.0 }
 0x578   :  { %5976 = vpow2.f32 %v1591_v1  ;;  %v1578_v52 = vsub.f32 %v1546_v55, %v1570_v21  ;;  %1605 = vadd.xlane.f32.xlu0 %v1604_v16  ;;  %v1785_v55 = vsel %vm942_vm4, %v5056_v30, 0  ;;  %v2016_v1 = vld [vmem:[%s7508_s10 + $0x4] sm:$0xf] }
 0x579   :  { %v2070_v21 = vsel %vm942_vm4, %v2016_v1, 0 }
 0x57a   :  { %v5973_v32 = vpop.eup %5972  ;;  %v1593_v20 = vmul.f32 1.442695, %v1578_v52 }
 0x57b   :  { %v1607_v59 = vsel %vm917_vm5, %v5973_v32, 0.0 }
 0x57c   :  { %5978 = vpow2.f32 %v1593_v20  ;;  %1608 = vadd.xlane.f32.xlu1 %v1607_v59  ;;  %v2017_v59 = vld [vmem:[%s7508_s10 + $0x8] sm:$0xf] }
 0x57e   :  { %v6728_v56 = vpop.eup %5974 }
 0x57f   :  { %v1610_v24 = vsel %vm917_vm5, %v6728_v56, 0.0 }
 0x580   :  { %1611 = vadd.xlane.f32.xlu0 %v1610_v24 }
 0x582   :  { %v6732_v57 = vpop.eup %5976 }
 0x583   :  { %v1613_v61 = vsel %vm917_vm5, %v6732_v57, 0.0 }
 0x584   :  { %1614 = vadd.xlane.f32.xlu1 %v1613_v61  ;;  %v2117_v61 = vsel %vm942_vm4, %v2017_v59, 0 }
 0x586   :  { %v6736_v62 = vpop.eup %5978 }
 0x587   :  { %v1616_v0 = vsel %vm917_vm5, %v6736_v62, 0.0 }
 0x588   :  { %1617 = vadd.xlane.f32.xlu0 %v1616_v0 }
 0x5ed   :  { %v1597_v27 = vpop.xlane.xlu1 %1596 }
 0x5ee   :  { %5980 = vrcp.f32 %v1597_v27 }
 0x5f5   :  { %v1600_v46 = vpop.xlane.xlu0 %1599 }
 0x5f6   :  { %5982 = vrcp.f32 %v1600_v46 }
 0x5f8   :  { %v5981_v18 = vpop.eup %5980 }
 0x5f9   :  { %v1627_v2 = vmul.f32 %v5981_v18, %v5965_v23 }
 0x5fb   :  { %v1635_v3 = vpack.c.bf16 %v1627_v2, %v1627_v2  ;;  %v2018_v2 = vld [vmem:[%s7508_s10 + $0xc] sm:$0xf] }
 0x5fd   :  { %5495 = vmatmul.mubr.msk.bf16.vlgmr.msra.gmra.mrb[40].mxu0 %vm917_vm5, %v1635_v3  ;;  %v1603_v5 = vpop.xlane.xlu1 %1602 }
 0x5fe   :  { %5505 = vmatpush3.bf16.msra.mxu0 %v1739_v54  ;;  %5984 = vrcp.f32 %v1603_v5  ;;  %5506 = vmatprep.mubr.msk.bf16.mxu0 %vm6120_vm3, %v6118_v11 }
 0x5ff   :  { %5516 = vmatprep.subr.bf16.mxu0 %v6118_v11 }
 0x600   :  { %v5983_v53 = vpop.eup %5982 }
 0x601   :  { %v1628_v35 = vmul.f32 %v5983_v53, %v5967_v50  ;;  %v1877_v50 = vsel %vm942_vm4, %v5058_v40, 0  ;;  %v2164_v53 = vsel %vm942_vm4, %v2018_v2, 0 }
 0x603   :  { %v1636_v4 = vpack.c.bf16 %v1628_v35, %v1628_v35 }
 0x605   :  { %5501 = vmatmul.mubr.msk.bf16.vlgmr.msra.gmra.mrb[60].mxu1 %vm917_vm5, %v1636_v4  ;;  %v1606_v25 = vpop.xlane.xlu0 %1605 }
 0x606   :  { %5511 = vmatpush3.bf16.msra.mxu1 %v1785_v55  ;;  %5986 = vrcp.f32 %v1606_v25  ;;  %5512 = vmatprep.mubr.msk.bf16.mxu1 %vm6120_vm3, %v6118_v11 }
 0x607   :  { %5522 = vmatprep.subr.bf16.mxu1 %v6118_v11 }
 0x608   :  { %v5985_v7 = vpop.eup %5984 }
 0x609   :  { %v1629_v13 = vmul.f32 %v5985_v7, %v5969_v63  ;;  %v1609_v6 = vpop.xlane.xlu1 %1608 }
 0x60a   :  { %5988 = vrcp.f32 %v1609_v6 }
 0x60b   :  { %v1637_v14 = vpack.c.bf16 %v1629_v13, %v1629_v13 }
 0x60d   :  { %v1612_v22 = vpop.xlane.xlu0 %1611  ;;  %5507 = vmatmul.mubr.msk.bf16.vlgmr.msra.gmra.mrb[44].mxu0 %vm917_vm5, %v1637_v14 }
 0x60e   :  { %5990 = vrcp.f32 %v1612_v22  ;;  %5517 = vmatpush3.bf16.msra.mxu0 %v1831_v19  ;;  %5518 = vmatprep.mubr.msk.bf16.mxu0 %vm6120_vm3, %v6118_v11 }
 0x60f   :  { %5528 = vmatprep.subr.bf16.mxu0 %v6118_v11 }
 0x610   :  { %v5987_v23 = vpop.eup %5986 }
 0x611   :  { %v1630_v28 = vmul.f32 %v5987_v23, %v5971_v26  ;;  %v1615_v48 = vpop.xlane.xlu1 %1614  ;;  %v2023_v26 = vsel %vm942_vm4, %v2015_v17, 0 }
 0x612   :  { %5992 = vrcp.f32 %v1615_v48 }
 0x613   :  { %v1638_v29 = vpack.c.bf16 %v1630_v28, %v1630_v28 }
 0x614   :  { %v5989_v39 = vpop.eup %5988 }
 0x615   :  { %v1631_v36 = vmul.f32 %v5989_v39, %v5973_v32  ;;  %5513 = vmatmul.mubr.msk.bf16.vlgmr.msra.gmra.mrb[64].mxu1 %vm917_vm5, %v1638_v29  ;;  %v1618_v37 = vpop.xlane.xlu0 %1617 }
 0x616   :  { %5523 = vmatpush3.bf16.msra.mxu1 %v1877_v50  ;;  %5994 = vrcp.f32 %v1618_v37  ;;  %5524 = vmatprep.mubr.msk.bf16.mxu1 %vm6120_vm3, %v6118_v11 }
 0x617   :  { %v1639_v44 = vpack.c.bf16 %v1631_v36, %v1631_v36  ;;  %5534 = vmatprep.subr.bf16.mxu1 %v6118_v11 }
 0x618   :  { %v5991_v12 = vpop.eup %5990 }
 0x619   :  { %v1632_v8 = vmul.f32 %v5991_v12, %v6728_v56  ;;  %5519 = vmatmul.mubr.msk.bf16.vlgmr.msra.gmra.mrb[48].mxu0 %vm917_vm5, %v1639_v44 }
 0x61a   :  { %5529 = vmatpush3.bf16.msra.mxu0 %v1923_v38  ;;  %5530 = vmatprep.mubr.msk.bf16.mxu0 %vm6120_vm3, %v6118_v11 }
 0x61b   :  { %v1640_v63 = vpack.c.bf16 %v1632_v8, %v1632_v8  ;;  %5540 = vmatprep.subr.bf16.mxu0 %v6118_v11 }
 0x61c   :  { %v5993_v41 = vpop.eup %5992 }
 0x61d   :  { %v1633_v45 = vmul.f32 %v5993_v41, %v6732_v57  ;;  %5525 = vmatmul.mubr.msk.bf16.vlgmr.msra.gmra.mrb[68].mxu1 %vm917_vm5, %v1640_v63 }
 0x61e   :  { %5535 = vmatpush3.bf16.msra.mxu1 %v1969_v42  ;;  %5536 = vmatprep.mubr.msk.bf16.mxu1 %vm6120_vm3, %v6118_v11 }
 0x61f   :  { %v1641_v10 = vpack.c.bf16 %v1633_v45, %v1633_v45  ;;  %5546 = vmatprep.subr.bf16.mxu1 %v6118_v11 }
 0x620   :  { %v5995_v47 = vpop.eup %5994 }
 0x621   :  { %v1634_v49 = vmul.f32 %v5995_v47, %v6736_v62  ;;  %5531 = vmatmul.mubr.msk.bf16.vlgmr.msra.gmra.mrb[52].mxu0 %vm917_vm5, %v1641_v10 }
 0x622   :  { %5542 = vmatprep.mubr.msk.bf16.mxu0 %vm6120_vm3, %v6118_v11  ;;  %5541 = vmatpush3.bf16.msra.mxu0 %v2023_v26 }
 0x623   :  { %v1642_v51 = vpack.c.bf16 %v1634_v49, %v1634_v49  ;;  %5552 = vmatprep.subr.bf16.mxu0 %v6118_v11 }
 0x625   :  { %5537 = vmatmul.mubr.msk.bf16.vlgmr.msra.gmra.mrb[72].mxu1 %vm917_vm5, %v1642_v51 }
 0x626   :  { %5548 = vmatprep.mubr.msk.bf16.mxu1 %vm6120_vm3, %v6118_v11  ;;  %5547 = vmatpush3.bf16.msra.mxu1 %v2070_v21 }
 0x627   :  { %5558 = vmatprep.subr.bf16.mxu1 %v6118_v11 }
 0x6d0   :  { %v1683_v16 = vpop.f32.mrb[40].mxu0 }
 0x6d1   :  { %v5496_v52 = vpop.f32.mrb[41].mxu0 }
 0x6d2   :  { %v1686_v32 = vpop.f32.mrb[42].mxu0 }
 0x6d3   :  { %v5497_v20 = vpop.f32.mrb[43].mxu0 }
 0x6d8   :  { %v1729_v56 = vpop.f32.mrb[60].mxu1 }
 0x6d9   :  { %v2011_v24 = vpack.c.bf16 %v1729_v56, %v1683_v16  ;;  %v5502_v57 = vpop.f32.mrb[61].mxu1 }
 0x6da   :  { %v1732_v62 = vpop.f32.mrb[62].mxu1 }
 0x6db   :  { %v5503_v0 = vpop.f32.mrb[63].mxu1  ;;  %5543 = vmatmul.mubr.msk.bf16.vlgmr.msra.gmra.mrb[56].mxu0 %vm917_vm5, %v2011_v24  ;;  %v5922_v62 = vld [vmem:[%s7509_s11 + $0x8] sm:$0xff]  }
 0x6dc   :  { %5553 = vmatpush3.bf16.msra.mxu0 %v2117_v61  ;;  %5554 = vmatprep.mubr.msk.bf16.mxu0 %vm6120_vm3, %v6118_v11  ;;  %v5923_v0 = vld [vmem:[%s7510_s12 + $0x8] sm:$0xff]  }
 0x6dd   :  { %5564 = vmatprep.subr.bf16.mxu0 %v6118_v11 }
 0x6e0   :  { %v1775_v27 = vpop.f32.mrb[44].mxu0 }
 0x6e1   :  { %v5508_v46 = vpop.f32.mrb[45].mxu0 }
 0x6e2   :  { %v1778_v18 = vpop.f32.mrb[46].mxu0 }
 0x6e3   :  { %v5509_v58 = vpop.f32.mrb[47].mxu0 }
 0x6e8   :  { %v1821_v3 = vpop.f32.mrb[64].mxu1 }
 0x6e9   :  { %v2012_v54 = vpack.c.bf16 %v1821_v3, %v1775_v27  ;;  %v5514_v5 = vpop.f32.mrb[65].mxu1 }
 0x6ea   :  { %v1824_v30 = vpop.f32.mrb[66].mxu1 }
 0x6eb   :  { %v5515_v35 = vpop.f32.mrb[67].mxu1  ;;  %5549 = vmatmul.mubr.msk.bf16.vlgmr.msra.gmra.mrb[76].mxu1 %vm917_vm5, %v2012_v54  ;;  %v4849_v30 = vld [vmem:[%s7504_s6] ss:$0 sm:$0xff] }
 0x6ec   :  { %v1867_v4 = vpop.f32.mrb[48].mxu0  ;;  %5559 = vmatpush3.bf16.msra.mxu1 %v2164_v53  ;;  %5560 = vmatprep.mubr.msk.bf16.mxu1 %vm6120_vm3, %v6118_v11 }
 0x6ed   :  { %v5520_v55 = vpop.f32.mrb[49].mxu0  ;;  %5572 = vmatprep.subr.bf16.mxu1 %v6118_v11 }
 0x6ee   :  { %v1870_v25 = vpop.f32.mrb[50].mxu0 }
 0x6ef   :  { %v5521_v7 = vpop.f32.mrb[51].mxu0 }
 0x6f0   :  { %v1913_v9 = vpop.f32.mrb[68].mxu1  ;;  %v5924_v7 = vld [vmem:[%s7511_s13] sm:$0xff]  }
 0x6f1   :  { %v2013_v13 = vpack.c.bf16 %v1913_v9, %v1867_v4  ;;  %v5526_v6 = vpop.f32.mrb[69].mxu1  ;;  %v5925_v9 = vld [vmem:[%s7511_s13 + $0x8] sm:$0xff]  }
 0x6f2   :  { %v1916_v14 = vpop.f32.mrb[70].mxu1  ;;  %v5927_v6 = vld [vmem:[%s7511_s13 + $0x18] sm:$0xff]  }
 0x6f3   :  { %v5527_v19 = vpop.f32.mrb[71].mxu1  ;;  %5555 = vmatmul.mubr.msk.bf16.vlgmr.msra.gmra.mrb[60].mxu0 %vm917_vm5, %v2013_v13  ;;  %v5926_v13 = vld [vmem:[%s7511_s13 + $0x10] sm:$0xff]  }
 0x6f4   :  { %v1959_v22 = vpop.f32.mrb[52].mxu0  ;;  %5568 = vmatprep.mubr.msk.bf16.mxu0 %vm6120_vm3, %v6118_v11 }
 0x6f5   :  { %v5532_v23 = vpop.f32.mrb[53].mxu0 }
 0x6f6   :  { %v1962_v40 = vpop.f32.mrb[54].mxu0 }
 0x6f7   :  { %v5533_v28 = vpop.f32.mrb[55].mxu0 }
 0x6f8   :  { %v2005_v48 = vpop.f32.mrb[72].mxu1 }
 0x6f9   :  { %v2014_v29 = vpack.c.bf16 %v2005_v48, %v1959_v22  ;;  %v5538_v39 = vpop.f32.mrb[73].mxu1 }
 0x6fa   :  { %v2008_v50 = vpop.f32.mrb[74].mxu1 }
 0x6fb   :  { %v5539_v43 = vpop.f32.mrb[75].mxu1  ;;  %5561 = vmatmul.mubr.msk.bf16.vlgmr.msra.gmra.mrb[80].mxu1 %vm917_vm5, %v2014_v29 }
 0x6fc   :  { %5576 = vmatprep.mubr.msk.bf16.mxu1 %vm6120_vm3, %v6118_v11 }
 0x7ae   :  { %v2059_v36 = vpop.f32.mrb[56].mxu0 }
 0x7af   :  { %v5544_v37 = vpop.f32.mrb[57].mxu0 }
 0x7b0   :  { %v2062_v44 = vpop.f32.mrb[58].mxu0 }
 0x7b1   :  { %v5545_v12 = vpop.f32.mrb[59].mxu0 }
 0x7be   :  { %v2106_v38 = vpop.f32.mrb[76].mxu1 }
 0x7bf   :  { %v2207_v31 = vadd.f32 %v2106_v38, %v2059_v36  ;;  %v5550_v8 = vpop.f32.mrb[77].mxu1 }
 0x7c0   :  { %v2109_v63 = vpop.f32.mrb[78].mxu1 }
 0x7c1   :  { %v2208_v41 = vadd.f32 %v2109_v63, %v2062_v44  ;;  %v5551_v42 = vpop.f32.mrb[79].mxu1 }
 0x7c6   :  { %v2153_v45 = vpop.f32.mrb[60].mxu0 }
 0x7c7   :  { %v2209_v10 = vadd.f32 %v2207_v31, %v2153_v45  ;;  %v5556_v47 = vpop.f32.mrb[61].mxu0 }
 0x7c8   :  { %v2156_v49 = vpop.f32.mrb[62].mxu0 }
 0x7c9   :  { %v2210_v51 = vadd.f32 %v2208_v41, %v2156_v49  ;;  %v5557_v17 = vpop.f32.mrb[63].mxu0 }
 0x7ce   :  { %v2200_v26 = vpop.f32.mrb[80].mxu1 }
 0x7cf   :  { %v2211_v1 = vadd.f32 %v2209_v10, %v2200_v26  ;;  %v5562_v21 = vpop.f32.mrb[81].mxu1 }
 0x7d0   :  { %v2203_v16 = vpop.f32.mrb[82].mxu1 }
 0x7d1   :  { %v6824_v52 = vadd.f32 %v2211_v1, %v6267_v34  ;;  %v2212_v32 = vadd.f32 %v2210_v51, %v2203_v16  ;;  %v5563_v20 = vpop.f32.mrb[83].mxu1  ;;  %v5920_v34 = vld [vmem:[%s7509_s11] sm:$0xff]  }
 0x7d2   :  { %5565 = vmatpush3.bf16.msra.mxu0 %v5920_v34  ;;  %v5930_v20 = vld [vmem:[%s7505_s7 + $0x48] sm:$0xff]  }
 0x7d3   :  { %v6827_v59 = vadd.f32 %v6265_v33, %v2212_v32  ;;  %v2216_v56 = vmul.f32 %v6824_v52, %v6824_v52  ;;  %v5921_v33 = vld [vmem:[%s7510_s12] sm:$0xff]   ;;  %5566 = vmatprep.subr.bf16.mxu0 %v6118_v11 }
 0x7d4   :  { %5573 = vmatpush3.bf16.msra.mxu1 %v5921_v33  ;;  %v5929_v32 = vld [vmem:[%s7505_s7 + $0x60] sm:$0xff]  }
 0x7d5   :  { %v2218_v24 = vsel %vm197_vm2, %v2216_v56, 0.0  ;;  %v2217_v57 = vmul.f32 %v6827_v59, %v6827_v59  ;;  %5574 = vmatprep.subr.bf16.mxu1 %v6118_v11 }
 0x7d6   :  { %2219 = vadd.xlane.f32.xlu1 %v2218_v24  ;;  %5567 = vmatpush3.bf16.msra.mxu0 %v5922_v62 }
 0x7d7   :  { %v2221_v61 = vsel %vm197_vm2, %v2217_v57, 0.0  ;;  %5580 = vmatprep.subr.bf16.mxu0 %v6118_v11 }
 0x7d8   :  { %2222 = vadd.xlane.f32.xlu0 %v2221_v61  ;;  %5575 = vmatpush3.bf16.msra.mxu1 %v5923_v0 }
 0x7d9   :  { %5592 = vmatprep.subr.bf16.mxu1 %v6118_v11 }
 0x863   :  { %v2220_v27 = vpop.xlane.xlu1 %2219 }
 0x864   :  { %v2224_v46 = vmul.f32 0.03125, %v2220_v27 }
 0x865   :  { %v2223_v18 = vpop.xlane.xlu0 %2222 }
 0x866   :  { %v2226_v58 = vadd.f32 1e-06, %v2224_v46  ;;  %v2225_v2 = vmul.f32 0.03125, %v2223_v18  ;;  %v4864_v46 = vld [vmem:[%s7503_s5 + $0x1] ss:$0 sm:$0xff] }
 0x868   :  { %5996 = vrsqrt.f32 %v2226_v58  ;;  %v2227_v3 = vadd.f32 1e-06, %v2225_v2 }
 0x86a   :  { %5998 = vrsqrt.f32 %v2227_v3  ;;  %v5932_v3 = vld [vmem:[%s7505_s7 + $0x50] sm:$0xff]  }
 0x872   :  { %v5997_v54 = vpop.eup %5996 }
 0x873   :  { %v2230_v5 = vmul.f32 %v5997_v54, %v6824_v52  ;;  %v5933_v54 = vld [vmem:[%s7506_s8 + $0x40] sm:$0xff]  }
 0x874   :  { %v5999_v53 = vpop.eup %5998 }
 0x875   :  { %v2231_v35 = vmul.f32 %v5999_v53, %v6827_v59  ;;  %v2238_v4 = vmul.f32 %v4849_v30, %v2230_v5  ;;  %v5934_v53 = vld [vmem:[%s7505_s7 + $0x58] sm:$0xff]  }
 0x877   :  { %v2239_v55 = vmul.f32 %v4849_v30, %v2231_v35  ;;  %v5935_v30 = vld [vmem:[%s7506_s8 + $0x48] sm:$0xff]   ;;  %v5936_v35 = vld [vmem:[%s7505_s7 + $0x70] sm:$0xff]  }
 0x879   :  { %v2240_v25 = vpack.c.bf16 %v2239_v55, %v2238_v4  ;;  %v5937_v4 = vld [vmem:[%s7506_s8 + $0x60] sm:$0xff]   ;;  %v5938_v55 = vld [vmem:[%s7505_s7 + $0x78] sm:$0xff]  }
 0x87b   :  { %5569 = vmatmul.mubr.msk.bf16.vlgmr.msra.gmra.mrb[64].mxu0 %vm197_vm2, %v2240_v25  ;;  %5577 = vmatmul.mubr.msk.bf16.vlgmr.msra.gmra.mrb[84].mxu1 %vm197_vm2, %v2240_v25  ;;  %v5939_v25 = vld [vmem:[%s7506_s8 + $0x68] sm:$0xff]  }
 0x87c   :  { %5588 = vmatprep.mubr.msk.bf16.mxu0 %vm6120_vm3, %v6118_v11  ;;  %5596 = vmatprep.mubr.msk.bf16.mxu1 %vm6120_vm3, %v6118_v11 }
 0x87d   :  { %5581 = vmatpush3.bf16.msra.mxu0 %v5924_v7  ;;  %v5940_v7 = vld [vmem:[%s7506_s8 + $0x50] sm:$0xff]  }
 0x87e   :  { %5582 = vmatprep.subr.bf16.mxu0 %v6118_v11 }
 0x881   :  { %5583 = vmatpush3.bf16.msra.mxu0 %v5925_v9  ;;  %v5941_v9 = vld [vmem:[%s7507_s9 + $0x40] sm:$0xff]  }
 0x882   :  { %5584 = vmatprep.subr.bf16.mxu0 %v6118_v11 }
 0x885   :  { %5585 = vmatpush3.bf16.msra.mxu0 %v5926_v13  ;;  %v5942_v13 = vld [vmem:[%s7506_s8 + $0x58] sm:$0xff]  }
 0x886   :  { %5586 = vmatprep.subr.bf16.mxu0 %v6118_v11 }
 0x889   :  { %5587 = vmatpush3.bf16.msra.mxu0 %v5927_v6  ;;  %v5943_v6 = vld [vmem:[%s7507_s9 + $0x48] sm:$0xff]  }
 0x88a   :  { %5608 = vmatprep.subr.bf16.mxu0 %v6118_v11 }
 0x94e   :  { %v2294_v14 = vpop.f32.mrb[64].mxu0  ;;  %v2351_v19 = vpop.f32.mrb[84].mxu1 }
 0x94f   :  { %v4856_v22 = vmul.f32 -1.442695, %v2294_v14  ;;  %v5570_v23 = vpop.f32.mrb[65].mxu0  ;;  %v5578_v40 = vpop.f32.mrb[85].mxu1 }
 0x950   :  { %v2297_v28 = vpop.f32.mrb[66].mxu0  ;;  %v2354_v48 = vpop.f32.mrb[86].mxu1  ;;  %v5947_v23 = vld [vmem:[%s7507_s9 + $0x68] sm:$0xff]   ;;  %v5948_v40 = vld [vmem:[%s7507_s9 + $0x50] sm:$0xff]  }
 0x951   :  { %6000 = vpow2.f32 %v4856_v22  ;;  %v4857_v29 = vmul.f32 -1.442695, %v2297_v28  ;;  %v5571_v39 = vpop.f32.mrb[67].mxu0  ;;  %v5579_v50 = vpop.f32.mrb[87].mxu1  ;;  %v5946_v22 = vld [vmem:[%s7506_s8 + $0x78] sm:$0xff]  }
 0x952   :  { %v5951_v39 = vld [vmem:[%s7507_s9 + $0x78] sm:$0xff]  }
 0x953   :  { %6002 = vpow2.f32 %v4857_v29  ;;  %v5950_v29 = vld [vmem:[%s7507_s9 + $0x70] sm:$0xff]  }
 0x95b   :  { %v6001_v43 = vpop.eup %6000 }
 0x95c   :  { %v2364_v36 = vadd.f32 1.0, %v6001_v43 }
 0x95d   :  { %v6003_v37 = vpop.eup %6002 }
 0x95e   :  { %6004 = vrcp.f32 %v2364_v36  ;;  %v2365_v44 = vadd.f32 1.0, %v6003_v37 }
 0x960   :  { %6006 = vrcp.f32 %v2365_v44 }
 0x968   :  { %v6005_v12 = vpop.eup %6004 }
 0x969   :  { %v2370_v38 = vmul.f32 %v6005_v12, %v2294_v14  ;;  %v5944_v14 = vld [vmem:[%s7506_s8 + $0x70] sm:$0xff]  }
 0x96a   :  { %v6007_v31 = vpop.eup %6006 }
 0x96b   :  { %v2372_v8 = vmul.f32 %v2370_v38, %v2351_v19  ;;  %v2371_v63 = vmul.f32 %v6007_v31, %v2297_v28  ;;  %v5945_v19 = vld [vmem:[%s7507_s9 + $0x60] sm:$0xff]  }
 0x96c   :  { %v6060_v28 = vld [vmem:[%s7502_s4] sm:$0xf] }
 0x96d   :  { %v2373_v41 = vmul.f32 %v2371_v63, %v2354_v48  ;;  %v5949_v48 = vld [vmem:[%s7507_s9 + $0x58] sm:$0xff]  }
 0x96f   :  { %v2374_v42 = vpack.c.bf16 %v2373_v41, %v2372_v8 }
 0x971   :  { %5589 = vmatmul.mubr.msk.bf16.vlgmr.msra.gmra.mrb[68].mxu0 %vm2407_vm7, %v2374_v42 }
 0x972   :  { %5612 = vmatprep.mubr.msk.bf16.mxu0 %vm6120_vm3, %v6118_v11  ;;  %5609 = vmatpush3.bf16.msra.mxu0 %v5929_v32 }
 0x973   :  { %5610 = vmatprep.subr.bf16.mxu0 %v6118_v11 }
 0xa44   :  { %v2445_v45 = vpop.f32.mrb[68].mxu0 }
 0xa45   :  { %v6882_v10 = vadd.f32 %v2445_v45, %v6824_v52  ;;  %v5590_v47 = vpop.f32.mrb[69].mxu0  ;;  %v5928_v52 = vld [vmem:[%s7505_s7 + $0x40] sm:$0xff]  }
 0xa46   :  { %v2448_v49 = vpop.f32.mrb[70].mxu0  ;;  %5593 = vmatpush3.bf16.msra.mxu1 %v5928_v52 }
 0xa47   :  { %v6885_v51 = vadd.f32 %v2448_v49, %v6827_v59  ;;  %v5591_v17 = vpop.f32.mrb[71].mxu0  ;;  %v2456_v26 = vmul.f32 %v6882_v10, %v6882_v10  ;;  %5594 = vmatprep.subr.bf16.mxu1 %v6118_v11  ;;  %v5931_v59 = vld [vmem:[%s7505_s7 + $0x68] sm:$0xff]   ;;  %s6121_s7 = smov [#allocation2]  }
 0xa48   :  { %5611 = vmatpush3.bf16.msra.mxu0 %v5931_v59 }
 0xa49   :  { %v2458_v1 = vsel %vm197_vm2, %v2456_v26, 0.0  ;;  %v2457_v21 = vmul.f32 %v6885_v51, %v6885_v51  ;;  %5624 = vmatprep.subr.bf16.mxu0 %v6118_v11 }
 0xa4a   :  { %2459 = vadd.xlane.f32.xlu1 %v2458_v1  ;;  %5595 = vmatpush3.bf16.msra.mxu1 %v5930_v20 }
 0xa4b   :  { %v2461_v16 = vsel %vm197_vm2, %v2457_v21, 0.0  ;;  %5600 = vmatprep.subr.bf16.mxu1 %v6118_v11 }
 0xa4c   :  { %2462 = vadd.xlane.f32.xlu0 %v2461_v16 }
 0xad7   :  { %v2460_v56 = vpop.xlane.xlu1 %2459 }
 0xad8   :  { %v2464_v24 = vmul.f32 0.03125, %v2460_v56 }
 0xad9   :  { %v2463_v57 = vpop.xlane.xlu0 %2462 }
 0xada   :  { %v2466_v61 = vadd.f32 1e-06, %v2464_v24  ;;  %v2465_v34 = vmul.f32 0.03125, %v2463_v57 }
 0xadc   :  { %6008 = vrsqrt.f32 %v2466_v61  ;;  %v2467_v33 = vadd.f32 1e-06, %v2465_v34 }
 0xade   :  { %6010 = vrsqrt.f32 %v2467_v33 }
 0xae6   :  { %v6009_v62 = vpop.eup %6008 }
 0xae7   :  { %v2470_v0 = vmul.f32 %v6009_v62, %v6882_v10 }
 0xae8   :  { %v6011_v27 = vpop.eup %6010 }
 0xae9   :  { %v2471_v18 = vmul.f32 %v6011_v27, %v6885_v51  ;;  %v2478_v58 = vmul.f32 %v4864_v46, %v2470_v0 }
 0xaeb   :  { %v2479_v2 = vmul.f32 %v4864_v46, %v2471_v18 }
 0xaed   :  { %v6920_v5 = vpack.c.bf16 %v2479_v2, %v2478_v58 }
 0xaef   :  { %5597 = vmatmul.mubr.msk.bf16.vlgmr.msra.gmra.mrb[88].mxu1 %vm197_vm2, %v6920_v5  ;;  %5613 = vmatmul.mubr.msk.bf16.vlgmr.msra.gmra.mrb[72].mxu0 %vm197_vm2, %v6920_v5 }
 0xaf0   :  { %5601 = vmatpush3.bf16.msra.mxu1 %v5932_v3  ;;  %5625 = vmatpush3.bf16.msra.mxu0 %v5933_v54 }
 0xaf1   :  { %5602 = vmatprep.subr.bf16.mxu1 %v6118_v11  ;;  %5626 = vmatprep.subr.bf16.mxu0 %v6118_v11 }
 0xaf2   :  { %5604 = vmatprep.mubr.msk.bf16.mxu1 %vm6120_vm3, %v6118_v11  ;;  %5628 = vmatprep.mubr.msk.bf16.mxu0 %vm6120_vm3, %v6118_v11 }
 0xaf4   :  { %5603 = vmatpush3.bf16.msra.mxu1 %v5934_v53  ;;  %5627 = vmatpush3.bf16.msra.mxu0 %v5935_v30 }
 0xaf5   :  { %5616 = vmatprep.subr.bf16.mxu1 %v6118_v11  ;;  %5640 = vmatprep.subr.bf16.mxu0 %v6118_v11 }
 0xaf7   :  { %5605 = vmatmul.mubr.msk.bf16.vlgmr.msra.gmra.mrb[92].mxu1 %vm197_vm2, %v6920_v5  ;;  %5629 = vmatmul.mubr.msk.bf16.vlgmr.msra.gmra.mrb[76].mxu0 %vm197_vm2, %v6920_v5 }
 0xaf8   :  { %5617 = vmatpush3.bf16.msra.mxu1 %v5936_v35  ;;  %5641 = vmatpush3.bf16.msra.mxu0 %v5937_v4 }
 0xaf9   :  { %5618 = vmatprep.subr.bf16.mxu1 %v6118_v11  ;;  %5642 = vmatprep.subr.bf16.mxu0 %v6118_v11 }
 0xafa   :  { %5620 = vmatprep.mubr.msk.bf16.mxu1 %vm6120_vm3, %v6118_v11  ;;  %5644 = vmatprep.mubr.msk.bf16.mxu0 %vm6120_vm3, %v6118_v11 }
 0xafc   :  { %5619 = vmatpush3.bf16.msra.mxu1 %v5938_v55  ;;  %5643 = vmatpush3.bf16.msra.mxu0 %v5939_v25 }
 0xafd   :  { %5632 = vmatprep.subr.bf16.mxu1 %v6118_v11  ;;  %5656 = vmatprep.subr.bf16.mxu0 %v6118_v11 }
 0xaff   :  { %5621 = vmatmul.mubr.msk.bf16.vlgmr.msra.gmra.mrb[96].mxu1 %vm197_vm2, %v6920_v5  ;;  %5645 = vmatmul.mubr.msk.bf16.vlgmr.msra.gmra.mrb[80].mxu0 %vm197_vm2, %v6920_v5 }
 0xb00   :  { %5633 = vmatpush3.bf16.msra.mxu1 %v5940_v7  ;;  %5657 = vmatpush3.bf16.msra.mxu0 %v5941_v9 }
 0xb01   :  { %5634 = vmatprep.subr.bf16.mxu1 %v6118_v11  ;;  %5658 = vmatprep.subr.bf16.mxu0 %v6118_v11 }
 0xb02   :  { %5636 = vmatprep.mubr.msk.bf16.mxu1 %vm6120_vm3, %v6118_v11  ;;  %5660 = vmatprep.mubr.msk.bf16.mxu0 %vm6120_vm3, %v6118_v11 }
 0xb04   :  { %5635 = vmatpush3.bf16.msra.mxu1 %v5942_v13  ;;  %5659 = vmatpush3.bf16.msra.mxu0 %v5943_v6 }
 0xb05   :  { %5648 = vmatprep.subr.bf16.mxu1 %v6118_v11  ;;  %5672 = vmatprep.subr.bf16.mxu0 %v6118_v11 }
 0xb07   :  { %5637 = vmatmul.mubr.msk.bf16.vlgmr.msra.gmra.mrb[100].mxu1 %vm197_vm2, %v6920_v5  ;;  %5661 = vmatmul.mubr.msk.bf16.vlgmr.msra.gmra.mrb[84].mxu0 %vm197_vm2, %v6920_v5 }
 0xb08   :  { %5649 = vmatpush3.bf16.msra.mxu1 %v5944_v14  ;;  %5673 = vmatpush3.bf16.msra.mxu0 %v5945_v19 }
 0xb09   :  { %5650 = vmatprep.subr.bf16.mxu1 %v6118_v11  ;;  %5674 = vmatprep.subr.bf16.mxu0 %v6118_v11 }
 0xb0a   :  { %5652 = vmatprep.mubr.msk.bf16.mxu1 %vm6120_vm3, %v6118_v11  ;;  %5676 = vmatprep.mubr.msk.bf16.mxu0 %vm6120_vm3, %v6118_v11 }
 0xb0c   :  { %5651 = vmatpush3.bf16.msra.mxu1 %v5946_v22  ;;  %5675 = vmatpush3.bf16.msra.mxu0 %v5947_v23 }
 0xb0d   :  { %5664 = vmatprep.subr.bf16.mxu1 %v6118_v11  ;;  %5887 = vmatprep.subr.msk.bf16.mxu0 %vm942_vm4, %v6060_v28 }
 0xb0f   :  { %5653 = vmatmul.mubr.msk.bf16.vlgmr.msra.gmra.mrb[104].mxu1 %vm197_vm2, %v6920_v5  ;;  %5677 = vmatmul.mubr.msk.bf16.vlgmr.msra.gmra.mrb[88].mxu0 %vm197_vm2, %v6920_v5 }
 0xb10   :  { %5665 = vmatpush3.bf16.msra.mxu1 %v5948_v40  ;;  %5668 = vmatprep.mubr.msk.bf16.mxu1 %vm6120_vm3, %v6118_v11 }
 0xb11   :  { %5666 = vmatprep.subr.bf16.mxu1 %v6118_v11  ;;  %5689 = vmatpush3.bf16.msra.mxu0 %v6432_v15 }
 0xb12   :  { %5730 = vmatprep.subr.bf16.mxu0 %v6118_v11 }
 0xb14   :  { %5667 = vmatpush3.bf16.msra.mxu1 %v5949_v48  ;;  %v6061_v48 = vld [vmem:[%s7500_s2 + $0x10] sm:$0xff] }
 0xb15   :  { %5680 = vmatprep.subr.bf16.mxu1 %v6118_v11 }
 0xb17   :  { %5669 = vmatmul.mubr.msk.bf16.vlgmr.msra.gmra.mrb[108].mxu1 %vm197_vm2, %v6920_v5 }
 0xb18   :  { %5681 = vmatpush3.bf16.msra.mxu1 %v5950_v29  ;;  %5684 = vmatprep.mubr.msk.bf16.mxu1 %vm6120_vm3, %v6118_v11 }
 0xb19   :  { %5682 = vmatprep.subr.bf16.mxu1 %v6118_v11 }
 0xb1c   :  { %5683 = vmatpush3.bf16.msra.mxu1 %v5951_v39  ;;  %v6062_v39 = vld [vmem:[%s7501_s3 + $0x10] sm:$0xff] }
 0xb1d   :  { %5706 = vmatprep.subr.bf16.mxu1 %v6118_v11 }
 0xb1f   :  { %5685 = vmatmul.mubr.msk.bf16.vlgmr.msra.gmra.mrb[112].mxu1 %vm197_vm2, %v6920_v5 }
 0xb20   :  { %5708 = vmatprep.mubr.msk.bf16.mxu1 %vm6120_vm3, %v6118_v11 }
 0xbc2   :  { %v7047_v15 = vpop.f32.mrb[88].mxu1  ;;  %v7049_v50 = vpop.f32.mrb[72].mxu0 }
 0xbc3   :  { %v5598_v43 = vpop.f32.mrb[89].mxu1  ;;  %v5614_v36 = vpop.f32.mrb[73].mxu0 }
 0xbc4   :  { %v7051_v37 = vpop.f32.mrb[90].mxu1  ;;  %v7053_v44 = vpop.f32.mrb[74].mxu0 }
 0xbc5   :  { %v3171_v12 = vpack.c.bf16 %v7051_v37, %v7047_v15  ;;  %v3173_v38 = vpack.c.bf16 %v7053_v44, %v7049_v50  ;;  %v5599_v31 = vpop.f32.mrb[91].mxu1  ;;  %v5615_v8 = vpop.f32.mrb[75].mxu0 }
 0xbc6   :  { %v6064_v31 = vld [vmem:[%s7501_s3] sm:$0xff] }
 0xbc7   :  { %5690 = vmatprep.mubr.msk.bf16.mxu0 %vm917_vm5, %v3171_v12  ;;  %v6063_v12 = vld [vmem:[%s7500_s2] sm:$0xff] }
 0xbca   :  { %v2600_v63 = vpop.f32.mrb[92].mxu1  ;;  %v7060_v41 = vpop.f32.mrb[76].mxu0 }
 0xbcb   :  { %v5606_v42 = vpop.f32.mrb[93].mxu1  ;;  %v5630_v45 = vpop.f32.mrb[77].mxu0  ;;  %v3302_v29 = vmul.f32 %v6061_v48, %v2600_v63 }
 0xbcc   :  { %v2603_v47 = vpop.f32.mrb[94].mxu1  ;;  %v7062_v49 = vpop.f32.mrb[78].mxu0 }
 0xbcd   :  { %v3172_v17 = vpack.c.bf16 %v2603_v47, %v2600_v63  ;;  %v3175_v26 = vpack.c.bf16 %v7062_v49, %v7060_v41  ;;  %v5607_v1 = vpop.f32.mrb[95].mxu1  ;;  %v5631_v21 = vpop.f32.mrb[79].mxu0  ;;  %v6065_v63 = vld [vmem:[%s7500_s2 + $0x18] sm:$0xff] }
 0xbce   :  { %v3303_v45 = vmul.f32 %v6065_v63, %v2603_v47  ;;  %v6068_v47 = vld [vmem:[%s7501_s3 + $0x8] sm:$0xff] }
 0xbcf   :  { %5691 = vmatmul.mubr.msk.bf16.vlgmr.msra.gmra.mrb[92].mxu0 %vm917_vm5, %v3172_v17 }
 0xbd0   :  { %5694 = vmatprep.mubr.msk.bf16.mxu0 %vm917_vm5, %v3173_v38  ;;  %v3300_v38 = vmul.f32 %v6063_v12, %v7047_v15  ;;  %v6067_v15 = vld [vmem:[%s7500_s2 + $0x8] sm:$0xff]  ;;  %v6077_v12 = vld [vmem:[%s7500_s2 + $0x50] sm:$0xff] }
 0xbd2   :  { %v7068_v16 = vpop.f32.mrb[96].mxu1  ;;  %v7070_v52 = vpop.f32.mrb[80].mxu0 }
 0xbd3   :  { %v5622_v32 = vpop.f32.mrb[97].mxu1  ;;  %v5646_v20 = vpop.f32.mrb[81].mxu0 }
 0xbd4   :  { %v7072_v59 = vpop.f32.mrb[98].mxu1  ;;  %v7074_v56 = vpop.f32.mrb[82].mxu0  ;;  %v3301_v32 = vmul.f32 %v6067_v15, %v7051_v37  ;;  %v6070_v37 = vld [vmem:[%s7501_s3 + $0x30] sm:$0xff] }
 0xbd5   :  { %v3174_v24 = vpack.c.bf16 %v7072_v59, %v7068_v16  ;;  %v3177_v57 = vpack.c.bf16 %v7074_v56, %v7070_v52  ;;  %v5623_v61 = vpop.f32.mrb[99].mxu1  ;;  %v5647_v34 = vpop.f32.mrb[83].mxu0 }
 0xbd7   :  { %5695 = vmatmul.mubr.msk.bf16.gmra.mrb[96].mxu0 %vm917_vm5, %v3174_v24 }
 0xbd8   :  { %5698 = vmatprep.mubr.msk.bf16.mxu0 %vm917_vm5, %v3175_v26  ;;  %v6066_v26 = vld [vmem:[%s7501_s3 + $0x18] sm:$0xff] }
 0xbda   :  { %v7082_v33 = vpop.f32.mrb[100].mxu1  ;;  %v7084_v62 = vpop.f32.mrb[84].mxu0 }
 0xbdb   :  { %v5638_v0 = vpop.f32.mrb[101].mxu1  ;;  %v5662_v27 = vpop.f32.mrb[85].mxu0 }
 0xbdc   :  { %v7086_v46 = vpop.f32.mrb[102].mxu1  ;;  %v7088_v18 = vpop.f32.mrb[86].mxu0  ;;  %v6069_v0 = vld [vmem:[%s7500_s2 + $0x30] sm:$0xff] }
 0xbdd   :  { %v3176_v58 = vpack.c.bf16 %v7086_v46, %v7082_v33  ;;  %v5639_v2 = vpop.f32.mrb[103].mxu1  ;;  %v5663_v3 = vpop.f32.mrb[87].mxu0  ;;  %v3306_v27 = vmul.f32 %v6069_v0, %v7068_v16  ;;  %v6073_v16 = vld [vmem:[%s7500_s2 + $0x38] sm:$0xff] }
 0xbde   :  { %v6071_v3 = vld [vmem:[%s7500_s2 + $0x20] sm:$0xff] }
 0xbdf   :  { %5699 = vmatmul.mubr.msk.bf16.gmra.mrb[100].mxu0 %vm917_vm5, %v3176_v58 }
 0xbe0   :  { %5702 = vmatprep.mubr.msk.bf16.mxu0 %vm917_vm5, %v3177_v57 }
 0xbe2   :  { %v7094_v54 = vpop.f32.mrb[104].mxu1  ;;  %v7096_v5 = vpop.f32.mrb[88].mxu0 }
 0xbe3   :  { %v5654_v53 = vpop.f32.mrb[105].mxu1  ;;  %v5678_v30 = vpop.f32.mrb[89].mxu0 }
 0xbe4   :  { %v7098_v35 = vpop.f32.mrb[106].mxu1  ;;  %v7100_v4 = vpop.f32.mrb[90].mxu0  ;;  %v3304_v53 = vmul.f32 %v6071_v3, %v7049_v50  ;;  %v6072_v30 = vld [vmem:[%s7501_s3 + $0x20] sm:$0xff] }
 0xbe5   :  { %v3178_v55 = vpack.c.bf16 %v7098_v35, %v7094_v54  ;;  %v5655_v25 = vpop.f32.mrb[107].mxu1  ;;  %v5679_v7 = vpop.f32.mrb[91].mxu0 }
 0xbe6   :  { %v3307_v7 = vmul.f32 %v6073_v16, %v7072_v59  ;;  %v6076_v59 = vld [vmem:[%s7501_s3 + $0x28] sm:$0xff] }
 0xbe7   :  { %5703 = vmatmul.mubr.msk.bf16.gmra.mrb[104].mxu0 %vm917_vm5, %v3178_v55 }
 0xbe8   :  { %5732 = vmatprep.mubr.msk.bf16.mxu0 %vm6120_vm3, %v6118_v11 }
 0xbea   :  { %v7107_v9 = vpop.f32.mrb[108].mxu1 }
 0xbeb   :  { %v5670_v13 = vpop.f32.mrb[109].mxu1 }
 0xbec   :  { %v7109_v6 = vpop.f32.mrb[110].mxu1 }
 0xbed   :  { %v5671_v14 = vpop.f32.mrb[111].mxu1 }
 0xbee   :  { %v6074_v14 = vld [vmem:[%s7501_s3 + $0x38] sm:$0xff] }
 0xbf2   :  { %v7111_v19 = vpop.f32.mrb[112].mxu1 }
 0xbf3   :  { %v5686_v22 = vpop.f32.mrb[113].mxu1 }
 0xbf4   :  { %v7113_v23 = vpop.f32.mrb[114].mxu1 }
 0xbf5   :  { %v5687_v40 = vpop.f32.mrb[115].mxu1 }
 0xbf6   :  { %v6075_v40 = vld [vmem:[%s7500_s2 + $0x28] sm:$0xff] }
 0xca2   :  { %v5692_v28 = vpop.f32.mrb[92].mxu0 }
 0xca3   :  { %v3318_v43 = vmul.f32 %v6062_v39, %v5692_v28  ;;  %v3237_v36 = vpop.f32.mrb[93].mxu0  ;;  %v3305_v28 = vmul.f32 %v6075_v40, %v7053_v44  ;;  %v6078_v44 = vld [vmem:[%s7501_s3 + $0x50] sm:$0xff] }
 0xca4   :  { %v3316_v8 = vmul.f32 %v6064_v31, %v3237_v36  ;;  %v5693_v42 = vpop.f32.mrb[94].mxu0 }
 0xca5   :  { %v7131_v17 = vadd.f32 %v3318_v43, %v3302_v29  ;;  %v3319_v1 = vmul.f32 %v6066_v26, %v5693_v42  ;;  %v3240_v21 = vpop.f32.mrb[95].mxu0  ;;  %v6079_v42 = vld [vmem:[%s7500_s2 + $0x40] sm:$0xff] }
 0xca6   :  { %v7140_v20 = vadd.f32 %v3316_v8, %v3300_v38  ;;  %v3317_v24 = vmul.f32 %v6068_v47, %v3240_v21  ;;  %v3310_v38 = vmul.f32 %v6077_v12, %v7082_v33  ;;  %v3308_v63 = vmul.f32 %v6079_v42, %v7060_v41  ;;  %v6081_v33 = vld [vmem:[%s7500_s2 + $0x58] sm:$0xff]  ;;  %v6083_v41 = vld [vmem:[%s7500_s2 + $0x48] sm:$0xff] }
 0xca7   :  { %v7145_v57 = vadd.f32 %v3319_v1, %v3303_v45  ;;  %v6080_v45 = vld [vmem:[%s7501_s3 + $0x40] sm:$0xff]  ;;  %v3311_v21 = vmul.f32 %v6081_v33, %v7086_v46  ;;  %v6091_v12 = vld [vmem:[%s7500_s2 + $0x68] sm:$0xff] }
 0xca8   :  { %v7147_v61 = vadd.f32 %v3317_v24, %v3301_v32  ;;  %v6082_v32 = vld [vmem:[%s7501_s3 + $0x58] sm:$0xff] }
 0xcaa   :  { %v5696_v34 = vpop.f32.mrb[96].mxu0 }
 0xcab   :  { %v3322_v58 = vmul.f32 %v6070_v37, %v5696_v34  ;;  %v3253_v2 = vpop.f32.mrb[97].mxu0  ;;  %v3309_v34 = vmul.f32 %v6083_v41, %v7062_v49  ;;  %v6086_v49 = vld [vmem:[%s7501_s3 + $0x70] sm:$0xff] }
 0xcac   :  { %v3320_v55 = vmul.f32 %v6072_v30, %v3253_v2  ;;  %v5697_v25 = vpop.f32.mrb[98].mxu0  ;;  %v6085_v30 = vld [vmem:[%s7500_s2 + $0x70] sm:$0xff] }
 0xcad   :  { %v7167_v13 = vadd.f32 %v3322_v58, %v3306_v27  ;;  %v3323_v22 = vmul.f32 %v6074_v14, %v5697_v25  ;;  %v3256_v50 = vpop.f32.mrb[99].mxu0  ;;  %v6084_v27 = vld [vmem:[%s7501_s3 + $0x48] sm:$0xff] }
 0xcae   :  { %v7176_v48 = vadd.f32 %v3320_v55, %v3304_v53  ;;  %v3321_v29 = vmul.f32 %v6076_v59, %v3256_v50  ;;  %v3314_v55 = vmul.f32 %v6085_v30, %v7094_v54  ;;  %v6089_v54 = vld [vmem:[%s7500_s2 + $0x78] sm:$0xff] }
 0xcaf   :  { %v7181_v39 = vadd.f32 %v3323_v22, %v3307_v7  ;;  %v6087_v7 = vld [vmem:[%s7500_s2 + $0x60] sm:$0xff]  ;;  %v5067_v41 = vpack.c.bf16 %v7167_v13, %v7167_v13  ;;  %s4747_s2 = sshll.u32 %s6121_s7, 4  ;;  %s4748_s2 = int_to_ptr.vmem [resolvable:$true] %s4747_s2 }
 0xcb0   :  { %v7183_v43 = vadd.f32 %v3321_v29, %v3305_v28  ;;  %v3312_v14 = vmul.f32 %v6087_v7, %v7070_v52  ;;  %v6088_v22 = vld [vmem:[%s7501_s3 + $0x60] sm:$0xff]  ;;  %v3315_v28 = vmul.f32 %v6089_v54, %v7098_v35  ;;  %v6090_v29 = vld [vmem:[%s7501_s3 + $0x78] sm:$0xff]  ;;  %p6098_p1 = scmp.lt.s32.totalorder %s4748_s2, %s4748_s2 }
 0xcb2   :  { %v5700_v36 = vpop.f32.mrb[100].mxu0 }
 0xcb3   :  { %v3326_v31 = vmul.f32 %v6078_v44, %v5700_v36  ;;  %v3269_v8 = vpop.f32.mrb[101].mxu0 }
 0xcb4   :  { %v3324_v26 = vmul.f32 %v6080_v45, %v3269_v8  ;;  %v5701_v1 = vpop.f32.mrb[102].mxu0  ;;  %v6092_v8 = vld [vmem:[%s7501_s3 + $0x68] sm:$0xff]  ;;  %s6093_s3 = scalar_lea.vmem %s4748_s2, 256 }
 0xcb5   :  { %v3342_v15 = vadd.f32 %v3326_v31, %v3310_v38  ;;  %v3327_v47 = vmul.f32 %v6082_v32, %v5701_v1  ;;  %v3272_v24 = vpop.f32.mrb[103].mxu0  ;;  %v3313_v38 = vmul.f32 %v6091_v12, %v7074_v56  ;;  %v5065_v32 = vpack.c.bf16 %v7176_v48, %v7176_v48  ;;  %p6094_p0 = scmp.ne.s32.totalorder %s4748_s2, %s6093_s3  ;;  %p6099_p2 = scmp.lt.s32.totalorder %s6093_s3, %s6093_s3 }
 0xcb6   :  { %v3340_v0 = vadd.f32 %v3324_v26, %v3308_v63  ;;  %v3325_v37 = vmul.f32 %v6084_v27, %v3272_v24  ;;  %v5061_v63 = vpack.c.bf16 %v7140_v20, %v7140_v20  ;;  %v5062_v20 = vpack.c.bf16 %v7147_v61, %v7147_v61 }
 0xcb7   :  { %v7213_v46 = vadd.f32 %v3327_v47, %v3311_v21  ;;  %v5071_v56 = vpack.c.bf16 %v3342_v15, %v3342_v15  ;;  %v5077_v61 = vpack.c.bf16 %v7084_v62, %v7084_v62  ;;  %v5063_v15 = vpack.c.bf16 %v7131_v17, %v7131_v17  ;;  %p6100_p3 = por %p6099_p2, %p6098_p1 }
 0xcb8   :  { %v5069_v58 = vpack.c.bf16 %v3340_v0, %v3340_v0  ;;  %v3341_v2 = vadd.f32 %v3325_v37, %v3309_v34  ;;  %v5064_v17 = vpack.c.bf16 %v7145_v57, %v7145_v57  ;;  %v5066_v37 = vpack.c.bf16 %v7183_v43, %v7183_v43 }
 0xcb9   :  { %v3516_v47 = vsel %vm917_vm5, %v5071_v56, 0  ;;  %v5072_v48 = vpack.c.bf16 %v7213_v46, %v7213_v46  ;;  %v3904_v34 = vsel %vm942_vm4, %v5077_v61, 0  ;;  %v5078_v57 = vpack.c.bf16 %v7088_v18, %v7088_v18  ;;  %p6101_p4 = pnand %p6100_p3, %p6094_p0 }
 0xcba   :  { %v5704_v3 = vpop.f32.mrb[104].mxu0  ;;  %v3424_v53 = vsel %vm917_vm5, %v5069_v58, 0  ;;  %v5070_v44 = vpack.c.bf16 %v3341_v2, %v3341_v2  ;;  %v5068_v58 = vpack.c.bf16 %v7181_v39, %v7181_v39 }
 0xcbb   :  { %v3330_v25 = vmul.f32 %v6086_v49, %v5704_v3  ;;  %v3285_v16 = vpop.f32.mrb[105].mxu0  ;;  %5707 = vmatpush3.bf16.xpose.msra.mxu1 %v3424_v53  ;;  %v3562_v0 = vsel %vm917_vm5, %v5072_v48, 0  ;;  %v3950_v2 = vsel %vm942_vm4, %v5078_v57, 0 }
 0xcbc   :  { %v3328_v50 = vmul.f32 %v6088_v22, %v3285_v16  ;;  %v5705_v40 = vpop.f32.mrb[106].mxu0  ;;  %5712 = vmatprep.subr.bf16.mxu1 %v6118_v11  ;;  %v3470_v1 = vsel %vm917_vm5, %v5070_v44, 0 }
 0xcbd   :  { %v3346_v59 = vadd.f32 %v3330_v25, %v3314_v55  ;;  %v3331_v52 = vmul.f32 %v6090_v29, %v5705_v40  ;;  %v3288_v36 = vpop.f32.mrb[107].mxu0 }
 0xcbe   :  { %v3344_v31 = vadd.f32 %v3328_v50, %v3312_v14  ;;  %v3329_v35 = vmul.f32 %v6092_v8, %v3288_v36 }
 0xcbf   :  { %v3347_v42 = vadd.f32 %v3331_v52, %v3315_v28  ;;  %v5075_v21 = vpack.c.bf16 %v3346_v59, %v3346_v59 }
 0xcc0   :  { %v5073_v45 = vpack.c.bf16 %v3344_v31, %v3344_v31  ;;  %v3345_v26 = vadd.f32 %v3329_v35, %v3313_v38 }
 0xcc1   :  { %v3700_v24 = vsel %vm917_vm5, %v5075_v21, 0  ;;  %v5076_v27 = vpack.c.bf16 %v3347_v42, %v3347_v42 }
 0xcc2   :  { %5709 = vmatmul.mubr.msk.bf16.vlgmr.msra.gmra.mrb[116].mxu1 %vm917_vm5, %v5061_v63  ;;  %v3608_v33 = vsel %vm917_vm5, %v5073_v45, 0  ;;  %v5074_v62 = vpack.c.bf16 %v3345_v26, %v3345_v26 }
 0xcc3   :  { %5713 = vmatpush3.bf16.xpose.msra.mxu1 %v3470_v1  ;;  %5731 = vmatpush3.bf16.xpose.msra.mxu0 %v3608_v33  ;;  %v3746_v46 = vsel %vm917_vm5, %v5076_v27, 0 }
 0xcc4   :  { %5714 = vmatprep.mubr.msk.bf16.mxu1 %vm6120_vm3, %v6118_v11  ;;  %5718 = vmatprep.subr.bf16.mxu1 %v6118_v11  ;;  %v3654_v13 = vsel %vm917_vm5, %v5074_v62, 0 }
 0xcc5   :  { %5742 = vmatprep.subr.bf16.mxu0 %v6118_v11 }
 0xcca   :  { %5715 = vmatmul.mubr.msk.bf16.vlgmr.msra.gmra.mrb[120].mxu1 %vm917_vm5, %v5062_v20  ;;  %5733 = vmatmul.mubr.msk.bf16.vlgmr.msra.gmra.mrb[108].mxu0 %vm917_vm5, %v5065_v32 }
 0xccb   :  { %5719 = vmatpush3.bf16.xpose.msra.mxu1 %v3516_v47  ;;  %5743 = vmatpush3.bf16.xpose.msra.mxu0 %v3700_v24 }
 0xccc   :  { %5720 = vmatprep.mubr.msk.bf16.mxu1 %vm6120_vm3, %v6118_v11  ;;  %5744 = vmatprep.mubr.msk.bf16.mxu0 %vm6120_vm3, %v6118_v11 }
 0xccd   :  { %5724 = vmatprep.subr.bf16.mxu1 %v6118_v11  ;;  %5754 = vmatprep.subr.bf16.mxu0 %v6118_v11 }
 0xcd2   :  { %5721 = vmatmul.mubr.msk.bf16.vlgmr.msra.gmra.mrb[124].mxu1 %vm917_vm5, %v5063_v15  ;;  %5745 = vmatmul.mubr.msk.bf16.vlgmr.msra.gmra.mrb[112].mxu0 %vm917_vm5, %v5067_v41 }
 0xcd3   :  { %5725 = vmatpush3.bf16.xpose.msra.mxu1 %v3562_v0  ;;  %5755 = vmatpush3.bf16.msra.mxu0 %v3904_v34 }
 0xcd4   :  { %5726 = vmatprep.mubr.msk.bf16.mxu1 %vm6120_vm3, %v6118_v11  ;;  %5736 = vmatprep.subr.bf16.mxu1 %v6118_v11 }
 0xcd5   :  { %5756 = vmatprep.mubr.msk.bf16.mxu0 %vm6120_vm3, %v6118_v11  ;;  %5766 = vmatprep.subr.bf16.mxu0 %v6118_v11 }
 0xcda   :  { %5727 = vmatmul.mubr.msk.bf16.vlgmr.msra.gmra.mrb[128].mxu1 %vm917_vm5, %v5064_v17 }
 0xcdb   :  { %5737 = vmatpush3.bf16.xpose.msra.mxu1 %v3654_v13  ;;  %5738 = vmatprep.mubr.msk.bf16.mxu1 %vm6120_vm3, %v6118_v11 }
 0xcdc   :  { %5748 = vmatprep.subr.bf16.mxu1 %v6118_v11 }
 0xce2   :  { %5739 = vmatmul.mubr.msk.bf16.vlgmr.msra.gmra.mrb[132].mxu1 %vm917_vm5, %v5066_v37 }
 0xce3   :  { %5749 = vmatpush3.bf16.xpose.msra.mxu1 %v3746_v46  ;;  %5750 = vmatprep.mubr.msk.bf16.mxu1 %vm6120_vm3, %v6118_v11 }
 0xce4   :  { %5760 = vmatprep.subr.bf16.mxu1 %v6118_v11 }
 0xcea   :  { %5751 = vmatmul.mubr.msk.bf16.vlgmr.msra.gmra.mrb[136].mxu1 %vm917_vm5, %v5068_v58 }
 0xceb   :  { %5761 = vmatpush3.bf16.msra.mxu1 %v3950_v2  ;;  %5762 = vmatprep.mubr.msk.bf16.mxu1 %vm6120_vm3, %v6118_v11 }
 0xcec   :  { %5772 = vmatprep.subr.bf16.mxu1 %v6118_v11 }
 0xd95   :  { %v3460_v43 = vpop.f32.mrb[116].mxu1 }
 0xd96   :  { %v3788_v3 = vmul.f32 0.35355338, %v3460_v43  ;;  %v5710_v53 = vpop.f32.mrb[117].mxu1 }
 0xd97   :  { %v3463_v30 = vpop.f32.mrb[118].mxu1 }
 0xd98   :  { %v5711_v55 = vpop.f32.mrb[119].mxu1  ;;  %v3796_v18 = vadd.f32 %v3788_v3, %v6705_v60 }
 0xd9a   :  { %v3804_v49 = vsel %vm917_vm5, %v3796_v18, -inf }
 0xd9b   :  { %3805 = vmax.xlane.f32.xlu1 %v3804_v49 }
 0xd9d   :  { %v3506_v39 = vpop.f32.mrb[120].mxu1  ;;  %v3644_v25 = vpop.f32.mrb[108].mxu0 }
 0xd9e   :  { %v3789_v16 = vmul.f32 0.35355338, %v3506_v39  ;;  %v5716_v7 = vpop.f32.mrb[121].mxu1  ;;  %v5734_v14 = vpop.f32.mrb[109].mxu0  ;;  %v3792_v36 = vmul.f32 0.35355338, %v3644_v25 }
 0xd9f   :  { %v3509_v22 = vpop.f32.mrb[122].mxu1  ;;  %v3647_v50 = vpop.f32.mrb[110].mxu0 }
 0xda0   :  { %v5717_v40 = vpop.f32.mrb[123].mxu1  ;;  %v5735_v54 = vpop.f32.mrb[111].mxu0  ;;  %v3797_v28 = vadd.f32 %v3789_v16, %v6705_v60  ;;  %v3800_v1 = vadd.f32 %v3792_v36, %v6705_v60 }
 0xda2   :  { %v3807_v59 = vsel %vm917_vm5, %v3797_v28, -inf  ;;  %v3816_v20 = vsel %vm917_vm5, %v3800_v1, -inf }
 0xda3   :  { %3808 = vmax.xlane.f32.xlu0 %v3807_v59 }
 0xda5   :  { %v3552_v29 = vpop.f32.mrb[124].mxu1  ;;  %v3736_v52 = vpop.f32.mrb[112].mxu0 }
 0xda6   :  { %v3790_v12 = vmul.f32 0.35355338, %v3552_v29  ;;  %v5722_v38 = vpop.f32.mrb[125].mxu1  ;;  %v5746_v44 = vpop.f32.mrb[113].mxu0  ;;  %v3794_v45 = vmul.f32 0.35355338, %v3736_v52 }
 0xda7   :  { %v3555_v31 = vpop.f32.mrb[126].mxu1  ;;  %v3739_v8 = vpop.f32.mrb[114].mxu0 }
 0xda8   :  { %v5723_v35 = vpop.f32.mrb[127].mxu1  ;;  %v5747_v42 = vpop.f32.mrb[115].mxu0  ;;  %v3798_v63 = vadd.f32 %v3790_v12, %v6705_v60  ;;  %v3802_v32 = vadd.f32 %v3794_v45, %v6705_v60 }
 0xdaa   :  { %v3810_v26 = vsel %vm917_vm5, %v3798_v63, -inf  ;;  %v3822_v48 = vsel %vm917_vm5, %v3802_v32, -inf }
 0xdab   :  { %3811 = vmax.xlane.f32.xlu1 %v3810_v26 }
 0xdad   :  { %v3598_v33 = vpop.f32.mrb[128].mxu1 }
 0xdae   :  { %v3791_v56 = vmul.f32 0.35355338, %v3598_v33  ;;  %v5728_v21 = vpop.f32.mrb[129].mxu1 }
 0xdaf   :  { %3817 = vmax.xlane.f32.xlu1 %v3816_v20  ;;  %v3601_v47 = vpop.f32.mrb[130].mxu1 }
 0xdb0   :  { %v5729_v24 = vpop.f32.mrb[131].mxu1  ;;  %v3799_v61 = vadd.f32 %v3791_v56, %v6705_v60 }
 0xdb2   :  { %v3813_v15 = vsel %vm917_vm5, %v3799_v61, -inf }
 0xdb3   :  { %3823 = vmax.xlane.f32.xlu1 %v3822_v48  ;;  %3814 = vmax.xlane.f32.xlu0 %v3813_v15 }
 0xdb5   :  { %v3690_v41 = vpop.f32.mrb[132].mxu1 }
 0xdb6   :  { %v3793_v34 = vmul.f32 0.35355338, %v3690_v41  ;;  %v5740_v0 = vpop.f32.mrb[133].mxu1 }
 0xdb7   :  { %v3693_v62 = vpop.f32.mrb[134].mxu1  ;;  %v5079_v0 = vpack.c.bf16 %v7107_v9, %v7107_v9 }
 0xdb8   :  { %v5741_v17 = vpop.f32.mrb[135].mxu1  ;;  %v3801_v13 = vadd.f32 %v3793_v34, %v6705_v60 }
 0xdba   :  { %v3819_v27 = vsel %vm917_vm5, %v3801_v13, -inf }
 0xdbb   :  { %3820 = vmax.xlane.f32.xlu0 %v3819_v27 }
 0xdbd   :  { %v3782_v37 = vpop.f32.mrb[136].mxu1 }
 0xdbe   :  { %v3795_v46 = vmul.f32 0.35355338, %v3782_v37  ;;  %v5752_v57 = vpop.f32.mrb[137].mxu1 }
 0xdbf   :  { %v3785_v58 = vpop.f32.mrb[138].mxu1 }
 0xdc0   :  { %v5753_v2 = vpop.f32.mrb[139].mxu1  ;;  %v3803_v43 = vadd.f32 %v3795_v46, %v6705_v60  ;;  %v5080_v46 = vpack.c.bf16 %v7109_v6, %v7109_v6  ;;  %v5081_v6 = vpack.c.bf16 %v7096_v5, %v7096_v5  ;;  %v5083_v5 = vpack.c.bf16 %v7111_v19, %v7111_v19 }
 0xdc2   :  { %v3825_v3 = vsel %vm917_vm5, %v3803_v43, -inf  ;;  %v4042_v2 = vsel %vm942_vm4, %v5080_v46, 0 }
 0xdc3   :  { %3826 = vmax.xlane.f32.xlu0 %v3825_v3 }
 0xe28   :  { %v3806_v53 = vpop.xlane.xlu1 %3805 }
 0xe29   :  { %v3828_v30 = vsub.f32 %v3796_v18, %v3806_v53 }
 0xe2b   :  { %v3836_v55 = vmul.f32 1.442695, %v3828_v30 }
 0xe2d   :  { %6012 = vpow2.f32 %v3836_v55 }
 0xe30   :  { %v3809_v49 = vpop.xlane.xlu0 %3808 }
 0xe31   :  { %v3829_v39 = vsub.f32 %v3797_v28, %v3809_v49 }
 0xe33   :  { %v3838_v25 = vmul.f32 1.442695, %v3829_v39  ;;  %v4088_v39 = vsel %vm942_vm4, %v5081_v6, 0 }
 0xe35   :  { %6014 = vpow2.f32 %v3838_v25 }
 0xe37   :  { %v6013_v16 = vpop.eup %6012 }
 0xe38   :  { %v3812_v7 = vpop.xlane.xlu1 %3811  ;;  %v3852_v14 = vsel %vm917_vm5, %v6013_v16, 0.0 }
 0xe39   :  { %v3830_v22 = vsub.f32 %v3798_v63, %v3812_v7  ;;  %3853 = vadd.xlane.f32.xlu1 %v3852_v14  ;;  %v5082_v14 = vpack.c.bf16 %v7100_v4, %v7100_v4 }
 0xe3b   :  { %v3840_v50 = vmul.f32 1.442695, %v3830_v22 }
 0xe3c   :  { %v3818_v40 = vpop.xlane.xlu1 %3817 }
 0xe3d   :  { %6016 = vpow2.f32 %v3840_v50  ;;  %v3832_v60 = vsub.f32 %v3800_v1, %v3818_v40 }
 0xe3f   :  { %v6015_v54 = vpop.eup %6014  ;;  %v3844_v59 = vmul.f32 1.442695, %v3832_v60 }
 0xe40   :  { %v3824_v29 = vpop.xlane.xlu1 %3823  ;;  %v3815_v18 = vpop.xlane.xlu0 %3814  ;;  %v3855_v52 = vsel %vm917_vm5, %v6015_v54, 0.0 }
 0xe41   :  { %6018 = vpow2.f32 %v3844_v59  ;;  %v3834_v28 = vsub.f32 %v3802_v32, %v3824_v29  ;;  %v3831_v36 = vsub.f32 %v3799_v61, %v3815_v18  ;;  %3856 = vadd.xlane.f32.xlu0 %v3855_v52  ;;  %v4134_v29 = vsel %vm942_vm4, %v5082_v14, 0 }
 0xe42   :  { %v5084_v52 = vpack.c.bf16 %v7113_v23, %v7113_v23 }
 0xe43   :  { %v3848_v12 = vmul.f32 1.442695, %v3834_v28  ;;  %v3842_v38 = vmul.f32 1.442695, %v3831_v36 }
 0xe45   :  { %6020 = vpow2.f32 %v3848_v12  ;;  %v4226_v12 = vsel %vm942_vm4, %v5084_v52, 0 }
 0xe46   :  { %6022 = vpow2.f32 %v3842_v38 }
 0xe47   :  { %v6017_v44 = vpop.eup %6016 }
 0xe48   :  { %v3821_v31 = vpop.xlane.xlu0 %3820  ;;  %v3858_v8 = vsel %vm917_vm5, %v6017_v44, 0.0 }
 0xe49   :  { %v3833_v35 = vsub.f32 %v3801_v13, %v3821_v31  ;;  %3859 = vadd.xlane.f32.xlu1 %v3858_v8  ;;  %v3996_v13 = vsel %vm942_vm4, %v5079_v0, 0  ;;  %v4997_v31 = vld [vmem:[%s7508_s10 + $0x10] sm:$0xf] }
 0xe4a   :  { %v4281_v8 = vsel %vm942_vm4, %v4997_v31, 0 }
 0xe4b   :  { %v6019_v42 = vpop.eup %6018  ;;  %v3846_v63 = vmul.f32 1.442695, %v3833_v35  ;;  %v4998_v35 = vld [vmem:[%s7508_s10 + $0x14] sm:$0xf] }
 0xe4c   :  { %v3864_v45 = vsel %vm917_vm5, %v6019_v42, 0.0 }
 0xe4d   :  { %6024 = vpow2.f32 %v3846_v63  ;;  %3865 = vadd.xlane.f32.xlu1 %v3864_v45 }
 0xe4f   :  { %v7329_v26 = vpop.eup %6020 }
 0xe50   :  { %v6023_v1 = vpop.eup %6022  ;;  %v3827_v33 = vpop.xlane.xlu0 %3826  ;;  %v3870_v56 = vsel %vm917_vm5, %v7329_v26, 0.0 }
 0xe51   :  { %v3835_v21 = vsub.f32 %v3803_v43, %v3827_v33  ;;  %3871 = vadd.xlane.f32.xlu1 %v3870_v56  ;;  %v3861_v20 = vsel %vm917_vm5, %v6023_v1, 0.0  ;;  %v4999_v33 = vld [vmem:[%s7508_s10 + $0x18] sm:$0xf] }
 0xe52   :  { %3862 = vadd.xlane.f32.xlu0 %v3861_v20 }
 0xe53   :  { %v3850_v32 = vmul.f32 1.442695, %v3835_v21 }
 0xe55   :  { %6026 = vpow2.f32 %v3850_v32  ;;  %v4375_v32 = vsel %vm942_vm4, %v4999_v33, 0 }
 0xe57   :  { %v7334_v47 = vpop.eup %6024 }
 0xe58   :  { %v3867_v24 = vsel %vm917_vm5, %v7334_v47, 0.0 }
 0xe59   :  { %3868 = vadd.xlane.f32.xlu0 %v3867_v24 }
 0xe5f   :  { %v7338_v61 = vpop.eup %6026 }
 0xe60   :  { %v3873_v48 = vsel %vm917_vm5, %v7338_v61, 0.0 }
 0xe61   :  { %3874 = vadd.xlane.f32.xlu0 %v3873_v48 }
 0xec6   :  { %v3854_v15 = vpop.xlane.xlu1 %3853 }
 0xec7   :  { %6028 = vrcp.f32 %v3854_v15 }
 0xece   :  { %v3857_v41 = vpop.xlane.xlu0 %3856 }
 0xecf   :  { %6030 = vrcp.f32 %v3857_v41 }
 0xed1   :  { %v6029_v34 = vpop.eup %6028 }
 0xed2   :  { %v3884_v62 = vmul.f32 %v6029_v34, %v6013_v16  ;;  %v5000_v34 = vld [vmem:[%s7508_s10 + $0x1c] sm:$0xf] }
 0xed3   :  { %v4422_v46 = vsel %vm942_vm4, %v5000_v34, 0 }
 0xed4   :  { %v3892_v17 = vpack.c.bf16 %v3884_v62, %v3884_v62 }
 0xed6   :  { %5757 = vmatmul.mubr.msk.bf16.vlgmr.msra.gmra.mrb[116].mxu0 %vm917_vm5, %v3892_v17  ;;  %v3860_v27 = vpop.xlane.xlu1 %3859 }
 0xed7   :  { %5767 = vmatpush3.bf16.msra.mxu0 %v3996_v13  ;;  %6032 = vrcp.f32 %v3860_v27  ;;  %5768 = vmatprep.mubr.msk.bf16.mxu0 %vm6120_vm3, %v6118_v11 }
 0xed8   :  { %5778 = vmatprep.subr.bf16.mxu0 %v6118_v11 }
 0xed9   :  { %v6031_v37 = vpop.eup %6030 }
 0xeda   :  { %v3885_v57 = vmul.f32 %v6031_v37, %v6015_v54  ;;  %v3866_v9 = vpop.xlane.xlu1 %3865  ;;  %v4180_v54 = vsel %vm942_vm4, %v5083_v5, 0 }
 0xedb   :  { %6034 = vrcp.f32 %v3866_v9 }
 0xedc   :  { %v3893_v58 = vpack.c.bf16 %v3885_v57, %v3885_v57 }
 0xede   :  { %5763 = vmatmul.mubr.msk.bf16.vlgmr.msra.gmra.mrb[140].mxu1 %vm917_vm5, %v3893_v58  ;;  %v3872_v3 = vpop.xlane.xlu1 %3871 }
 0xedf   :  { %5773 = vmatpush3.bf16.msra.mxu1 %v4042_v2  ;;  %v3863_v43 = vpop.xlane.xlu0 %3862  ;;  %5774 = vmatprep.mubr.msk.bf16.mxu1 %vm6120_vm3, %v6118_v11 }
 0xee0   :  { %6036 = vrcp.f32 %v3863_v43  ;;  %5784 = vmatprep.subr.bf16.mxu1 %v6118_v11 }
 0xee1   :  { %v6033_v53 = vpop.eup %6032  ;;  %6038 = vrcp.f32 %v3872_v3 }
 0xee2   :  { %v3886_v30 = vmul.f32 %v6033_v53, %v6017_v44 }
 0xee4   :  { %v3894_v55 = vpack.c.bf16 %v3886_v30, %v3886_v30 }
 0xee5   :  { %v6035_v49 = vpop.eup %6034 }
 0xee6   :  { %5769 = vmatmul.mubr.msk.bf16.vlgmr.msra.gmra.mrb[120].mxu0 %vm917_vm5, %v3894_v55  ;;  %v3869_v25 = vpop.xlane.xlu0 %3868  ;;  %v3888_v16 = vmul.f32 %v6035_v49, %v6019_v42  ;;  %v4328_v42 = vsel %vm942_vm4, %v4998_v35, 0 }
 0xee7   :  { %5779 = vmatpush3.bf16.msra.mxu0 %v4088_v39  ;;  %6040 = vrcp.f32 %v3869_v25  ;;  %5780 = vmatprep.mubr.msk.bf16.mxu0 %vm6120_vm3, %v6118_v11 }
 0xee8   :  { %5790 = vmatprep.subr.bf16.mxu0 %v6118_v11  ;;  %v3896_v50 = vpack.c.bf16 %v3888_v16, %v3888_v16 }
 0xeea   :  { %v6037_v7 = vpop.eup %6036 }
 0xeeb   :  { %v3887_v22 = vmul.f32 %v6037_v7, %v6023_v1  ;;  %v6039_v40 = vpop.eup %6038 }
 0xeec   :  { %v3890_v19 = vmul.f32 %v6039_v40, %v7329_v26 }
 0xeed   :  { %v3895_v60 = vpack.c.bf16 %v3887_v22, %v3887_v22 }
 0xeee   :  { %5781 = vmatmul.mubr.msk.bf16.vlgmr.msra.gmra.mrb[124].mxu0 %vm917_vm5, %v3896_v50  ;;  %v3875_v59 = vpop.xlane.xlu0 %3874  ;;  %v3898_v36 = vpack.c.bf16 %v3890_v19, %v3890_v19 }
 0xeef   :  { %5775 = vmatmul.mubr.msk.bf16.vlgmr.msra.gmra.mrb[144].mxu1 %vm917_vm5, %v3895_v60  ;;  %5791 = vmatpush3.bf16.msra.mxu0 %v4180_v54  ;;  %6042 = vrcp.f32 %v3875_v59 }
 0xef0   :  { %5785 = vmatpush3.bf16.msra.mxu1 %v4134_v29  ;;  %5786 = vmatprep.mubr.msk.bf16.mxu1 %vm6120_vm3, %v6118_v11 }
 0xef1   :  { %v6041_v4 = vpop.eup %6040  ;;  %5792 = vmatprep.mubr.msk.bf16.mxu0 %vm6120_vm3, %v6118_v11  ;;  %5796 = vmatprep.subr.bf16.mxu1 %v6118_v11 }
 0xef2   :  { %v3889_v18 = vmul.f32 %v6041_v4, %v7334_v47  ;;  %5802 = vmatprep.subr.bf16.mxu0 %v6118_v11 }
 0xef4   :  { %v3897_v28 = vpack.c.bf16 %v3889_v18, %v3889_v18 }
 0xef6   :  { %5793 = vmatmul.mubr.msk.bf16.vlgmr.msra.gmra.mrb[128].mxu0 %vm917_vm5, %v3898_v36 }
 0xef7   :  { %5787 = vmatmul.mubr.msk.bf16.vlgmr.msra.gmra.mrb[148].mxu1 %vm917_vm5, %v3897_v28  ;;  %5804 = vmatprep.mubr.msk.bf16.mxu0 %vm6120_vm3, %v6118_v11 }
 0xef8   :  { %5797 = vmatpush3.bf16.msra.mxu1 %v4226_v12  ;;  %5798 = vmatprep.mubr.msk.bf16.mxu1 %vm6120_vm3, %v6118_v11 }
 0xef9   :  { %v6043_v38 = vpop.eup %6042  ;;  %5808 = vmatprep.subr.bf16.mxu1 %v6118_v11  ;;  %5803 = vmatpush3.bf16.msra.mxu0 %v4281_v8 }
 0xefa   :  { %v3891_v23 = vmul.f32 %v6043_v38, %v7338_v61  ;;  %5814 = vmatprep.subr.bf16.mxu0 %v6118_v11 }
 0xefc   :  { %v3899_v44 = vpack.c.bf16 %v3891_v23, %v3891_v23 }
 0xeff   :  { %5799 = vmatmul.mubr.msk.bf16.vlgmr.msra.gmra.mrb[152].mxu1 %vm917_vm5, %v3899_v44 }
 0xf00   :  { %5810 = vmatprep.mubr.msk.bf16.mxu1 %vm6120_vm3, %v6118_v11  ;;  %5809 = vmatpush3.bf16.msra.mxu1 %v4328_v42 }
 0xf01   :  { %5820 = vmatprep.subr.bf16.mxu1 %v6118_v11 }
 0xfa9   :  { %v3940_v63 = vpop.f32.mrb[116].mxu0 }
 0xfaa   :  { %v5758_v45 = vpop.f32.mrb[117].mxu0 }
 0xfab   :  { %v3943_v26 = vpop.f32.mrb[118].mxu0 }
 0xfac   :  { %v5759_v1 = vpop.f32.mrb[119].mxu0 }
 0xfb1   :  { %v3986_v56 = vpop.f32.mrb[140].mxu1 }
 0xfb2   :  { %v4268_v21 = vpack.c.bf16 %v3986_v56, %v3940_v63  ;;  %v5764_v20 = vpop.f32.mrb[141].mxu1 }
 0xfb3   :  { %v3989_v47 = vpop.f32.mrb[142].mxu1  ;;  %v5954_v20 = vld [vmem:[%s7509_s11 + $0x18] sm:$0xff]  }
 0xfb4   :  { %v5765_v24 = vpop.f32.mrb[143].mxu1  ;;  %5805 = vmatmul.mubr.msk.bf16.vlgmr.msra.gmra.mrb[132].mxu0 %vm917_vm5, %v4268_v21 }
 0xfb5   :  { %5815 = vmatpush3.bf16.msra.mxu0 %v4375_v32  ;;  %5816 = vmatprep.mubr.msk.bf16.mxu0 %vm6120_vm3, %v6118_v11  ;;  %v5955_v32 = vld [vmem:[%s7510_s12 + $0x18] sm:$0xff]  }
 0xfb6   :  { %5826 = vmatprep.subr.bf16.mxu0 %v6118_v11 }
 0xfb9   :  { %v4032_v61 = vpop.f32.mrb[120].mxu0 }
 0xfba   :  { %v5770_v48 = vpop.f32.mrb[121].mxu0 }
 0xfbb   :  { %v4035_v15 = vpop.f32.mrb[122].mxu0 }
 0xfbc   :  { %v5771_v41 = vpop.f32.mrb[123].mxu0 }
 0xfc1   :  { %v4124_v0 = vpop.f32.mrb[124].mxu0 }
 0xfc2   :  { %v4078_v62 = vpop.f32.mrb[144].mxu1  ;;  %v5782_v17 = vpop.f32.mrb[125].mxu0 }
 0xfc3   :  { %v4269_v13 = vpack.c.bf16 %v4078_v62, %v4032_v61  ;;  %v5776_v27 = vpop.f32.mrb[145].mxu1  ;;  %v4127_v37 = vpop.f32.mrb[126].mxu0  ;;  %v5006_v17 = vld [vmem:[%s7504_s6 + $0x1] ss:$0 sm:$0xff] }
 0xfc4   :  { %v4081_v57 = vpop.f32.mrb[146].mxu1  ;;  %v5783_v9 = vpop.f32.mrb[127].mxu0 }
 0xfc5   :  { %v5777_v58 = vpop.f32.mrb[147].mxu1  ;;  %5811 = vmatmul.mubr.msk.bf16.vlgmr.msra.gmra.mrb[156].mxu1 %vm917_vm5, %v4269_v13  ;;  %v5956_v57 = vld [vmem:[%s7511_s13 + $0x20] sm:$0xff]   ;;  %v5957_v9 = vld [vmem:[%s7511_s13 + $0x28] sm:$0xff]  }
 0xfc6   :  { %5821 = vmatpush3.bf16.msra.mxu1 %v4422_v46  ;;  %5822 = vmatprep.mubr.msk.bf16.mxu1 %vm6120_vm3, %v6118_v11  ;;  %v5958_v58 = vld [vmem:[%s7511_s13 + $0x30] sm:$0xff]  }
 0xfc7   :  { %5834 = vmatprep.subr.bf16.mxu1 %v6118_v11 }
 0xfc9   :  { %v4216_v2 = vpop.f32.mrb[128].mxu0 }
 0xfca   :  { %v4170_v43 = vpop.f32.mrb[148].mxu1  ;;  %v5794_v3 = vpop.f32.mrb[129].mxu0 }
 0xfcb   :  { %v4270_v53 = vpack.c.bf16 %v4170_v43, %v4124_v0  ;;  %v5788_v6 = vpop.f32.mrb[149].mxu1  ;;  %v4219_v30 = vpop.f32.mrb[130].mxu0 }
 0xfcc   :  { %v4173_v55 = vpop.f32.mrb[150].mxu1  ;;  %v5795_v49 = vpop.f32.mrb[131].mxu0 }
 0xfcd   :  { %v5789_v39 = vpop.f32.mrb[151].mxu1  ;;  %5817 = vmatmul.mubr.msk.bf16.vlgmr.msra.gmra.mrb[136].mxu0 %vm917_vm5, %v4270_v53 }
 0xfce   :  { %5830 = vmatprep.mubr.msk.bf16.mxu0 %vm6120_vm3, %v6118_v11 }
 0xfd2   :  { %v4262_v25 = vpop.f32.mrb[152].mxu1 }
 0xfd3   :  { %v4271_v16 = vpack.c.bf16 %v4262_v25, %v4216_v2  ;;  %v5800_v7 = vpop.f32.mrb[153].mxu1  ;;  %v5959_v2 = vld [vmem:[%s7511_s13 + $0x38] sm:$0xff]  }
 0xfd4   :  { %v4265_v5 = vpop.f32.mrb[154].mxu1 }
 0xfd5   :  { %v5801_v14 = vpop.f32.mrb[155].mxu1  ;;  %5823 = vmatmul.mubr.msk.bf16.vlgmr.msra.gmra.mrb[160].mxu1 %vm917_vm5, %v4271_v16 }
 0xfd6   :  { %5838 = vmatprep.mubr.msk.bf16.mxu1 %vm6120_vm3, %v6118_v11 }
0x1087   :  { %v4317_v22 = vpop.f32.mrb[132].mxu0 }
0x1088   :  { %v5806_v50 = vpop.f32.mrb[133].mxu0 }
0x1089   :  { %v4320_v40 = vpop.f32.mrb[134].mxu0 }
0x108a   :  { %v5807_v60 = vpop.f32.mrb[135].mxu0 }
0x1098   :  { %v4364_v54 = vpop.f32.mrb[156].mxu1 }
0x1099   :  { %v4465_v59 = vadd.f32 %v4364_v54, %v4317_v22  ;;  %v5812_v29 = vpop.f32.mrb[157].mxu1 }
0x109a   :  { %v4367_v19 = vpop.f32.mrb[158].mxu1 }
0x109b   :  { %v4466_v4 = vadd.f32 %v4367_v19, %v4320_v40  ;;  %v5813_v18 = vpop.f32.mrb[159].mxu1 }
0x10a0   :  { %v4411_v52 = vpop.f32.mrb[136].mxu0 }
0x10a1   :  { %v4467_v28 = vadd.f32 %v4465_v59, %v4411_v52  ;;  %v5818_v36 = vpop.f32.mrb[137].mxu0 }
0x10a2   :  { %v4414_v12 = vpop.f32.mrb[138].mxu0 }
0x10a3   :  { %v4468_v38 = vadd.f32 %v4466_v4, %v4414_v12  ;;  %v5819_v23 = vpop.f32.mrb[139].mxu0 }
0x10a8   :  { %v4458_v44 = vpop.f32.mrb[160].mxu1 }
0x10a9   :  { %v4469_v31 = vadd.f32 %v4467_v28, %v4458_v44  ;;  %v5824_v8 = vpop.f32.mrb[161].mxu1 }
0x10aa   :  { %v4461_v35 = vpop.f32.mrb[162].mxu1 }
0x10ab   :  { %v7426_v42 = vadd.f32 %v4469_v31, %v6882_v10  ;;  %v4470_v63 = vadd.f32 %v4468_v38, %v4461_v35  ;;  %v5825_v45 = vpop.f32.mrb[163].mxu1  ;;  %v5952_v10 = vld [vmem:[%s7509_s11 + $0x10] sm:$0xff]  }
0x10ac   :  { %5827 = vmatpush3.bf16.msra.mxu0 %v5952_v10 }
0x10ad   :  { %v7429_v26 = vadd.f32 %v4470_v63, %v6885_v51  ;;  %v4475_v1 = vmul.f32 %v7426_v42, %v7426_v42  ;;  %v5953_v51 = vld [vmem:[%s7510_s12 + $0x10] sm:$0xff]   ;;  %5828 = vmatprep.subr.bf16.mxu0 %v6118_v11 }
0x10ae   :  { %5835 = vmatpush3.bf16.msra.mxu1 %v5953_v51 }
0x10af   :  { %v4477_v33 = vsel %vm197_vm2, %v4475_v1, 0.0  ;;  %v4476_v56 = vmul.f32 %v7429_v26, %v7429_v26  ;;  %5836 = vmatprep.subr.bf16.mxu1 %v6118_v11 }
0x10b0   :  { %4478 = vadd.xlane.f32.xlu1 %v4477_v33  ;;  %5829 = vmatpush3.bf16.msra.mxu0 %v5954_v20 }
0x10b1   :  { %v4480_v21 = vsel %vm197_vm2, %v4476_v56, 0.0  ;;  %5842 = vmatprep.subr.bf16.mxu0 %v6118_v11 }
0x10b2   :  { %4481 = vadd.xlane.f32.xlu0 %v4480_v21  ;;  %5837 = vmatpush3.bf16.msra.mxu1 %v5955_v32 }
0x113d   :  { %v4479_v47 = vpop.xlane.xlu1 %4478 }
0x113e   :  { %v4483_v24 = vmul.f32 0.03125, %v4479_v47 }
0x113f   :  { %v4482_v61 = vpop.xlane.xlu0 %4481 }
0x1140   :  { %v4485_v48 = vadd.f32 1e-06, %v4483_v24  ;;  %v4484_v15 = vmul.f32 0.03125, %v4482_v61 }
0x1142   :  { %6044 = vrsqrt.f32 %v4485_v48  ;;  %v4486_v41 = vadd.f32 1e-06, %v4484_v15 }
0x1144   :  { %6046 = vrsqrt.f32 %v4486_v41 }
0x114c   :  { %v6045_v34 = vpop.eup %6044 }
0x114d   :  { %v4489_v0 = vmul.f32 %v6045_v34, %v7426_v42 }
0x114e   :  { %v6047_v62 = vpop.eup %6046 }
0x114f   :  { %v4490_v13 = vmul.f32 %v6047_v62, %v7429_v26  ;;  %v4497_v27 = vmul.f32 %v5006_v17, %v4489_v0 }
0x1151   :  { %v4498_v37 = vmul.f32 %v5006_v17, %v4490_v13 }
0x1153   :  { %v4499_v46 = vpack.c.bf16 %v4498_v37, %v4497_v27 }
0x1155   :  { %5831 = vmatmul.mubr.msk.bf16.vlgmr.msra.gmra.mrb[140].mxu0 %vm197_vm2, %v4499_v46  ;;  %5839 = vmatmul.mubr.msk.bf16.vlgmr.msra.gmra.mrb[164].mxu1 %vm197_vm2, %v4499_v46 }
0x1156   :  { %5850 = vmatprep.mubr.msk.bf16.mxu0 %vm6120_vm3, %v6118_v11  ;;  %5843 = vmatpush3.bf16.msra.mxu0 %v5956_v57 }
0x1157   :  { %5844 = vmatprep.subr.bf16.mxu0 %v6118_v11 }
0x115a   :  { %5845 = vmatpush3.bf16.msra.mxu0 %v5957_v9 }
0x115b   :  { %5846 = vmatprep.subr.bf16.mxu0 %v6118_v11 }
0x115e   :  { %5847 = vmatpush3.bf16.msra.mxu0 %v5958_v58 }
0x115f   :  { %5848 = vmatprep.subr.bf16.mxu0 %v6118_v11 }
0x1162   :  { %5849 = vmatpush3.bf16.msra.mxu0 %v5959_v2 }
0x1228   :  { %v4554_v43 = vpop.f32.mrb[140].mxu0  ;;  %v4612_v3 = vpop.f32.mrb[164].mxu1 }
0x1229   :  { %v5021_v53 = vmul.f32 -1.442695, %v4554_v43  ;;  %v5832_v6 = vpop.f32.mrb[141].mxu0  ;;  %v5840_v30 = vpop.f32.mrb[165].mxu1 }
0x122a   :  { %v4557_v55 = vpop.f32.mrb[142].mxu0  ;;  %v4615_v49 = vpop.f32.mrb[166].mxu1 }
0x122b   :  { %6048 = vpow2.f32 %v5021_v53  ;;  %v5022_v39 = vmul.f32 -1.442695, %v4557_v55  ;;  %v5833_v25 = vpop.f32.mrb[143].mxu0  ;;  %v5841_v16 = vpop.f32.mrb[167].mxu1 }
0x122d   :  { %6050 = vpow2.f32 %v5022_v39 }
0x1235   :  { %v6049_v7 = vpop.eup %6048 }
0x1236   :  { %v4625_v5 = vadd.f32 1.0, %v6049_v7 }
0x1237   :  { %v6051_v11 = vpop.eup %6050 }
0x1238   :  { %6052 = vrcp.f32 %v4625_v5  ;;  %v4626_v14 = vadd.f32 1.0, %v6051_v11 }
0x123a   :  { %6054 = vrcp.f32 %v4626_v14 }
0x1242   :  { %v6053_v22 = vpop.eup %6052 }
0x1243   :  { %v4631_v50 = vmul.f32 %v6053_v22, %v4554_v43 }
0x1244   :  { %v6055_v40 = vpop.eup %6054 }
0x1245   :  { %v4633_v60 = vmul.f32 %v4631_v50, %v4612_v3  ;;  %v4632_v54 = vmul.f32 %v6055_v40, %v4557_v55 }
0x1247   :  { %v4634_v59 = vmul.f32 %v4632_v54, %v4615_v49 }
0x1249   :  { %v4635_v29 = vpack.c.bf16 %v4634_v59, %v4633_v60 }
0x124b   :  { %5851 = vmatmul.mubr.msk.bf16.vlgmr.msra.gmra.mrb[144].mxu0 %vm2407_vm7, %v4635_v29 }
0x131e   :  { %v4706_v19 = vpop.f32.mrb[144].mxu0 }
0x131f   :  { %v4713_v4 = vadd.f32 %v4706_v19, %v7426_v42  ;;  %v5852_v18 = vpop.f32.mrb[145].mxu0 }
0x1320   :  { %v4709_v52 = vpop.f32.mrb[146].mxu0 }
0x1321   :  { %v4714_v28 = vadd.f32 %v4709_v52, %v7429_v26  ;;  %v5853_v36 = vpop.f32.mrb[147].mxu0  ;;  %v4716_v12 = vmul.f32 %v4713_v4, %v4713_v4  ;;  %v5036_v26 = vld [vmem:[%s7512_s14] ss:$0 sm:$0xff] }
0x1323   :  { %v4718_v38 = vsel %vm197_vm2, %v4716_v12, 0.0  ;;  %v4717_v23 = vmul.f32 %v4714_v28, %v4714_v28 }
0x1324   :  { %4719 = vadd.xlane.f32.xlu1 %v4718_v38 }
0x1325   :  { %v4721_v44 = vsel %vm197_vm2, %v4717_v23, 0.0 }
0x1326   :  { %4722 = vadd.xlane.f32.xlu0 %v4721_v44 }
0x13b1   :  { %v4720_v31 = vpop.xlane.xlu1 %4719 }
0x13b2   :  { %v4724_v8 = vmul.f32 0.03125, %v4720_v31 }
0x13b3   :  { %v4723_v35 = vpop.xlane.xlu0 %4722 }
0x13b4   :  { %v4726_v63 = vadd.f32 1e-06, %v4724_v8  ;;  %v4725_v45 = vmul.f32 0.03125, %v4723_v35 }
0x13b6   :  { %6056 = vrsqrt.f32 %v4726_v63  ;;  %v4727_v42 = vadd.f32 1e-06, %v4725_v45 }
0x13b8   :  { %6058 = vrsqrt.f32 %v4727_v42 }
0x13c0   :  { %v6057_v1 = vpop.eup %6056 }
0x13c1   :  { %v4730_v33 = vmul.f32 %v6057_v1, %v4713_v4 }
0x13c2   :  { %v6059_v56 = vpop.eup %6058 }
0x13c3   :  { %v4731_v21 = vmul.f32 %v6059_v56, %v4714_v28  ;;  %v4738_v10 = vmul.f32 %v5036_v26, %v4730_v33 }
0x13c5   :  { %v4739_v51 = vmul.f32 %v5036_v26, %v4731_v21  ;;  %4740 = vst.msk [vmem:[#allocation2] sm:$0xff] %vm197_vm2, %v4738_v10 }
0x13c7   :  { %4741 = vst.msk [vmem:[#allocation2 + $0x8] sm:$0xff] %vm197_vm2, %v4739_v51 }
0x13c8   :  { %6104 = shalt.err (!%p6101_p4)
}
0x13c9   :  { %s6105_s1 = scalar_lea.hbm %s7513_s15, 256 }
0x13ca   :  { %p6106_p5 = scmp.ne.s32.totalorder %s7513_s15, %s6105_s1  ;;  %p6109_p6 = scmp.lt.u32.totalorder %s6105_s1, %s7513_s15 }
0x13cc   :  { %p6111_p7 = pnand %p6109_p6, %p6106_p5 }
0x13ce   :  { %6114 = shalt.err (!%p6111_p7)
}
0x13cf   :  { %s6122_s10 = smov 128   ;;  %s6123_s24 = smov 8  }
0x13d0   :  { %4753 = dma.vmem_to_hbm [thread:$0]  %s4748_s2, 256, %s7513_s15, [#allocation3], %s6122_s10, %s6122_s10, %s6123_s24  }
0x13d1   :  { %6115 = dma.done.wait [#allocation3], 256  }
0x13d2   :  { %6116 = vsyncadd [#allocation3], 4294967040 }
0x13d3   :  { %4757 = vsyncpa [#allocation3], 1 }

</bundles_post_ra>
